<compile_context>
chip_gen: v5e
topology: v5e:2x2
jax: 0.10.0
libtpu: 0.0.40
codegen_flags: <defaults>
</compile_context>

<pallas_src>
import functools

import jax
import jax.numpy as jnp
import numpy as np
from jax import lax
from jax.experimental import pallas as pl
from jax.experimental.pallas import tpu as pltpu

_LANES = 128


def _bn_relu_conv_kernel(x_ref, w_ref, scale_ref, shift_ref, o_ref,
                         pad_scratch, patch_scratch,
                         *, B, H, W, Cin, K, P, H_out, W_out):
    """Fused BN(affine) -> ReLU -> Conv2d (stride=1) for B batch elements.

    x_ref        : (B, H, W, Cin)              f32  VMEM (NHWC)
    w_ref        : (K*K*Cin, Cout_p)           bf16 VMEM (HWIO flattened, lane-padded)
    scale_ref    : (1, Cin)                    f32  gamma / sqrt(var + eps)
    shift_ref    : (1, Cin)                    f32  beta - mean * scale
    o_ref        : (B, H_out*W_out, Cout_p)    bf16 VMEM (lane-dense)
    pad_scratch  : (B, H+2P, W+2P, Cin)        f32  padded activations
    patch_scratch: (B, H_out, W_out, K*K*Cin)  bf16 im2col slab
    """
    Hp = H + 2 * P
    Wp = W + 2 * P
    F = K * K * Cin

    # Zero only the halo strips, and do it on EVERY grid step: with
    # dimension_semantics=("parallel",) the grid may be sharded across
    # TensorCores (v7x), so gating on program_id(0)==0 would leave one core's
    # private scratch halo uninitialized (stale VMEM at the conv borders).
    # Cost is ~2*(Hp+Wp)*P*Cin elements per step — negligible.
    if P > 0:
        zrow = jnp.zeros((B, P, Wp, Cin), pad_scratch.dtype)
        pad_scratch[:, :P, :, :] = zrow
        pad_scratch[:, P + H:, :, :] = zrow
        zcol = jnp.zeros((B, Hp, P, Cin), pad_scratch.dtype)
        pad_scratch[:, :, :P, :] = zcol
        pad_scratch[:, :, P + W:, :] = zcol

    # BatchNorm (folded affine) + ReLU in f32 (v5e VPU has no bf16).
    scale = scale_ref[...].reshape(1, 1, 1, Cin)
    shift = shift_ref[...].reshape(1, 1, 1, Cin)
    act = jnp.maximum(x_ref[...] * scale + shift, 0.0)
    pad_scratch[:, P:P + H, P:P + W, :] = act

    # im2col: direct strided stores of the K*K shifted views into the bf16
    # patches scratch (no concatenate temporary, no cross-tile relayout); the
    # f32 -> bf16 cast rides along with each tap store.
    for kh in range(K):
        for kw in range(K):
            t = kh * K + kw
            patch_scratch[:, :, :, t * Cin:(t + 1) * Cin] = (
                pad_scratch[:, kh:kh + H_out, kw:kw + W_out, :]
                .astype(patch_scratch.dtype))

    # Single MXU matmul per grid step: bf16 operands, f32 accumulation.
    patches = patch_scratch[...].reshape(B * H_out * W_out, F)
    acc = jnp.dot(patches, w_ref[...], preferred_element_type=jnp.float32)
    o_ref[...] = acc.reshape(B, H_out * W_out, o_ref.shape[-1]).astype(o_ref.dtype)


def base_module_forward(x_nchw, conv_w_oihw, gamma, beta, *, padding, eps=1e-5,
                        batch_block=None):
    """BN(train-mode batch stats) -> ReLU -> Conv2d(stride=1, bias=False).

    x_nchw      : (N, Cin, H, W)    float32 (PyTorch layout)
    conv_w_oihw : (Cout, Cin, K, K) float32 (PyTorch layout)
    gamma, beta : (Cin,) BatchNorm affine params.
    Returns (N, Cout, H_out, W_out) float32 in NCHW to match the PyTorch module.
    """
    N, Cin, H, W = x_nchw.shape
    Cout, _, K, _ = conv_w_oihw.shape
    P = int(padding)
    H_out = H + 2 * P - K + 1
    W_out = W + 2 * P - K + 1
    assert H_out >= 1 and W_out >= 1
    # TODO(synk): stride > 1 not implemented (module default stride=1).

    # Batch elements per grid step: fatter steps amortize the ~0.35us per-step
    # overhead and feed the MXU more rows (single-TC v5e/v6e), while keeping
    # >= 2 grid steps so both v7x TensorCores receive work.
    if batch_block is None:
        batch_block = N // 2 if (N >= 2 and N % 2 == 0) else 1
    B = int(batch_block)
    assert N % B == 0, (N, B)
    n_steps = N // B

    Cout_p = max(_LANES, ((Cout + _LANES - 1) // _LANES) * _LANES)

    x32 = x_nchw.astype(jnp.float32)

    # Train-mode BN batch statistics, numerically stable E[(x-mean)^2] form,
    # folded into per-channel scale/shift.
    mean = jnp.mean(x32, axis=(0, 2, 3))
    var = jnp.mean(jnp.square(x32 - mean.reshape(1, Cin, 1, 1)), axis=(0, 2, 3))
    scale = gamma.astype(jnp.float32) * lax.rsqrt(var + eps)
    shift = beta.astype(jnp.float32) - mean * scale
    scale = scale.reshape(1, Cin)
    shift = shift.reshape(1, Cin)

    # NCHW -> NHWC for the kernel.
    # TODO(synk): keep activations NHWC end-to-end so this extra HBM pass over
    #             x disappears in a real network.
    x_nhwc = jnp.transpose(x32, (0, 2, 3, 1))

    # OIHW -> HWIO -> (K*K*Cin, Cout), bf16, zero-padded to 128-lane-dense Cout.
    w_mat = jnp.transpose(conv_w_oihw, (2, 3, 1, 0)).reshape(K * K * Cin, Cout)
    w_packed = jnp.pad(w_mat.astype(jnp.bfloat16), ((0, 0), (0, Cout_p - Cout)))

    kernel = functools.partial(_bn_relu_conv_kernel, B=B, H=H, W=W, Cin=Cin,
                               K=K, P=P, H_out=H_out, W_out=W_out)

    out_flat = pl.pallas_call(
        kernel,
        out_shape=jax.ShapeDtypeStruct((N, H_out * W_out, Cout_p), jnp.bfloat16),
        grid_spec=pltpu.PrefetchScalarGridSpec(
            num_scalar_prefetch=0,
            grid=(n_steps,),
            in_specs=[
                pl.BlockSpec((B, H, W, Cin), lambda n: (n, 0, 0, 0)),
                pl.BlockSpec((K * K * Cin, Cout_p), lambda n: (0, 0)),
                pl.BlockSpec((1, Cin), lambda n: (0, 0)),
                pl.BlockSpec((1, Cin), lambda n: (0, 0)),
            ],
            out_specs=pl.BlockSpec((B, H_out * W_out, Cout_p),
                                   lambda n: (n, 0, 0)),
            scratch_shapes=[
                pltpu.VMEM((B, H + 2 * P, W + 2 * P, Cin), jnp.float32),
                pltpu.VMEM((B, H_out, W_out, K * K * Cin), jnp.bfloat16),
            ],
        ),
        compiler_params=pltpu.CompilerParams(
            dimension_semantics=("parallel",),
            vmem_limit_bytes=32 * 1024 * 1024,
        ),
    )(x_nhwc, w_packed, scale, shift)

    # Slice the real Cout back out, upcast, and return NCHW to match PyTorch.
    out_nhwc = out_flat[:, :, :Cout].astype(jnp.float32).reshape(
        N, H_out, W_out, Cout)
    return jnp.transpose(out_nhwc, (0, 3, 1, 2))


def _reference(x_nchw, conv_w_oihw, gamma, beta, *, padding, eps=1e-5):
    """Pure-JAX reference of the PyTorch forward (train-mode BN, stride-1 conv).

    Conv operands are cast to bf16 with f32 accumulation to mirror the
    kernel's MXU precision.
    """
    mean = jnp.mean(x_nchw, axis=(0, 2, 3), keepdims=True)
    var = jnp.mean((x_nchw - mean) ** 2, axis=(0, 2, 3), keepdims=True)
    xn = (x_nchw - mean) / jnp.sqrt(var + eps)
    xn = xn * gamma.reshape(1, -1, 1, 1) + beta.reshape(1, -1, 1, 1)
    xn = jnp.maximum(xn, 0.0)
    return jax.lax.conv_general_dilated(
        xn.astype(jnp.bfloat16), conv_w_oihw.astype(jnp.bfloat16),
        window_strides=(1, 1),
        padding=[(padding, padding), (padding, padding)],
        dimension_numbers=("NCHW", "OIHW", "NCHW"),
        preferred_element_type=jnp.float32)


if __name__ == "__main__":
    # BaseModule(filter_size=3, inf=4, outf=8, padding=1, bias=False, stride=1)
    N, Cin, H, W = 2, 4, 16, 16
    Cout, K, padding = 8, 3, 1

    key = jax.random.PRNGKey(0)
    kx, kw = jax.random.split(key)
    x = jax.random.normal(kx, (N, Cin, H, W), dtype=jnp.float32)
    conv_w = (jax.random.normal(kw, (Cout, Cin, K, K), dtype=jnp.float32)
              * (1.0 / np.sqrt(Cin * K * K)))
    gamma = jnp.ones((Cin,), jnp.float32)   # nn.BatchNorm2d default init
    beta = jnp.zeros((Cin,), jnp.float32)

    out = jax.block_until_ready(
        base_module_forward(x, conv_w, gamma, beta, padding=padding))
    ref = jax.block_until_ready(
        _reference(x, conv_w, gamma, beta, padding=padding))

    assert out.shape == (N, Cout, H, W), out.shape
    # Tolerance accounts for bf16 conv operands + bf16 output store vs the
    # f32-output reference (both use f32 accumulation).
    np.testing.assert_allclose(np.asarray(out), np.asarray(ref),
                               rtol=2e-2, atol=2e-2)
    print("KERNEL_OK")
</pallas_src>

<mosaic_0001>
module attributes {stable_mosaic.version = 11 : i64} {
  func.func @_bn_relu_conv_kernel(%arg0: i32, %arg1: memref<1x16x16x4xf32, #tpu.memory_space<vmem>>, %arg2: memref<36x128xbf16, #tpu.memory_space<vmem>>, %arg3: memref<1x4xf32, #tpu.memory_space<vmem>>, %arg4: memref<1x4xf32, #tpu.memory_space<vmem>>, %arg5: memref<1x256x128xbf16, #tpu.memory_space<vmem>>, %arg6: memref<1x18x18x4xf32, #tpu.memory_space<vmem>>, %arg7: memref<1x16x16x36xbf16, #tpu.memory_space<vmem>>) attributes {dimension_semantics = [#tpu.dimension_semantics<parallel>], iteration_bounds = array<i64: 2>, scalar_prefetch = 0 : i64, scratch_operands = 2 : i64, tpu.core_type = #tpu.core_type<tc>, window_params = [{transform_indices = @transform_0, window_bounds = array<i64: 1, 16, 16, 4>}, {pipeline_mode = #tpu.pipeline_mode<synchronous>, transform_indices = @transform_1, window_bounds = array<i64: 36, 128>}, {pipeline_mode = #tpu.pipeline_mode<synchronous>, transform_indices = @transform_2, window_bounds = array<i64: 1, 4>}, {pipeline_mode = #tpu.pipeline_mode<synchronous>, transform_indices = @transform_3, window_bounds = array<i64: 1, 4>}, {transform_indices = @transform_4, window_bounds = array<i64: 1, 256, 128>}]} {
    %cst = arith.constant 0.000000e+00 : f32
    %0 = vector.broadcast %cst : f32 to vector<1x1x18x4xf32>
    %c0 = arith.constant 0 : index
    %c0_0 = arith.constant 0 : index
    %c0_1 = arith.constant 0 : index
    %c0_2 = arith.constant 0 : index
    %1 = vector.load %arg6[%c0, %c0_0, %c0_1, %c0_2] : memref<1x18x18x4xf32, #tpu.memory_space<vmem>>, vector<1x1x18x4xf32>
    tpu.vector_store %arg6[%c0, %c0_0, %c0_1, %c0_2], %0 {strides = array<i32>} : memref<1x18x18x4xf32, #tpu.memory_space<vmem>>, vector<1x1x18x4xf32>,
    %c0_3 = arith.constant 0 : index
    %c17 = arith.constant 17 : index
    %c0_4 = arith.constant 0 : index
    %c0_5 = arith.constant 0 : index
    %2 = vector.load %arg6[%c0_3, %c17, %c0_4, %c0_5] : memref<1x18x18x4xf32, #tpu.memory_space<vmem>>, vector<1x1x18x4xf32>
    tpu.vector_store %arg6[%c0_3, %c17, %c0_4, %c0_5], %0 {strides = array<i32>} : memref<1x18x18x4xf32, #tpu.memory_space<vmem>>, vector<1x1x18x4xf32>,
    %cst_6 = arith.constant 0.000000e+00 : f32
    %3 = vector.broadcast %cst_6 : f32 to vector<1x18x1x4xf32>
    %c0_7 = arith.constant 0 : index
    %c0_8 = arith.constant 0 : index
    %c0_9 = arith.constant 0 : index
    %c0_10 = arith.constant 0 : index
    %4 = vector.load %arg6[%c0_7, %c0_8, %c0_9, %c0_10] : memref<1x18x18x4xf32, #tpu.memory_space<vmem>>, vector<1x18x1x4xf32>
    tpu.vector_store %arg6[%c0_7, %c0_8, %c0_9, %c0_10], %3 {strides = array<i32>} : memref<1x18x18x4xf32, #tpu.memory_space<vmem>>, vector<1x18x1x4xf32>,
    %c0_11 = arith.constant 0 : index
    %c0_12 = arith.constant 0 : index
    %c17_13 = arith.constant 17 : index
    %c0_14 = arith.constant 0 : index
    %5 = vector.load %arg6[%c0_11, %c0_12, %c17_13, %c0_14] : memref<1x18x18x4xf32, #tpu.memory_space<vmem>>, vector<1x18x1x4xf32>
    tpu.vector_store %arg6[%c0_11, %c0_12, %c17_13, %c0_14], %3 {strides = array<i32>} : memref<1x18x18x4xf32, #tpu.memory_space<vmem>>, vector<1x18x1x4xf32>,
    %c0_15 = arith.constant 0 : index
    %c0_16 = arith.constant 0 : index
    %6 = vector.load %arg3[%c0_15, %c0_16] : memref<1x4xf32, #tpu.memory_space<vmem>>, vector<1x4xf32>
    %7 = vector.shape_cast %6 : vector<1x4xf32> to vector<1x1x1x4xf32>
    %c0_17 = arith.constant 0 : index
    %c0_18 = arith.constant 0 : index
    %8 = vector.load %arg4[%c0_17, %c0_18] : memref<1x4xf32, #tpu.memory_space<vmem>>, vector<1x4xf32>
    %9 = vector.shape_cast %8 : vector<1x4xf32> to vector<1x1x1x4xf32>
    %c0_19 = arith.constant 0 : index
    %c0_20 = arith.constant 0 : index
    %c0_21 = arith.constant 0 : index
    %c0_22 = arith.constant 0 : index
    %10 = vector.load %arg1[%c0_19, %c0_20, %c0_21, %c0_22] : memref<1x16x16x4xf32, #tpu.memory_space<vmem>>, vector<1x16x16x4xf32>
    %11 = vector.broadcast %7 : vector<1x1x1x4xf32> to vector<1x16x16x4xf32>
    %12 = arith.mulf %10, %11 : vector<1x16x16x4xf32>
    %13 = vector.broadcast %9 : vector<1x1x1x4xf32> to vector<1x16x16x4xf32>
    %14 = arith.addf %12, %13 : vector<1x16x16x4xf32>
    %cst_23 = arith.constant 0.000000e+00 : f32
    %15 = vector.broadcast %cst_23 : f32 to vector<1x16x16x4xf32>
    %16 = arith.maximumf %14, %15 : vector<1x16x16x4xf32>
    %c0_24 = arith.constant 0 : index
    %c1 = arith.constant 1 : index
    %c1_25 = arith.constant 1 : index
    %c0_26 = arith.constant 0 : index
    %17 = vector.load %arg6[%c0_24, %c1, %c1_25, %c0_26] : memref<1x18x18x4xf32, #tpu.memory_space<vmem>>, vector<1x16x16x4xf32>
    tpu.vector_store %arg6[%c0_24, %c1, %c1_25, %c0_26], %16 {strides = array<i32>} : memref<1x18x18x4xf32, #tpu.memory_space<vmem>>, vector<1x16x16x4xf32>,
    %c0_27 = arith.constant 0 : index
    %c0_28 = arith.constant 0 : index
    %c0_29 = arith.constant 0 : index
    %c0_30 = arith.constant 0 : index
    %18 = vector.load %arg6[%c0_27, %c0_28, %c0_29, %c0_30] : memref<1x18x18x4xf32, #tpu.memory_space<vmem>>, vector<1x16x16x4xf32>
    %19 = arith.truncf %18 : vector<1x16x16x4xf32> to vector<1x16x16x4xbf16>
    %c0_31 = arith.constant 0 : index
    %c0_32 = arith.constant 0 : index
    %c0_33 = arith.constant 0 : index
    %c0_34 = arith.constant 0 : index
    %20 = vector.load %arg7[%c0_31, %c0_32, %c0_33, %c0_34] : memref<1x16x16x36xbf16, #tpu.memory_space<vmem>>, vector<1x16x16x4xbf16>
    tpu.vector_store %arg7[%c0_31, %c0_32, %c0_33, %c0_34], %19 {strides = array<i32>} : memref<1x16x16x36xbf16, #tpu.memory_space<vmem>>, vector<1x16x16x4xbf16>,
    %c0_35 = arith.constant 0 : index
    %c0_36 = arith.constant 0 : index
    %c1_37 = arith.constant 1 : index
    %c0_38 = arith.constant 0 : index
    %21 = vector.load %arg6[%c0_35, %c0_36, %c1_37, %c0_38] : memref<1x18x18x4xf32, #tpu.memory_space<vmem>>, vector<1x16x16x4xf32>
    %22 = arith.truncf %21 : vector<1x16x16x4xf32> to vector<1x16x16x4xbf16>
    %c0_39 = arith.constant 0 : index
    %c0_40 = arith.constant 0 : index
    %c0_41 = arith.constant 0 : index
    %c4 = arith.constant 4 : index
    %23 = vector.load %arg7[%c0_39, %c0_40, %c0_41, %c4] : memref<1x16x16x36xbf16, #tpu.memory_space<vmem>>, vector<1x16x16x4xbf16>
    tpu.vector_store %arg7[%c0_39, %c0_40, %c0_41, %c4], %22 {strides = array<i32>} : memref<1x16x16x36xbf16, #tpu.memory_space<vmem>>, vector<1x16x16x4xbf16>,
    %c0_42 = arith.constant 0 : index
    %c0_43 = arith.constant 0 : index
    %c2 = arith.constant 2 : index
    %c0_44 = arith.constant 0 : index
    %24 = vector.load %arg6[%c0_42, %c0_43, %c2, %c0_44] : memref<1x18x18x4xf32, #tpu.memory_space<vmem>>, vector<1x16x16x4xf32>
    %25 = arith.truncf %24 : vector<1x16x16x4xf32> to vector<1x16x16x4xbf16>
    %c0_45 = arith.constant 0 : index
    %c0_46 = arith.constant 0 : index
    %c0_47 = arith.constant 0 : index
    %c8 = arith.constant 8 : index
    %26 = vector.load %arg7[%c0_45, %c0_46, %c0_47, %c8] : memref<1x16x16x36xbf16, #tpu.memory_space<vmem>>, vector<1x16x16x4xbf16>
    tpu.vector_store %arg7[%c0_45, %c0_46, %c0_47, %c8], %25 {strides = array<i32>} : memref<1x16x16x36xbf16, #tpu.memory_space<vmem>>, vector<1x16x16x4xbf16>,
    %c0_48 = arith.constant 0 : index
    %c1_49 = arith.constant 1 : index
    %c0_50 = arith.constant 0 : index
    %c0_51 = arith.constant 0 : index
    %27 = vector.load %arg6[%c0_48, %c1_49, %c0_50, %c0_51] : memref<1x18x18x4xf32, #tpu.memory_space<vmem>>, vector<1x16x16x4xf32>
    %28 = arith.truncf %27 : vector<1x16x16x4xf32> to vector<1x16x16x4xbf16>
    %c0_52 = arith.constant 0 : index
    %c0_53 = arith.constant 0 : index
    %c0_54 = arith.constant 0 : index
    %c12 = arith.constant 12 : index
    %29 = vector.load %arg7[%c0_52, %c0_53, %c0_54, %c12] : memref<1x16x16x36xbf16, #tpu.memory_space<vmem>>, vector<1x16x16x4xbf16>
    tpu.vector_store %arg7[%c0_52, %c0_53, %c0_54, %c12], %28 {strides = array<i32>} : memref<1x16x16x36xbf16, #tpu.memory_space<vmem>>, vector<1x16x16x4xbf16>,
    %c0_55 = arith.constant 0 : index
    %c1_56 = arith.constant 1 : index
    %c1_57 = arith.constant 1 : index
    %c0_58 = arith.constant 0 : index
    %30 = vector.load %arg6[%c0_55, %c1_56, %c1_57, %c0_58] : memref<1x18x18x4xf32, #tpu.memory_space<vmem>>, vector<1x16x16x4xf32>
    %31 = arith.truncf %30 : vector<1x16x16x4xf32> to vector<1x16x16x4xbf16>
    %c0_59 = arith.constant 0 : index
    %c0_60 = arith.constant 0 : index
    %c0_61 = arith.constant 0 : index
    %c16 = arith.constant 16 : index
    %32 = vector.load %arg7[%c0_59, %c0_60, %c0_61, %c16] : memref<1x16x16x36xbf16, #tpu.memory_space<vmem>>, vector<1x16x16x4xbf16>
    tpu.vector_store %arg7[%c0_59, %c0_60, %c0_61, %c16], %31 {strides = array<i32>} : memref<1x16x16x36xbf16, #tpu.memory_space<vmem>>, vector<1x16x16x4xbf16>,
    %c0_62 = arith.constant 0 : index
    %c1_63 = arith.constant 1 : index
    %c2_64 = arith.constant 2 : index
    %c0_65 = arith.constant 0 : index
    %33 = vector.load %arg6[%c0_62, %c1_63, %c2_64, %c0_65] : memref<1x18x18x4xf32, #tpu.memory_space<vmem>>, vector<1x16x16x4xf32>
    %34 = arith.truncf %33 : vector<1x16x16x4xf32> to vector<1x16x16x4xbf16>
    %c0_66 = arith.constant 0 : index
    %c0_67 = arith.constant 0 : index
    %c0_68 = arith.constant 0 : index
    %c20 = arith.constant 20 : index
    %35 = vector.load %arg7[%c0_66, %c0_67, %c0_68, %c20] : memref<1x16x16x36xbf16, #tpu.memory_space<vmem>>, vector<1x16x16x4xbf16>
    tpu.vector_store %arg7[%c0_66, %c0_67, %c0_68, %c20], %34 {strides = array<i32>} : memref<1x16x16x36xbf16, #tpu.memory_space<vmem>>, vector<1x16x16x4xbf16>,
    %c0_69 = arith.constant 0 : index
    %c2_70 = arith.constant 2 : index
    %c0_71 = arith.constant 0 : index
    %c0_72 = arith.constant 0 : index
    %36 = vector.load %arg6[%c0_69, %c2_70, %c0_71, %c0_72] : memref<1x18x18x4xf32, #tpu.memory_space<vmem>>, vector<1x16x16x4xf32>
    %37 = arith.truncf %36 : vector<1x16x16x4xf32> to vector<1x16x16x4xbf16>
    %c0_73 = arith.constant 0 : index
    %c0_74 = arith.constant 0 : index
    %c0_75 = arith.constant 0 : index
    %c24 = arith.constant 24 : index
    %38 = vector.load %arg7[%c0_73, %c0_74, %c0_75, %c24] : memref<1x16x16x36xbf16, #tpu.memory_space<vmem>>, vector<1x16x16x4xbf16>
    tpu.vector_store %arg7[%c0_73, %c0_74, %c0_75, %c24], %37 {strides = array<i32>} : memref<1x16x16x36xbf16, #tpu.memory_space<vmem>>, vector<1x16x16x4xbf16>,
    %c0_76 = arith.constant 0 : index
    %c2_77 = arith.constant 2 : index
    %c1_78 = arith.constant 1 : index
    %c0_79 = arith.constant 0 : index
    %39 = vector.load %arg6[%c0_76, %c2_77, %c1_78, %c0_79] : memref<1x18x18x4xf32, #tpu.memory_space<vmem>>, vector<1x16x16x4xf32>
    %40 = arith.truncf %39 : vector<1x16x16x4xf32> to vector<1x16x16x4xbf16>
    %c0_80 = arith.constant 0 : index
    %c0_81 = arith.constant 0 : index
    %c0_82 = arith.constant 0 : index
    %c28 = arith.constant 28 : index
    %41 = vector.load %arg7[%c0_80, %c0_81, %c0_82, %c28] : memref<1x16x16x36xbf16, #tpu.memory_space<vmem>>, vector<1x16x16x4xbf16>
    tpu.vector_store %arg7[%c0_80, %c0_81, %c0_82, %c28], %40 {strides = array<i32>} : memref<1x16x16x36xbf16, #tpu.memory_space<vmem>>, vector<1x16x16x4xbf16>,
    %c0_83 = arith.constant 0 : index
    %c2_84 = arith.constant 2 : index
    %c2_85 = arith.constant 2 : index
    %c0_86 = arith.constant 0 : index
    %42 = vector.load %arg6[%c0_83, %c2_84, %c2_85, %c0_86] : memref<1x18x18x4xf32, #tpu.memory_space<vmem>>, vector<1x16x16x4xf32>
    %43 = arith.truncf %42 : vector<1x16x16x4xf32> to vector<1x16x16x4xbf16>
    %c0_87 = arith.constant 0 : index
    %c0_88 = arith.constant 0 : index
    %c0_89 = arith.constant 0 : index
    %c32 = arith.constant 32 : index
    %44 = vector.load %arg7[%c0_87, %c0_88, %c0_89, %c32] : memref<1x16x16x36xbf16, #tpu.memory_space<vmem>>, vector<1x16x16x4xbf16>
    tpu.vector_store %arg7[%c0_87, %c0_88, %c0_89, %c32], %43 {strides = array<i32>} : memref<1x16x16x36xbf16, #tpu.memory_space<vmem>>, vector<1x16x16x4xbf16>,
    %c0_90 = arith.constant 0 : index
    %c0_91 = arith.constant 0 : index
    %c0_92 = arith.constant 0 : index
    %c0_93 = arith.constant 0 : index
    %45 = vector.load %arg7[%c0_90, %c0_91, %c0_92, %c0_93] : memref<1x16x16x36xbf16, #tpu.memory_space<vmem>>, vector<1x16x16x36xbf16>
    %46 = vector.shape_cast %45 : vector<1x16x16x36xbf16> to vector<256x36xbf16>
    %c0_94 = arith.constant 0 : index
    %c0_95 = arith.constant 0 : index
    %47 = vector.load %arg2[%c0_94, %c0_95] : memref<36x128xbf16, #tpu.memory_space<vmem>>, vector<36x128xbf16>
    %cst_96 = arith.constant dense<0.000000e+00> : vector<256x128xf32>
    %48 = tpu.matmul %46, %47, %cst_96 {dimension_numbers = #tpu.dot_dimension_numbers<[1], [0], [0], [1], [0, 0, 1, 1], [], []>} : vector<256x36xbf16>, vector<36x128xbf16>, vector<256x128xf32> -> vector<256x128xf32>
    %49 = vector.shape_cast %48 : vector<256x128xf32> to vector<1x256x128xf32>
    %50 = arith.truncf %49 : vector<1x256x128xf32> to vector<1x256x128xbf16>
    %c0_97 = arith.constant 0 : index
    %c0_98 = arith.constant 0 : index
    %c0_99 = arith.constant 0 : index
    %51 = vector.load %arg5[%c0_97, %c0_98, %c0_99] : memref<1x256x128xbf16, #tpu.memory_space<vmem>>, vector<1x256x128xbf16>
    tpu.vector_store %arg5[%c0_97, %c0_98, %c0_99], %50 {strides = array<i32>} : memref<1x256x128xbf16, #tpu.memory_space<vmem>>, vector<1x256x128xbf16>,
    return
  }
  func.func @transform_0(%arg0: i32) -> (i32, i32, i32, i32) {
    %c0_i32 = arith.constant 0 : i32
    %c0_i32_0 = arith.constant 0 : i32
    %c0_i32_1 = arith.constant 0 : i32
    %c0_i32_2 = arith.constant 0 : i32
    return %arg0, %c0_i32, %c0_i32_0, %c0_i32_1 : i32, i32, i32, i32
  }
  func.func @transform_1(%arg0: i32) -> (i32, i32) {
    %c0_i32 = arith.constant 0 : i32
    %c0_i32_0 = arith.constant 0 : i32
    %c0_i32_1 = arith.constant 0 : i32
    return %c0_i32, %c0_i32_0 : i32, i32
  }
  func.func @transform_2(%arg0: i32) -> (i32, i32) {
    %c0_i32 = arith.constant 0 : i32
    %c0_i32_0 = arith.constant 0 : i32
    %c0_i32_1 = arith.constant 0 : i32
    return %c0_i32, %c0_i32_0 : i32, i32
  }
  func.func @transform_3(%arg0: i32) -> (i32, i32) {
    %c0_i32 = arith.constant 0 : i32
    %c0_i32_0 = arith.constant 0 : i32
    %c0_i32_1 = arith.constant 0 : i32
    return %c0_i32, %c0_i32_0 : i32, i32
  }
  func.func @transform_4(%arg0: i32) -> (i32, i32, i32) {
    %c0_i32 = arith.constant 0 : i32
    %c0_i32_0 = arith.constant 0 : i32
    %c0_i32_1 = arith.constant 0 : i32
    return %arg0, %c0_i32, %c0_i32_0 : i32, i32, i32
  }
}

</mosaic_0001>

<bundles_post_ra>
// kernel: tpu_custom_call.1
= control target key start
LH: loop header
LB: loop body
LE: loop exit
PB: predicated region body
PF: predicated region fallthrough
CT: control target
= control target key end

     0   :  { %9 = vsyncpa [#allocation5], 0  ;;  %s4290_s0 = inlined_call_operand.vmem [shape: f32[2,16,16,4], index: 0, kind: input, shape index: {}]   ;;  %s4291_s1 = inlined_call_operand.vmem [shape: bf16[36,128], index: 1, kind: input, shape index: {}]   ;;  %s4292_s2 = inlined_call_operand.vmem [shape: f32[1,4], index: 2, kind: input, shape index: {}]   ;;  %s4293_s3 = inlined_call_operand.vmem [shape: f32[1,4], index: 3, kind: input, shape index: {}]   ;;  %s4294_s4 = inlined_call_operand.hbm [shape: bf16[2,256,128], index: 4, kind: output, shape index: {}]  }
   0x1   :  { %11 = vsyncpa [#allocation5 + $0x1], 0  ;;  %s3102_s15 = smov 0   ;;  %s3104_s16 = smov 0  }
   0x2   :  { %s3106_s17 = smov 0   ;;  %s3108_s18 = smov 0  }
   0x3 LB: > { %s3123_s19 = sadd.s32 4294967295, %s3065_s18   ;;  %s2726_s20 = sadd.s32 4294967294, %s3065_s18   ;;  %s3065_s18 = sphi %s3108_s18, %s4300_s18   ;;  %s3061_s17 = sphi %s3106_s17, %s4299_s17   ;;  %s3057_s16 = sphi %s3104_s16, %s4298_s16   ;;  %s3053_s15 = sphi %s3102_s15, %s4297_s15  }
   0x4   : > { %s3127_s21 = sadd.s32 1, %s3065_s18   ;;  %s113_s22 = sadd.s32 1, %s3061_s17 }
   0x5   : > { %s110_s23 = ssub.s32 %s3065_s18, %s3127_s21  ;;  %p123_p0 = scmp.ne.s32.totalorder %s3061_s17, %s3057_s16 }
   0x6   : > { %p111_p1 = scmp.eq.s32.totalorder %s110_s23, 0  ;;  %p124_p2 = scmp.eq.s32.totalorder %s3123_s19, 1 }
   0x7   : > { %p129_p3 = scmp.ne.s32.totalorder %s3057_s16, %s3053_s15  ;;  %p130_p4 = scmp.eq.s32.totalorder %s2726_s20, 1 }
   0x8   : > { %s3138_s24 = scalar_select %p111_p1, %s3061_s17, %s113_s22  }
   0x9   : > { %p3140_p5 = por %p124_p2, %p123_p0  ;;  %p3144_p6 = por %p130_p4, %p129_p3 }
   0xa   : > { %p2729_p7 = scmp.ge.s32.totalorder %s3065_s18, 1  ;;  %p165_p8 = scmp.lt.s32.totalorder %s3065_s18, 3 }
   0xc   : > { %p166_p9 = pnand %p2729_p7, %p165_p8 }
   0xd   : > { %s3068_s27 = smov (!%p166_p9), 4   ;;  %p191_p10 = scmp.lt.s32.totalorder (!%p166_p9), %s3123_s19, 1 }
   0xe   : > { %169 = sbr.rel (%p166_p9) target bundleno = 1007 (0x3ef), region = 36  ;;  %s3069_s11 = smov (!%p166_p9), 8  }
   0xf   : > { %s3070_s12 = smov (!%p166_p9), 12   ;;  %s3071_s23 = smov (!%p166_p9), 16  }
  0x10   : > { %s3074_s30 = smov (!%p166_p9), 28   ;;  %s3075_s5 = smov (!%p166_p9), 32  }
  0x11   : > { %s2845_s20 = sshll.u32 (!%p166_p9), %s3123_s19, 7  ;;  %s3023_s9 = scalar_lea.hbm (!%p166_p9), %s4294_s4, 256 }
  0x13   : > { %vm197_vm0 = vcmask 31744   ;;  %v3067_v0 = vmov 0.0   ;;  %vm206_vm1 = vcmask 24576   ;;  %s192_s28 = scalar_select %p191_p10, %s3123_s19, 1  ;;  %v3215_v3 = vld [vmem:[%s4292_s2] ss:$0 sm:$0xff] }
  0x14   : > { %198 = vst.msk [vmem:[#allocation2] sm:$0xff] %vm197_vm0, %v3067_v0  ;;  %v3232_v8 = vld [vmem:[%s4293_s3] ss:$0 sm:$0xff]  ;;  %vm200_vm2 = vcmask 25600   ;;  %vm476_vm3 = vcmask 27648   ;;  %vm701_vm4 = vcmask 60448  }
  0x15   : > { %199 = vst.msk [vmem:[#allocation2 + $0x8] sm:$0xff] %vm197_vm0, %v3067_v0  ;;  %s2826_s29 = sshll.u32 %s192_s28, 8  ;;  %vm926_vm5 = vcmask 93248   ;;  %vm1151_vm6 = vcmask 126048   ;;  %s3072_s28 = smov 20   ;;  %vm1376_vm7 = vcmask 158848  }
  0x16   : > { %207 = vst.msk [vmem:[#allocation2] sm:$0x1] %vm206_vm1, %v3067_v0  ;;  %s3206_s6 = scalar_lea.vmem %s4290_s0, %s2826_s29  ;;  %s3073_s29 = smov 24   ;;  %vm1601_vm8 = vcmask 191648   ;;  %vm1827_vm9 = vcmask 224448   ;;  %vm2491_vm10 = vcmask 1041408  }
  0x17   : > { %203 = vst.msk [vmem:[#allocation2 + $0x198] sm:$0xff] %vm197_vm0, %v3067_v0  ;;  %v245_v4 = vld [vmem:[%s3206_s6] sm:$0xff]  ;;  %v246_v6 = vld [vmem:[%s3206_s6 + $0x8] sm:$0xff]  ;;  %v252_v9 = vld [vmem:[%s3206_s6 + $0x38] sm:$0xff]  ;;  %vm2052_vm11 = vcmask 257248   ;;  %vm2277_vm12 = vcmask 290048  }
  0x18   : > { %204 = vst.msk [vmem:[#allocation2 + $0x1a0] sm:$0xff] %vm197_vm0, %v3067_v0  ;;  %v249_v5 = vld [vmem:[%s3206_s6 + $0x20] sm:$0xff]  ;;  %v280_v7 = vmul.f32 %v3215_v3, %v245_v4  ;;  %v250_v11 = vld [vmem:[%s3206_s6 + $0x28] sm:$0xff]  ;;  %v281_v12 = vmul.f32 %v3215_v3, %v246_v6  ;;  %v255_v13 = vld [vmem:[%s3206_s6 + $0x50] sm:$0xff]  ;;  %v287_v14 = vmul.f32 %v3215_v3, %v252_v9  ;;  %vm2442_vm13 = vcmask 293888  }
  0x19   : > { %208 = vst.msk [vmem:[#allocation2 + $0x18] sm:$0x1] %vm206_vm1, %v3067_v0  ;;  %v284_v10 = vmul.f32 %v3215_v3, %v249_v5  ;;  %v247_v15 = vld [vmem:[%s3206_s6 + $0x10] sm:$0xff]  ;;  %v285_v17 = vmul.f32 %v3215_v3, %v250_v11  ;;  %v253_v18 = vld [vmem:[%s3206_s6 + $0x40] sm:$0xff]  ;;  %v290_v20 = vmul.f32 %v3215_v3, %v255_v13  ;;  %v258_v21 = vld [vmem:[%s3206_s6 + $0x68] sm:$0xff] }
  0x1a   : > { %209 = vst.msk [vmem:[#allocation2 + $0x30] sm:$0x1] %vm206_vm1, %v3067_v0  ;;  %v315_v16 = vadd.f32 %v3232_v8, %v280_v7  ;;  %v316_v22 = vadd.f32 %v3232_v8, %v281_v12  ;;  %v282_v23 = vmul.f32 %v3215_v3, %v247_v15  ;;  %v248_v24 = vld [vmem:[%s3206_s6 + $0x18] sm:$0xff]  ;;  %v322_v25 = vadd.f32 %v3232_v8, %v287_v14  ;;  %v261_v34 = vld [vmem:[%s3206_s6 + $0x80] sm:$0xff]  ;;  %v251_v35 = vld [vmem:[%s3206_s6 + $0x30] sm:$0xff] }
  0x1b   : > { %210 = vst.msk [vmem:[#allocation2 + $0x48] sm:$0x1] %vm206_vm1, %v3067_v0  ;;  %v319_v19 = vadd.f32 %v3232_v8, %v284_v10  ;;  %v288_v26 = vmul.f32 %v3215_v3, %v253_v18  ;;  %v256_v27 = vld [vmem:[%s3206_s6 + $0x58] sm:$0xff]  ;;  %v320_v29 = vadd.f32 %v3232_v8, %v285_v17  ;;  %v293_v30 = vmul.f32 %v3215_v3, %v258_v21  ;;  %v259_v47 = vld [vmem:[%s3206_s6 + $0x70] sm:$0xff]  ;;  %v254_v60 = vld [vmem:[%s3206_s6 + $0x48] sm:$0xff] }
  0x1c   : > { %v509_v1 = vld [vmem:[#allocation2 + $0x1] sm:$0xff]  ;;  %211 = vst.msk [vmem:[#allocation2 + $0x60] sm:$0x1] %vm206_vm1, %v3067_v0  ;;  %v347_v28 = vmax.f32 %v315_v16, 0.0  ;;  %v325_v32 = vadd.f32 %v3232_v8, %v290_v20  ;;  %v283_v33 = vmul.f32 %v3215_v3, %v248_v24  ;;  %v348_v36 = vmax.f32 %v316_v22, 0.0  ;;  %v264_v59 = vld [vmem:[%s3206_s6 + $0x98] sm:$0xff] }
  0x1d   : > { %v541_v2 = vpack.c.bf16 %v509_v1, %v509_v1  ;;  %212 = vst.msk [vmem:[#allocation2 + $0x78] sm:$0x1] %vm206_vm1, %v3067_v0  ;;  %v351_v31 = vmax.f32 %v319_v19, 0.0  ;;  %v317_v37 = vadd.f32 %v3232_v8, %v282_v23  ;;  %v291_v38 = vmul.f32 %v3215_v3, %v256_v27  ;;  %v262_v11 = vld [vmem:[%s3206_s6 + $0x88] sm:$0xff]  ;;  %v267_v19 = vld [vmem:[%s3206_s6 + $0xb0] sm:$0xff]  ;;  %v257_v20 = vld [vmem:[%s3206_s6 + $0x60] sm:$0xff] }
  0x1e   : > { %213 = vst.msk [vmem:[#allocation2 + $0x90] sm:$0x1] %vm206_vm1, %v3067_v0  ;;  %v354_v39 = vmax.f32 %v322_v25, 0.0  ;;  %v323_v40 = vadd.f32 %v3232_v8, %v288_v26  ;;  %v296_v41 = vmul.f32 %v3215_v3, %v261_v34  ;;  %v352_v42 = vmax.f32 %v320_v29, 0.0 }
  0x1f   : > { %605 = vrot.lane.b32.xlu0 %v541_v2, %s3068_s27  ;;  %214 = vst.msk [vmem:[#allocation2 + $0xa8] sm:$0x1] %vm206_vm1, %v3067_v0  ;;  %v328_v43 = vadd.f32 %v3232_v8, %v293_v30  ;;  %v286_v44 = vmul.f32 %v3215_v3, %v251_v35  ;;  %v357_v45 = vmax.f32 %v325_v32, 0.0  ;;  %v318_v46 = vadd.f32 %v3232_v8, %v283_v33  ;;  %v265_v30 = vld [vmem:[%s3206_s6 + $0xa0] sm:$0xff] }
  0x20   : > { %215 = vst.msk [vmem:[#allocation2 + $0xc0] sm:$0x1] %vm206_vm1, %v3067_v0  ;;  %v349_v49 = vmax.f32 %v317_v37, 0.0  ;;  %v326_v50 = vadd.f32 %v3232_v8, %v291_v38  ;;  %v294_v51 = vmul.f32 %v3215_v3, %v259_v47  ;;  %v355_v53 = vmax.f32 %v323_v40, 0.0  ;;  %v270_v37 = vld [vmem:[%s3206_s6 + $0xc8] sm:$0xff]  ;;  %v260_v38 = vld [vmem:[%s3206_s6 + $0x78] sm:$0xff] }
  0x21   : > { %216 = vst.msk [vmem:[#allocation2 + $0xd8] sm:$0x1] %vm206_vm1, %v3067_v0  ;;  %v331_v54 = vadd.f32 %v3232_v8, %v296_v41  ;;  %v360_v55 = vmax.f32 %v328_v43, 0.0  ;;  %v321_v56 = vadd.f32 %v3232_v8, %v286_v44  ;;  %v350_v57 = vmax.f32 %v318_v46, 0.0 }
  0x22   : > { %217 = vst.msk [vmem:[#allocation2 + $0xf0] sm:$0x1] %vm206_vm1, %v3067_v0  ;;  %v329_v58 = vadd.f32 %v3232_v8, %v294_v51  ;;  %v358_v61 = vmax.f32 %v326_v50, 0.0  ;;  %v299_v62 = vmul.f32 %v3215_v3, %v264_v59  ;;  %v289_v63 = vmul.f32 %v3215_v3, %v254_v60 }
  0x23   : > { %218 = vst.msk [vmem:[#allocation2 + $0x108] sm:$0x1] %vm206_vm1, %v3067_v0  ;;  %v363_v1 = vmax.f32 %v331_v54, 0.0  ;;  %v353_v5 = vmax.f32 %v321_v56, 0.0  ;;  %v297_v14 = vmul.f32 %v3215_v3, %v262_v11  ;;  %v302_v24 = vmul.f32 %v3215_v3, %v267_v19  ;;  %v263_v56 = vld [vmem:[%s3206_s6 + $0x90] sm:$0xff]  ;;  %v266_v11 = vld [vmem:[%s3206_s6 + $0xa8] sm:$0xff] }
  0x24   : > { %219 = vst.msk [vmem:[#allocation2 + $0x120] sm:$0x1] %vm206_vm1, %v3067_v0  ;;  %v334_v6 = vadd.f32 %v3232_v8, %v299_v62  ;;  %v324_v7 = vadd.f32 %v3232_v8, %v289_v63  ;;  %v361_v10 = vmax.f32 %v329_v58, 0.0  ;;  %v292_v25 = vmul.f32 %v3215_v3, %v257_v20  ;;  %v274_v19 = vld [vmem:[%s3206_s6 + $0xe8] sm:$0xff] }
  0x25   : > { %220 = vst.msk [vmem:[#allocation2 + $0x138] sm:$0x1] %vm206_vm1, %v3067_v0  ;;  %v332_v16 = vadd.f32 %v3232_v8, %v297_v14  ;;  %v337_v26 = vadd.f32 %v3232_v8, %v302_v24  ;;  %v300_v33 = vmul.f32 %v3215_v3, %v265_v30  ;;  %v295_v43 = vmul.f32 %v3215_v3, %v260_v38 }
  0x26   : > { %221 = vst.msk [vmem:[#allocation2 + $0x150] sm:$0x1] %vm206_vm1, %v3067_v0  ;;  %v366_v13 = vmax.f32 %v334_v6, 0.0  ;;  %v356_v15 = vmax.f32 %v324_v7, 0.0  ;;  %v327_v27 = vadd.f32 %v3232_v8, %v292_v25  ;;  %v269_v25 = vld [vmem:[%s3206_s6 + $0xc0] sm:$0xff] }
  0x27   : > { %222 = vst.msk [vmem:[#allocation2 + $0x168] sm:$0x1] %vm206_vm1, %v3067_v0  ;;  %v364_v23 = vmax.f32 %v332_v16, 0.0 }
  0x28   : > { %223 = vst.msk [vmem:[#allocation2 + $0x180] sm:$0x1] %vm206_vm1, %v3067_v0  ;;  %v359_v32 = vmax.f32 %v327_v27, 0.0 }
  0x29   : > { %226 = vst.msk [vmem:[#allocation2 + $0x29] sm:$0x1] %vm206_vm1, %v3067_v0 }
  0x2a   : > { %227 = vst.msk [vmem:[#allocation2 + $0x41] sm:$0x1] %vm206_vm1, %v3067_v0 }
  0x2b   : > { %228 = vst.msk [vmem:[#allocation2 + $0x59] sm:$0x1] %vm206_vm1, %v3067_v0 }
  0x2c   : > { %229 = vst.msk [vmem:[#allocation2 + $0x71] sm:$0x1] %vm206_vm1, %v3067_v0 }
  0x2d   : > { %230 = vst.msk [vmem:[#allocation2 + $0x89] sm:$0x1] %vm206_vm1, %v3067_v0 }
  0x2e   : > { %231 = vst.msk [vmem:[#allocation2 + $0xa1] sm:$0x1] %vm206_vm1, %v3067_v0 }
  0x2f   : > { %232 = vst.msk [vmem:[#allocation2 + $0xb9] sm:$0x1] %vm206_vm1, %v3067_v0 }
  0x30   : > { %233 = vst.msk [vmem:[#allocation2 + $0xd1] sm:$0x1] %vm206_vm1, %v3067_v0 }
  0x31   : > { %234 = vst.msk [vmem:[#allocation2 + $0xe9] sm:$0x1] %vm206_vm1, %v3067_v0 }
  0x32   : > { %235 = vst.msk [vmem:[#allocation2 + $0x101] sm:$0x1] %vm206_vm1, %v3067_v0 }
  0x33   : > { %236 = vst.msk [vmem:[#allocation2 + $0x119] sm:$0x1] %vm206_vm1, %v3067_v0 }
  0x34   : > { %237 = vst.msk [vmem:[#allocation2 + $0x131] sm:$0x1] %vm206_vm1, %v3067_v0 }
  0x35   : > { %238 = vst.msk [vmem:[#allocation2 + $0x149] sm:$0x1] %vm206_vm1, %v3067_v0 }
  0x36   : > { %239 = vst.msk [vmem:[#allocation2 + $0x161] sm:$0x1] %vm206_vm1, %v3067_v0 }
  0x37   : > { %240 = vst.msk [vmem:[#allocation2 + $0x179] sm:$0x1] %vm206_vm1, %v3067_v0 }
  0x38   : > { %241 = vst.msk [vmem:[#allocation2 + $0x191] sm:$0x1] %vm206_vm1, %v3067_v0 }
  0x39   : > { %201 = vst.msk [vmem:[#allocation2 + $0x10] sm:$0x3] %vm200_vm2, %v3067_v0 }
  0x3a   : > { %205 = vst.msk [vmem:[#allocation2 + $0x1a8] sm:$0x3] %vm200_vm2, %v3067_v0 }
  0x3b   : > { %224 = vst.msk [vmem:[#allocation2 + $0x198] sm:$0x1] %vm206_vm1, %v3067_v0 }
  0x3c   : > { %225 = vst.msk [vmem:[#allocation2 + $0x11] sm:$0x1] %vm206_vm1, %v3067_v0 }
  0x3d   : > { %242 = vst.msk [vmem:[#allocation2 + $0x1a9] sm:$0x1] %vm206_vm1, %v3067_v0 }
  0x3e   : > { %380 = vst.msk [vmem:[#allocation2 + $0x19] sm:$0xff] %vm197_vm0, %v347_v28 }
  0x3f   : > { %384 = vst.msk [vmem:[#allocation2 + $0x49] sm:$0xff] %vm197_vm0, %v351_v31  ;;  %v369_v31 = vmax.f32 %v337_v26, 0.0 }
  0x40   : > { %v510_v48 = vld [vmem:[#allocation2 + $0x9] sm:$0xff]  ;;  %381 = vst.msk [vmem:[#allocation2 + $0x21] sm:$0xff] %vm197_vm0, %v348_v36  ;;  %v335_v36 = vadd.f32 %v3232_v8, %v300_v33 }
  0x41   : > { %v542_v52 = vpack.c.bf16 %v510_v48, %v510_v48  ;;  %387 = vst.msk [vmem:[#allocation2 + $0x69] sm:$0xff] %vm197_vm0, %v354_v39  ;;  %v268_v48 = vld [vmem:[%s3206_s6 + $0xb8] sm:$0xff] }
  0x42   : > { %385 = vst.msk [vmem:[#allocation2 + $0x51] sm:$0xff] %vm197_vm0, %v352_v42  ;;  %v367_v41 = vmax.f32 %v335_v36, 0.0  ;;  %v305_v42 = vmul.f32 %v3215_v3, %v270_v37  ;;  %v303_v51 = vmul.f32 %v3215_v3, %v268_v48  ;;  %v272_v36 = vld [vmem:[%s3206_s6 + $0xd8] sm:$0xff] }
  0x43   : > { %607 = vrot.lane.b32.xlu0 %v542_v52, %s3068_s27  ;;  %390 = vst.msk [vmem:[#allocation2 + $0x91] sm:$0xff] %vm197_vm0, %v357_v45  ;;  %v330_v45 = vadd.f32 %v3232_v8, %v295_v43 }
  0x44   : > { %382 = vst.msk [vmem:[#allocation2 + $0x31] sm:$0xff] %vm197_vm0, %v349_v49  ;;  %v340_v44 = vadd.f32 %v3232_v8, %v305_v42  ;;  %v338_v54 = vadd.f32 %v3232_v8, %v303_v51 }
  0x45   : > { %v511_v0 = vld [vmem:[#allocation2 + $0x19] sm:$0xff]  ;;  %388 = vst.msk [vmem:[#allocation2 + $0x79] sm:$0xff] %vm197_vm0, %v355_v53  ;;  %v362_v50 = vmax.f32 %v330_v45, 0.0 }
  0x46   : > { %v543_v2 = vpack.c.bf16 %v511_v0, %v511_v0  ;;  %v515_v4 = vld [vmem:[#allocation2 + $0x49] sm:$0xff]  ;;  %393 = vst.msk [vmem:[#allocation2 + $0xb1] sm:$0xff] %vm197_vm0, %v360_v55  ;;  %v372_v49 = vmax.f32 %v340_v44, 0.0  ;;  %v273_v55 = vld [vmem:[%s3206_s6 + $0xe0] sm:$0xff]  ;;  %v370_v59 = vmax.f32 %v338_v54, 0.0 }
  0x47   : > { %v547_v9 = vpack.c.bf16 %v515_v4, %v515_v4  ;;  %383 = vst.msk [vmem:[#allocation2 + $0x39] sm:$0xff] %vm197_vm0, %v350_v57  ;;  %v512_v12 = vld [vmem:[#allocation2 + $0x21] sm:$0xff]  ;;  %v308_v60 = vmul.f32 %v3215_v3, %v273_v55 }
  0x48   : > { %609 = vrot.lane.b32.xlu1 %v543_v2, %s3068_s27  ;;  %391 = vst.msk [vmem:[#allocation2 + $0x99] sm:$0xff] %vm197_vm0, %v358_v61  ;;  %v544_v17 = vpack.c.bf16 %v512_v12, %v512_v12  ;;  %v518_v21 = vld [vmem:[#allocation2 + $0x69] sm:$0xff]  ;;  %v298_v61 = vmul.f32 %v3215_v3, %v263_v56  ;;  %v412_v56 = vld [vmem:[#allocation2] sm:$0xff] }
  0x49   : > { %396 = vst.msk [vmem:[#allocation2 + $0xd9] sm:$0xff] %vm197_vm0, %v363_v1  ;;  %v550_v28 = vpack.c.bf16 %v518_v21, %v518_v21  ;;  %v516_v34 = vld [vmem:[#allocation2 + $0x51] sm:$0xff]  ;;  %v343_v62 = vadd.f32 %v3232_v8, %v308_v60  ;;  %v309_v21 = vmul.f32 %v3215_v3, %v274_v19 }
  0x4a   : > { %386 = vst.msk [vmem:[#allocation2 + $0x61] sm:$0xff] %vm197_vm0, %v353_v5  ;;  %v548_v39 = vpack.c.bf16 %v516_v34, %v516_v34  ;;  %v521_v40 = vld [vmem:[#allocation2 + $0x91] sm:$0xff]  ;;  %v333_v63 = vadd.f32 %v3232_v8, %v298_v61 }
  0x4b   : > { %617 = vrot.lane.b32.xlu0 %v547_v9, %s3068_s27  ;;  %v513_v18 = vld [vmem:[#allocation2 + $0x31] sm:$0xff]  ;;  %394 = vst.msk [vmem:[#allocation2 + $0xc1] sm:$0xff] %vm197_vm0, %v361_v10  ;;  %v553_v46 = vpack.c.bf16 %v521_v40, %v521_v40  ;;  %v375_v4 = vmax.f32 %v343_v62, 0.0  ;;  %v344_v24 = vadd.f32 %v3232_v8, %v309_v21  ;;  %v737_v21 = vld [vmem:[#allocation2 + $0x22] sm:$0xff] }
  0x4c   : > { %v545_v22 = vpack.c.bf16 %v513_v18, %v513_v18  ;;  %399 = vst.msk [vmem:[#allocation2 + $0xf9] sm:$0xff] %vm197_vm0, %v366_v13  ;;  %v519_v52 = vld [vmem:[#allocation2 + $0x79] sm:$0xff]  ;;  %v271_v2 = vld [vmem:[%s3206_s6 + $0xd0] sm:$0xff]  ;;  %v365_v5 = vmax.f32 %v333_v63, 0.0 }
  0x4d   : > { %389 = vst.msk [vmem:[#allocation2 + $0x81] sm:$0xff] %vm197_vm0, %v356_v15  ;;  %v551_v57 = vpack.c.bf16 %v519_v52, %v519_v52  ;;  %v524_v58 = vld [vmem:[#allocation2 + $0xb1] sm:$0xff]  ;;  %v306_v6 = vmul.f32 %v3215_v3, %v271_v2  ;;  %v301_v15 = vmul.f32 %v3215_v3, %v266_v11 }
  0x4e   : > { %613 = vrot.lane.b32.xlu2 %v545_v22, %s3068_s27  ;;  %397 = vst.msk [vmem:[#allocation2 + $0xe1] sm:$0xff] %vm197_vm0, %v364_v23  ;;  %v514_v29 = vld [vmem:[#allocation2 + $0x39] sm:$0xff]  ;;  %v556_v0 = vpack.c.bf16 %v524_v58, %v524_v58  ;;  %v735_v58 = vld [vmem:[#allocation2 + $0xa] sm:$0xff] }
  0x4f   : > { %v546_v35 = vpack.c.bf16 %v514_v29, %v514_v29  ;;  %402 = vst.msk [vmem:[#allocation2 + $0x121] sm:$0xff] %vm197_vm0, %v369_v31  ;;  %v522_v7 = vld [vmem:[#allocation2 + $0x99] sm:$0xff]  ;;  %v341_v10 = vadd.f32 %v3232_v8, %v306_v6  ;;  %v336_v16 = vadd.f32 %v3232_v8, %v301_v15  ;;  %v304_v29 = vmul.f32 %v3215_v3, %v269_v25  ;;  %v416_v6 = vld [vmem:[#allocation2 + $0x30] sm:$0xff] }
  0x50   : > { %611 = vrot.lane.b32.xlu1 %v544_v17, %s3068_s27  ;;  %392 = vst.msk [vmem:[#allocation2 + $0xa9] sm:$0xff] %vm197_vm0, %v359_v32  ;;  %v554_v12 = vpack.c.bf16 %v522_v7, %v522_v7  ;;  %v527_v13 = vld [vmem:[#allocation2 + $0xd9] sm:$0xff]  ;;  %v767_v60 = vpack.c.bf16 %v735_v58, %v735_v58 }
  0x51   : > { %400 = vst.msk [vmem:[#allocation2 + $0x109] sm:$0xff] %vm197_vm0, %v367_v41  ;;  %v517_v47 = vld [vmem:[#allocation2 + $0x61] sm:$0xff]  ;;  %v373_v14 = vmax.f32 %v341_v10, 0.0  ;;  %v559_v17 = vpack.c.bf16 %v527_v13, %v527_v13  ;;  %v368_v20 = vmax.f32 %v336_v16, 0.0  ;;  %v339_v30 = vadd.f32 %v3232_v8, %v304_v29  ;;  %v414_v11 = vld [vmem:[#allocation2 + $0x18] sm:$0xff] }
  0x52   : > { %v549_v53 = vpack.c.bf16 %v517_v47, %v517_v47  ;;  %405 = vst.msk [vmem:[#allocation2 + $0x141] sm:$0xff] %vm197_vm0, %v372_v49  ;;  %v525_v22 = vld [vmem:[#allocation2 + $0xc1] sm:$0xff]  ;;  %v3406_v10 = vpack.c.bf16 %v416_v6, %v416_v6  ;;  %v741_v16 = vld [vmem:[#allocation2 + $0x52] sm:$0xff] }
  0x53   : > { %623 = vrot.lane.b32.xlu0 %v550_v28, %s3068_s27  ;;  %395 = vst.msk [vmem:[#allocation2 + $0xc9] sm:$0xff] %vm197_vm0, %v362_v50  ;;  %v557_v26 = vpack.c.bf16 %v525_v22, %v525_v22  ;;  %v530_v27 = vld [vmem:[#allocation2 + $0xf9] sm:$0xff]  ;;  %v376_v28 = vmax.f32 %v344_v24, 0.0  ;;  %v371_v33 = vmax.f32 %v339_v30, 0.0 }
  0x54   : > { %403 = vst.msk [vmem:[#allocation2 + $0x129] sm:$0xff] %vm197_vm0, %v370_v59  ;;  %v520_v1 = vld [vmem:[#allocation2 + $0x81] sm:$0xff]  ;;  %v562_v31 = vpack.c.bf16 %v530_v27, %v530_v27  ;;  %v444_v59 = vpack.c.bf16 %v412_v56, %v412_v56  ;;  %v417_v19 = vld [vmem:[#allocation2 + $0x38] sm:$0xff] }
  0x55   : > { %v552_v9 = vpack.c.bf16 %v520_v1, %v520_v1  ;;  %408 = vst.msk [vmem:[#allocation2 + $0x169] sm:$0xff] %vm197_vm0, %v375_v4  ;;  %v528_v34 = vld [vmem:[#allocation2 + $0xe1] sm:$0xff]  ;;  %v738_v4 = vld [vmem:[#allocation2 + $0x32] sm:$0xff]  ;;  %v3419_v22 = vpack.c.bf16 %v417_v19, %v417_v19 }
  0x56   : > { %615 = vrot.lane.b32.xlu2 %v546_v35, %s3068_s27  ;;  %398 = vst.msk [vmem:[#allocation2 + $0xf1] sm:$0xff] %vm197_vm0, %v365_v5  ;;  %v560_v37 = vpack.c.bf16 %v528_v34, %v528_v34  ;;  %v533_v38 = vld [vmem:[#allocation2 + $0x121] sm:$0xff]  ;;  %v770_v7 = vpack.c.bf16 %v738_v4, %v738_v4  ;;  %v746_v58 = vld [vmem:[#allocation2 + $0x92] sm:$0xff] }
  0x57   : > { %406 = vst.msk [vmem:[#allocation2 + $0x151] sm:$0xff] %vm197_vm0, %v373_v14  ;;  %v523_v18 = vld [vmem:[#allocation2 + $0xa9] sm:$0xff]  ;;  %v565_v41 = vpack.c.bf16 %v533_v38, %v533_v38  ;;  %v736_v13 = vld [vmem:[#allocation2 + $0x1a] sm:$0xff] }
  0x58   : > { %619 = vrot.lane.b32.xlu1 %v548_v39, %s3068_s27  ;;  %v555_v23 = vpack.c.bf16 %v523_v18, %v523_v18  ;;  %401 = vst.msk [vmem:[#allocation2 + $0x111] sm:$0xff] %vm197_vm0, %v368_v20  ;;  %v307_v39 = vmul.f32 %v3215_v3, %v272_v36  ;;  %v531_v44 = vld [vmem:[#allocation2 + $0x109] sm:$0xff]  ;;  %v768_v15 = vpack.c.bf16 %v736_v13, %v736_v13  ;;  %v739_v25 = vld [vmem:[#allocation2 + $0x3a] sm:$0xff]  ;;  %v749_v13 = vld [vmem:[#allocation2 + $0xb2] sm:$0xff] }
  0x59   : > { %409 = vst.msk [vmem:[#allocation2 + $0x171] sm:$0xff] %vm197_vm0, %v376_v28  ;;  %v536_v47 = vld [vmem:[#allocation2 + $0x141] sm:$0xff]  ;;  %v773_v20 = vpack.c.bf16 %v741_v16, %v741_v16  ;;  %v771_v28 = vpack.c.bf16 %v739_v25, %v739_v25 }
  0x5a   : > { %v526_v32 = vld [vmem:[#allocation2 + $0xc9] sm:$0xff]  ;;  %404 = vst.msk [vmem:[#allocation2 + $0x139] sm:$0xff] %vm197_vm0, %v371_v33  ;;  %v342_v40 = vadd.f32 %v3232_v8, %v307_v39  ;;  %v568_v3 = vpack.c.bf16 %v536_v47, %v536_v47  ;;  %v744_v29 = vld [vmem:[#allocation2 + $0x7a] sm:$0xff] }
  0x5b   : > { %629 = vrot.lane.b32.xlu0 %v553_v46, %s3068_s27  ;;  %v558_v35 = vpack.c.bf16 %v526_v32, %v526_v32  ;;  %v563_v46 = vpack.c.bf16 %v531_v44, %v531_v44  ;;  %v534_v8 = vld [vmem:[#allocation2 + $0x129] sm:$0xff]  ;;  %477 = vst.msk [vmem:[#allocation3] sm:$0xf] %vm476_vm3, %v444_v59  ;;  %v776_v32 = vpack.c.bf16 %v744_v29, %v744_v29  ;;  %v423_v44 = vld [vmem:[#allocation2 + $0x80] sm:$0xff] }
  0x5c   : > { %v374_v43 = vmax.f32 %v342_v40, 0.0  ;;  %v566_v50 = vpack.c.bf16 %v534_v8, %v534_v8  ;;  %v539_v51 = vld [vmem:[#allocation2 + $0x169] sm:$0xff]  ;;  %481 = vst.msk [vmem:[#allocation3 + $0x10] sm:$0xf] %vm476_vm3, %v3406_v10  ;;  %v3452_v47 = vpack.c.bf16 %v423_v44, %v423_v44 }
  0x5d   : > { %v529_v42 = vld [vmem:[#allocation2 + $0xf1] sm:$0xff]  ;;  %v571_v52 = vpack.c.bf16 %v539_v51, %v539_v51  ;;  %v413_v1 = vld [vmem:[#allocation2 + $0x8] sm:$0xff]  ;;  %482 = vst.msk [vmem:[#allocation3 + $0x14] sm:$0xf] %vm476_vm3, %v3419_v22 }
  0x5e   : > { %621 = vrot.lane.b32.xlu2 %v549_v53, %s3068_s27  ;;  %v561_v45 = vpack.c.bf16 %v529_v42, %v529_v42  ;;  %407 = vst.msk [vmem:[#allocation2 + $0x159] sm:$0xff] %vm197_vm0, %v374_v43  ;;  %v537_v54 = vld [vmem:[#allocation2 + $0x151] sm:$0xff]  ;;  %v445_v5 = vpack.c.bf16 %v413_v1, %v413_v1  ;;  %v421_v27 = vld [vmem:[#allocation2 + $0x68] sm:$0xff]  ;;  %v747_v42 = vld [vmem:[#allocation2 + $0x9a] sm:$0xff]  ;;  %v3478_v1 = vpack.c.bf16 %v746_v58, %v746_v58 }
  0x5f   : > { %v532_v48 = vld [vmem:[#allocation2 + $0x111] sm:$0xff]  ;;  %v3431_v30 = vpack.c.bf16 %v421_v27, %v421_v27  ;;  %v742_v38 = vld [vmem:[#allocation2 + $0x62] sm:$0xff]  ;;  %488 = vst.msk [vmem:[#allocation3 + $0x2c] sm:$0xf] %vm476_vm3, %v3452_v47 }
  0x60   : > { %625 = vrot.lane.b32.xlu1 %v551_v57, %s3068_s27  ;;  %v564_v49 = vpack.c.bf16 %v532_v48, %v532_v48  ;;  %v569_v57 = vpack.c.bf16 %v537_v54, %v537_v54  ;;  %v540_v62 = vld [vmem:[#allocation2 + $0x171] sm:$0xff]  ;;  %478 = vst.msk [vmem:[#allocation3 + $0x4] sm:$0xf] %vm476_vm3, %v445_v5  ;;  %v426_v56 = vld [vmem:[#allocation2 + $0xa8] sm:$0xff] }
  0x61   : > { %v535_v53 = vld [vmem:[#allocation2 + $0x139] sm:$0xff]  ;;  %v572_v2 = vpack.c.bf16 %v540_v62, %v540_v62  ;;  %486 = vst.msk [vmem:[#allocation3 + $0x24] sm:$0xf] %vm476_vm3, %v3431_v30  ;;  %v740_v33 = vld [vmem:[#allocation2 + $0x4a] sm:$0xff]  ;;  %v3472_v59 = vpack.c.bf16 %v426_v56, %v426_v56  ;;  %v753_v5 = vld [vmem:[#allocation2 + $0xe2] sm:$0xff] }
  0x62   : > { %v567_v55 = vpack.c.bf16 %v535_v53, %v535_v53  ;;  %v772_v39 = vpack.c.bf16 %v740_v33, %v740_v33  ;;  %v424_v40 = vld [vmem:[#allocation2 + $0x90] sm:$0xff]  ;;  %v750_v53 = vld [vmem:[#allocation2 + $0xc2] sm:$0xff] }
  0x63   : > { %635 = vrot.lane.b32.xlu0 %v556_v0, %s3068_s27  ;;  %v3447_v43 = vpack.c.bf16 %v424_v40, %v424_v40  ;;  %v427_v51 = vld [vmem:[#allocation2 + $0xb0] sm:$0xff]  ;;  %491 = vst.msk [vmem:[#allocation3 + $0x38] sm:$0xf] %vm476_vm3, %v3472_v59 }
  0x64   : > { %v3465_v54 = vpack.c.bf16 %v427_v51, %v427_v51  ;;  %v751_v19 = vld [vmem:[#allocation2 + $0xca] sm:$0xff]  ;;  %v755_v51 = vld [vmem:[#allocation2 + $0xfa] sm:$0xff] }
  0x65   : > { %v538_v61 = vld [vmem:[#allocation2 + $0x159] sm:$0xff]  ;;  %489 = vst.msk [vmem:[#allocation3 + $0x30] sm:$0xf] %vm476_vm3, %v3447_v43  ;;  %v783_v25 = vpack.c.bf16 %v751_v19, %v751_v19  ;;  %v432_v29 = vld [vmem:[#allocation2 + $0xf0] sm:$0xff] }
  0x66   : > { %627 = vrot.lane.b32.xlu2 %v552_v9, %s3068_s27  ;;  %v570_v0 = vpack.c.bf16 %v538_v61, %v538_v61  ;;  %v734_v9 = vld [vmem:[#allocation2 + $0x2] sm:$0xff]  ;;  %492 = vst.msk [vmem:[#allocation3 + $0x3c] sm:$0xf] %vm476_vm3, %v3465_v54  ;;  %v3514_v33 = vpack.c.bf16 %v432_v29, %v432_v29  ;;  %v760_v19 = vld [vmem:[#allocation2 + $0x13a] sm:$0xff] }
  0x67   : > { %v766_v14 = vpack.c.bf16 %v734_v9, %v734_v9  ;;  %v429_v9 = vld [vmem:[#allocation2 + $0xc8] sm:$0xff] }
  0x68   : > { %631 = vrot.lane.b32.xlu1 %v554_v12, %s3068_s27  ;;  %v3409_v12 = vpack.c.bf16 %v414_v11, %v414_v11  ;;  %v785_v11 = vpack.c.bf16 %v753_v5, %v753_v5  ;;  %497 = vst.msk [vmem:[#allocation3 + $0x50] sm:$0xf] %vm476_vm3, %v3514_v33  ;;  %v438_v5 = vld [vmem:[#allocation2 + $0x138] sm:$0xff] }
  0x6a   : > { %479 = vst.msk [vmem:[#allocation3 + $0x8] sm:$0xf] %vm476_vm3, %v3409_v12 }
  0x6b   : > { %641 = vrot.lane.b32.xlu0 %v559_v17, %s3068_s27  ;;  %v418_v17 = vld [vmem:[#allocation2 + $0x48] sm:$0xff] }
  0x6c   : > { %v3417_v18 = vpack.c.bf16 %v418_v17, %v418_v17 }
  0x6e   : > { %633 = vrot.lane.b32.xlu2 %v555_v23, %s3068_s27  ;;  %v415_v23 = vld [vmem:[#allocation2 + $0x20] sm:$0xff]  ;;  %483 = vst.msk [vmem:[#allocation3 + $0x18] sm:$0xf] %vm476_vm3, %v3417_v18 }
  0x6f   : > { %v3424_v24 = vpack.c.bf16 %v415_v23, %v415_v23  ;;  %v433_v23 = vld [vmem:[#allocation2 + $0xf8] sm:$0xff] }
  0x70   : > { %637 = vrot.lane.b32.xlu1 %v557_v26, %s3068_s27  ;;  %v769_v26 = vpack.c.bf16 %v737_v21, %v737_v21  ;;  %v3499_v21 = vpack.c.bf16 %v749_v13, %v749_v13  ;;  %v3507_v27 = vpack.c.bf16 %v433_v23, %v433_v23  ;;  %v437_v13 = vld [vmem:[#allocation2 + $0x128] sm:$0xff] }
  0x71   : > { %480 = vst.msk [vmem:[#allocation3 + $0xc] sm:$0xf] %vm476_vm3, %v3424_v24 }
  0x72   : > { %498 = vst.msk [vmem:[#allocation3 + $0x54] sm:$0xf] %vm476_vm3, %v3507_v27 }
  0x73   : > { %647 = vrot.lane.b32.xlu0 %v562_v31, %s3068_s27  ;;  %v420_v31 = vld [vmem:[#allocation2 + $0x60] sm:$0xff] }
  0x74   : > { %v3436_v34 = vpack.c.bf16 %v420_v31, %v420_v31 }
  0x76   : > { %639 = vrot.lane.b32.xlu2 %v558_v35, %s3068_s27  ;;  %v419_v35 = vld [vmem:[#allocation2 + $0x50] sm:$0xff]  ;;  %485 = vst.msk [vmem:[#allocation3 + $0x20] sm:$0xf] %vm476_vm3, %v3436_v34 }
  0x78   : > { %643 = vrot.lane.b32.xlu1 %v560_v37, %s3068_s27  ;;  %v3439_v37 = vpack.c.bf16 %v419_v35, %v419_v35  ;;  %v431_v35 = vld [vmem:[#allocation2 + $0xe0] sm:$0xff] }
  0x7a   : > { %484 = vst.msk [vmem:[#allocation3 + $0x1c] sm:$0xf] %vm476_vm3, %v3439_v37 }
  0x7b   : > { %653 = vrot.lane.b32.xlu0 %v565_v41, %s3068_s27  ;;  %v774_v41 = vpack.c.bf16 %v742_v38, %v742_v38  ;;  %v3517_v38 = vpack.c.bf16 %v431_v35, %v431_v35 }
  0x7d   : > { %496 = vst.msk [vmem:[#allocation3 + $0x4c] sm:$0xf] %vm476_vm3, %v3517_v38 }
  0x7e   : > { %645 = vrot.lane.b32.xlu2 %v561_v45, %s3068_s27  ;;  %v779_v45 = vpack.c.bf16 %v747_v42, %v747_v42  ;;  %v436_v42 = vld [vmem:[#allocation2 + $0x120] sm:$0xff] }
  0x80   : > { %649 = vrot.lane.b32.xlu1 %v563_v46, %s3068_s27  ;;  %v743_v46 = vld [vmem:[#allocation2 + $0x6a] sm:$0xff] }
  0x83   : > { %659 = vrot.lane.b32.xlu0 %v568_v3, %s3068_s27  ;;  %v422_v3 = vld [vmem:[#allocation2 + $0x78] sm:$0xff] }
  0x84   : > { %v3455_v8 = vpack.c.bf16 %v422_v3, %v422_v3 }
  0x86   : > { %651 = vrot.lane.b32.xlu2 %v564_v49, %s3068_s27  ;;  %v745_v49 = vld [vmem:[#allocation2 + $0x82] sm:$0xff]  ;;  %487 = vst.msk [vmem:[#allocation3 + $0x28] sm:$0xf] %vm476_vm3, %v3455_v8 }
  0x88   : > { %655 = vrot.lane.b32.xlu1 %v566_v50, %s3068_s27  ;;  %v3458_v50 = vpack.c.bf16 %v743_v46, %v743_v46  ;;  %v3528_v46 = vpack.c.bf16 %v436_v42, %v436_v42 }
  0x8a   : > { %501 = vst.msk [vmem:[#allocation3 + $0x60] sm:$0xf] %vm476_vm3, %v3528_v46 }
  0x8b   : > { %665 = vrot.lane.b32.xlu0 %v571_v52, %s3068_s27  ;;  %v777_v52 = vpack.c.bf16 %v745_v49, %v745_v49 }
  0x8e   : > { %657 = vrot.lane.b32.xlu2 %v567_v55, %s3068_s27 }
  0x90   : > { %661 = vrot.lane.b32.xlu1 %v569_v57, %s3068_s27  ;;  %v782_v57 = vpack.c.bf16 %v750_v53, %v750_v53  ;;  %v434_v53 = vld [vmem:[#allocation2 + $0x108] sm:$0xff] }
  0x91   : > { %v606_v63 = vpop.permute.xlu0 %605  ;;  %v3538_v56 = vpack.c.bf16 %v434_v53, %v434_v53  ;;  %v764_v53 = vld [vmem:[#allocation2 + $0x16a] sm:$0xff] }
  0x92   : > { %702 = vst.msk [vmem:[#allocation3] sm:$0xf] %vm701_vm4, %v606_v63  ;;  %v748_v63 = vld [vmem:[#allocation2 + $0xaa] sm:$0xff] }
  0x93   : > { %832 = vrot.lane.b32.xlu0 %v767_v60, %s3069_s11  ;;  %v425_v60 = vld [vmem:[#allocation2 + $0x98] sm:$0xff]  ;;  %v780_v4 = vpack.c.bf16 %v748_v63, %v748_v63  ;;  %499 = vst.msk [vmem:[#allocation3 + $0x58] sm:$0xf] %vm476_vm3, %v3538_v56 }
  0x94   : > { %v3475_v62 = vpack.c.bf16 %v425_v60, %v425_v60  ;;  %v3541_v60 = vpack.c.bf16 %v755_v51, %v755_v51 }
  0x96   : > { %663 = vrot.lane.b32.xlu2 %v570_v0, %s3068_s27  ;;  %490 = vst.msk [vmem:[#allocation3 + $0x34] sm:$0xf] %vm476_vm3, %v3475_v62 }
  0x98   : > { %667 = vrot.lane.b32.xlu1 %v572_v2, %s3068_s27  ;;  %v430_v2 = vld [vmem:[#allocation2 + $0xd8] sm:$0xff] }
  0x99   : > { %v3486_v6 = vpack.c.bf16 %v430_v2, %v430_v2 }
  0x9b   : > { %838 = vrot.lane.b32.xlu0 %v770_v7, %s3069_s11  ;;  %495 = vst.msk [vmem:[#allocation3 + $0x48] sm:$0xf] %vm476_vm3, %v3486_v6 }
  0x9e   : > { %830 = vrot.lane.b32.xlu2 %v766_v14, %s3069_s11  ;;  %v3493_v14 = vpack.c.bf16 %v429_v9, %v429_v9  ;;  %v758_v9 = vld [vmem:[#allocation2 + $0x122] sm:$0xff] }
  0x9f   : > { %v3562_v23 = vpack.c.bf16 %v758_v9, %v758_v9 }
  0xa0   : > { %834 = vrot.lane.b32.xlu1 %v768_v15, %s3069_s11  ;;  %v428_v15 = vld [vmem:[#allocation2 + $0xc0] sm:$0xff]  ;;  %494 = vst.msk [vmem:[#allocation3 + $0x44] sm:$0xf] %vm476_vm3, %v3493_v14 }
  0xa1   : > { %v3496_v17 = vpack.c.bf16 %v428_v15, %v428_v15 }
  0xa3   : > { %844 = vrot.lane.b32.xlu0 %v773_v20, %s3069_s11  ;;  %493 = vst.msk [vmem:[#allocation3 + $0x40] sm:$0xf] %vm476_vm3, %v3496_v17 }
  0xa6   : > { %836 = vrot.lane.b32.xlu2 %v769_v26, %s3069_s11  ;;  %v756_v26 = vld [vmem:[#allocation2 + $0x10a] sm:$0xff] }
  0xa7   : > { %v788_v31 = vpack.c.bf16 %v756_v26, %v756_v26  ;;  %v792_v26 = vpack.c.bf16 %v760_v19, %v760_v19 }
  0xa8   : > { %840 = vrot.lane.b32.xlu1 %v771_v28, %s3069_s11  ;;  %v614_v36 = vpop.permute.xlu2 %613 }
  0xa9   : > { %706 = vst.msk [vmem:[#allocation3 + $0x10] sm:$0xf] %vm701_vm4, %v614_v36 }
  0xab   : > { %850 = vrot.lane.b32.xlu0 %v776_v32, %s3069_s11  ;;  %v752_v32 = vld [vmem:[#allocation2 + $0xda] sm:$0xff] }
  0xae   : > { %842 = vrot.lane.b32.xlu2 %v772_v39, %s3069_s11  ;;  %v754_v39 = vld [vmem:[#allocation2 + $0xf2] sm:$0xff] }
  0xaf   : > { %v786_v44 = vpack.c.bf16 %v754_v39, %v754_v39 }
  0xb0   : > { %846 = vrot.lane.b32.xlu1 %v774_v41, %s3069_s11  ;;  %v616_v48 = vpop.permute.xlu2 %615  ;;  %v3520_v41 = vpack.c.bf16 %v752_v32, %v752_v32  ;;  %v441_v32 = vld [vmem:[#allocation2 + $0x158] sm:$0xff] }
  0xb1   : > { %707 = vst.msk [vmem:[#allocation3 + $0x14] sm:$0xf] %vm701_vm4, %v616_v48  ;;  %v435_v48 = vld [vmem:[#allocation2 + $0x110] sm:$0xff]  ;;  %v3577_v39 = vpack.c.bf16 %v441_v32, %v441_v32 }
  0xb3   : > { %856 = vrot.lane.b32.xlu0 %v779_v45, %s3069_s11  ;;  %v759_v45 = vld [vmem:[#allocation2 + $0x12a] sm:$0xff]  ;;  %506 = vst.msk [vmem:[#allocation3 + $0x74] sm:$0xf] %vm476_vm3, %v3577_v39 }
  0xb4   : > { %v791_v49 = vpack.c.bf16 %v759_v45, %v759_v45  ;;  %v763_v45 = vld [vmem:[#allocation2 + $0x15a] sm:$0xff] }
  0xb5   : > { %v608_v55 = vpop.permute.xlu0 %607 }
  0xb6   : > { %703 = vst.msk [vmem:[#allocation3 + $0x4] sm:$0xf] %vm701_vm4, %v608_v55  ;;  %848 = vrot.lane.b32.xlu2 %v3458_v50, %s3069_s11 }
  0xb8   : > { %852 = vrot.lane.b32.xlu1 %v777_v52, %s3069_s11  ;;  %v622_v61 = vpop.permute.xlu2 %621  ;;  %v3535_v52 = vpack.c.bf16 %v435_v48, %v435_v48 }
  0xb9   : > { %710 = vst.msk [vmem:[#allocation3 + $0x20] sm:$0xf] %vm701_vm4, %v622_v61  ;;  %v439_v61 = vld [vmem:[#allocation2 + $0x140] sm:$0xff] }
  0xba   : > { %v610_v0 = vpop.permute.xlu1 %609  ;;  %500 = vst.msk [vmem:[#allocation3 + $0x5c] sm:$0xf] %vm476_vm3, %v3535_v52  ;;  %v3549_v2 = vpack.c.bf16 %v439_v61, %v439_v61 }
  0xbb   : > { %704 = vst.msk [vmem:[#allocation3 + $0x8] sm:$0xf] %vm701_vm4, %v610_v0  ;;  %862 = vrot.lane.b32.xlu0 %v782_v57, %s3069_s11  ;;  %v757_v57 = vld [vmem:[#allocation2 + $0x112] sm:$0xff] }
  0xbc   : > { %v789_v63 = vpack.c.bf16 %v757_v57, %v757_v57  ;;  %v762_v0 = vld [vmem:[#allocation2 + $0x152] sm:$0xff]  ;;  %504 = vst.msk [vmem:[#allocation3 + $0x6c] sm:$0xf] %vm476_vm3, %v3549_v2 }
  0xbd   : > { %v618_v7 = vpop.permute.xlu0 %617 }
  0xbe   : > { %708 = vst.msk [vmem:[#allocation3 + $0x18] sm:$0xf] %vm701_vm4, %v618_v7  ;;  %854 = vrot.lane.b32.xlu2 %v3478_v1, %s3069_s11  ;;  %v794_v7 = vpack.c.bf16 %v762_v0, %v762_v0 }
  0xc0   : > { %858 = vrot.lane.b32.xlu1 %v780_v4, %s3069_s11  ;;  %v628_v16 = vpop.permute.xlu2 %627 }
  0xc1   : > { %713 = vst.msk [vmem:[#allocation3 + $0x2c] sm:$0xf] %vm701_vm4, %v628_v16  ;;  %v3559_v16 = vpack.c.bf16 %v437_v13, %v437_v13 }
  0xc2   : > { %v612_v20 = vpop.permute.xlu1 %611 }
  0xc3   : > { %705 = vst.msk [vmem:[#allocation3 + $0xc] sm:$0xf] %vm701_vm4, %v612_v20  ;;  %868 = vrot.lane.b32.xlu0 %v785_v11, %s3069_s11  ;;  %v3556_v11 = vpack.c.bf16 %v438_v5, %v438_v5 }
  0xc4   : > { %502 = vst.msk [vmem:[#allocation3 + $0x64] sm:$0xf] %vm476_vm3, %v3559_v16 }
  0xc5   : > { %v624_v28 = vpop.permute.xlu0 %623  ;;  %503 = vst.msk [vmem:[#allocation3 + $0x68] sm:$0xf] %vm476_vm3, %v3556_v11 }
  0xc6   : > { %711 = vst.msk [vmem:[#allocation3 + $0x24] sm:$0xf] %vm701_vm4, %v624_v28  ;;  %860 = vrot.lane.b32.xlu2 %v3499_v21, %s3069_s11  ;;  %v765_v28 = vld [vmem:[#allocation2 + $0x172] sm:$0xff] }
  0xc7   : > { %v797_v35 = vpack.c.bf16 %v765_v28, %v765_v28 }
  0xc8   : > { %864 = vrot.lane.b32.xlu1 %v783_v25, %s3069_s11  ;;  %v634_v36 = vpop.permute.xlu2 %633  ;;  %v442_v25 = vld [vmem:[#allocation2 + $0x168] sm:$0xff] }
  0xc9   : > { %716 = vst.msk [vmem:[#allocation3 + $0x38] sm:$0xf] %vm701_vm4, %v634_v36  ;;  %v3570_v29 = vpack.c.bf16 %v442_v25, %v442_v25  ;;  %v761_v36 = vld [vmem:[#allocation2 + $0x142] sm:$0xff] }
  0xca   : > { %v620_v40 = vpop.permute.xlu1 %619  ;;  %v3583_v48 = vpack.c.bf16 %v761_v36, %v761_v36 }
  0xcb   : > { %709 = vst.msk [vmem:[#allocation3 + $0x1c] sm:$0xf] %vm701_vm4, %v620_v40  ;;  %874 = vrot.lane.b32.xlu0 %v788_v31, %s3069_s11  ;;  %v440_v40 = vld [vmem:[#allocation2 + $0x150] sm:$0xff] }
  0xcc   : > { %507 = vst.msk [vmem:[#allocation3 + $0x78] sm:$0xf] %vm476_vm3, %v3570_v29 }
  0xcd   : > { %v630_v3 = vpop.permute.xlu0 %629 }
  0xce   : > { %714 = vst.msk [vmem:[#allocation3 + $0x30] sm:$0xf] %vm701_vm4, %v630_v3  ;;  %866 = vrot.lane.b32.xlu2 %v3520_v41, %s3069_s11 }
  0xd0   : > { %870 = vrot.lane.b32.xlu1 %v786_v44, %s3069_s11  ;;  %v640_v55 = vpop.permute.xlu2 %639  ;;  %v3580_v44 = vpack.c.bf16 %v440_v40, %v440_v40 }
  0xd1   : > { %719 = vst.msk [vmem:[#allocation3 + $0x44] sm:$0xf] %vm701_vm4, %v640_v55  ;;  %v443_v55 = vld [vmem:[#allocation2 + $0x170] sm:$0xff] }
  0xd2   : > { %v626_v58 = vpop.permute.xlu1 %625  ;;  %505 = vst.msk [vmem:[#allocation3 + $0x70] sm:$0xf] %vm476_vm3, %v3580_v44 }
  0xd3   : > { %712 = vst.msk [vmem:[#allocation3 + $0x28] sm:$0xf] %vm701_vm4, %v626_v58  ;;  %880 = vrot.lane.b32.xlu0 %v791_v49, %s3069_s11  ;;  %v795_v49 = vpack.c.bf16 %v763_v45, %v763_v45  ;;  %v3595_v58 = vpack.c.bf16 %v443_v55, %v443_v55  ;;  %v1187_v45 = vld [vmem:[#allocation2 + $0x39] sm:$0xff] }
  0xd5   : > { %v636_v4 = vpop.permute.xlu0 %635  ;;  %508 = vst.msk [vmem:[#allocation3 + $0x7c] sm:$0xf] %vm476_vm3, %v3595_v58 }
  0xd6   : > { %717 = vst.msk [vmem:[#allocation3 + $0x3c] sm:$0xf] %vm701_vm4, %v636_v4  ;;  %872 = vrot.lane.b32.xlu2 %v3541_v60, %s3069_s11 }
  0xd8   : > { %876 = vrot.lane.b32.xlu1 %v789_v63, %s3069_s11  ;;  %v646_v15 = vpop.permute.xlu2 %645  ;;  %v3598_v63 = vpack.c.bf16 %v764_v53, %v764_v53 }
  0xd9   : > { %722 = vst.msk [vmem:[#allocation3 + $0x50] sm:$0xf] %vm701_vm4, %v646_v15 }
  0xda   : > { %v632_v20 = vpop.permute.xlu1 %631 }
  0xdb   : > { %715 = vst.msk [vmem:[#allocation3 + $0x34] sm:$0xf] %vm701_vm4, %v632_v20  ;;  %886 = vrot.lane.b32.xlu0 %v794_v7, %s3069_s11 }
  0xdd   : > { %v642_v31 = vpop.permute.xlu0 %641 }
  0xde   : > { %720 = vst.msk [vmem:[#allocation3 + $0x48] sm:$0xf] %vm701_vm4, %v642_v31  ;;  %878 = vrot.lane.b32.xlu2 %v3562_v23, %s3069_s11 }
  0xe0   : > { %882 = vrot.lane.b32.xlu1 %v792_v26, %s3069_s11  ;;  %v652_v42 = vpop.permute.xlu2 %651  ;;  %v276_v26 = vld [vmem:[%s3206_s6 + $0xf8] sm:$0xff] }
  0xe1   : > { %725 = vst.msk [vmem:[#allocation3 + $0x5c] sm:$0xf] %vm701_vm4, %v652_v42 }
  0xe2   : > { %v638_v3 = vpop.permute.xlu1 %637 }
  0xe3   : > { %718 = vst.msk [vmem:[#allocation3 + $0x40] sm:$0xf] %vm701_vm4, %v638_v3  ;;  %892 = vrot.lane.b32.xlu0 %v797_v35, %s3069_s11  ;;  %v1184_v35 = vld [vmem:[#allocation2 + $0x19] sm:$0xff] }
  0xe5   : > { %v648_v51 = vpop.permute.xlu0 %647 }
  0xe6   : > { %723 = vst.msk [vmem:[#allocation3 + $0x54] sm:$0xf] %vm701_vm4, %v648_v51  ;;  %884 = vrot.lane.b32.xlu2 %v3583_v48, %s3069_s11  ;;  %v1185_v51 = vld [vmem:[#allocation2 + $0x21] sm:$0xff] }
  0xe8   : > { %888 = vrot.lane.b32.xlu1 %v795_v49, %s3069_s11  ;;  %v658_v57 = vpop.permute.xlu2 %657 }
  0xe9   : > { %728 = vst.msk [vmem:[#allocation3 + $0x68] sm:$0xf] %vm701_vm4, %v658_v57  ;;  %v1217_v57 = vpack.c.bf16 %v1185_v51, %v1185_v51 }
  0xea   : > { %v644_v61 = vpop.permute.xlu1 %643 }
  0xeb   : > { %721 = vst.msk [vmem:[#allocation3 + $0x4c] sm:$0xf] %vm701_vm4, %v644_v61  ;;  %1059 = vrot.lane.b32.xlu0 %v3406_v10, %s3070_s12 }
  0xed   : > { %v654_v0 = vpop.permute.xlu0 %653 }
  0xee   : > { %726 = vst.msk [vmem:[#allocation3 + $0x60] sm:$0xf] %vm701_vm4, %v654_v0  ;;  %890 = vrot.lane.b32.xlu2 %v3598_v63, %s3069_s11  ;;  %v1186_v0 = vld [vmem:[#allocation2 + $0x31] sm:$0xff] }
  0xf0   : > { %1055 = vrot.lane.b32.xlu1 %v3409_v12, %s3070_s12  ;;  %v664_v4 = vpop.permute.xlu2 %663 }
  0xf1   : > { %731 = vst.msk [vmem:[#allocation3 + $0x74] sm:$0xf] %vm701_vm4, %v664_v4 }
  0xf2   : > { %v650_v5 = vpop.permute.xlu1 %649 }
  0xf3   : > { %724 = vst.msk [vmem:[#allocation3 + $0x58] sm:$0xf] %vm701_vm4, %v650_v5  ;;  %1065 = vrot.lane.b32.xlu0 %v3439_v37, %s3070_s12  ;;  %v1188_v5 = vld [vmem:[#allocation2 + $0x49] sm:$0xff] }
  0xf5   : > { %v660_v7 = vpop.permute.xlu0 %659 }
  0xf6   : > { %729 = vst.msk [vmem:[#allocation3 + $0x6c] sm:$0xf] %vm701_vm4, %v660_v7  ;;  %1057 = vrot.lane.b32.xlu2 %v3424_v24, %s3070_s12 }
  0xf8   : > { %1061 = vrot.lane.b32.xlu1 %v3419_v22, %s3070_s12  ;;  %v831_v10 = vpop.permute.xlu2 %830 }
  0xf9   : > { %927 = vst.msk [vmem:[#allocation3] sm:$0xf] %vm926_vm5, %v831_v10  ;;  %v3718_v10 = vpack.c.bf16 %v1186_v0, %v1186_v0 }
  0xfa   : > { %v656_v12 = vpop.permute.xlu1 %655 }
  0xfb   : > { %727 = vst.msk [vmem:[#allocation3 + $0x64] sm:$0xf] %vm701_vm4, %v656_v12  ;;  %1071 = vrot.lane.b32.xlu0 %v3455_v8, %s3070_s12  ;;  %v1220_v12 = vpack.c.bf16 %v1188_v5, %v1188_v5 }
  0xfd   : > { %v666_v37 = vpop.permute.xlu0 %665 }
  0xfe   : > { %732 = vst.msk [vmem:[#allocation3 + $0x78] sm:$0xf] %vm701_vm4, %v666_v37  ;;  %1063 = vrot.lane.b32.xlu2 %v3417_v18, %s3070_s12  ;;  %v1193_v37 = vld [vmem:[#allocation2 + $0x81] sm:$0xff] }
 0x100   : > { %1067 = vrot.lane.b32.xlu1 %v3436_v34, %s3070_s12  ;;  %v837_v24 = vpop.permute.xlu2 %836 }
 0x101   : > { %930 = vst.msk [vmem:[#allocation3 + $0xc] sm:$0xf] %vm926_vm5, %v837_v24 }
 0x102   : > { %v662_v22 = vpop.permute.xlu1 %661 }
 0x103   : > { %730 = vst.msk [vmem:[#allocation3 + $0x70] sm:$0xf] %vm701_vm4, %v662_v22  ;;  %1077 = vrot.lane.b32.xlu0 %v3475_v62, %s3070_s12  ;;  %v275_v62 = vld [vmem:[%s3206_s6 + $0xf0] sm:$0xff]  ;;  %v1225_v22 = vpack.c.bf16 %v1193_v37, %v1193_v37  ;;  %v1211_v37 = vld [vmem:[#allocation2 + $0x159] sm:$0xff] }
 0x105   : > { %v833_v8 = vpop.permute.xlu0 %832 }
 0x106   : > { %928 = vst.msk [vmem:[#allocation3 + $0x4] sm:$0xf] %vm926_vm5, %v833_v8  ;;  %1069 = vrot.lane.b32.xlu2 %v3431_v30, %s3070_s12  ;;  %v1189_v8 = vld [vmem:[#allocation2 + $0x51] sm:$0xff] }
 0x108   : > { %1073 = vrot.lane.b32.xlu1 %v3452_v47, %s3070_s12  ;;  %v843_v18 = vpop.permute.xlu2 %842  ;;  %v3001_v47 = vld [vmem:[%s4292_s2] ss:$0 sm:$0xff] }
 0x109   : > { %933 = vst.msk [vmem:[#allocation3 + $0x18] sm:$0xf] %vm926_vm5, %v843_v18  ;;  %v310_v13 = vmul.f32 %v3001_v47, %v275_v62  ;;  %v1221_v62 = vpack.c.bf16 %v1189_v8, %v1189_v8  ;;  %v1207_v8 = vld [vmem:[#allocation2 + $0x129] sm:$0xff] }
 0x10a   : > { %v668_v34 = vpop.permute.xlu1 %667 }
 0x10b   : > { %733 = vst.msk [vmem:[#allocation3 + $0x7c] sm:$0xf] %vm701_vm4, %v668_v34  ;;  %1083 = vrot.lane.b32.xlu0 %v3496_v17, %s3070_s12  ;;  %v3002_v17 = vld [vmem:[%s4293_s3] ss:$0 sm:$0xff]  ;;  %v1191_v34 = vld [vmem:[#allocation2 + $0x69] sm:$0xff] }
 0x10c   : > { %v345_v19 = vadd.f32 %v3002_v17, %v310_v13 }
 0x10d   : > { %v839_v9 = vpop.permute.xlu0 %838 }
 0x10e   : > { %931 = vst.msk [vmem:[#allocation3 + $0x10] sm:$0xf] %vm926_vm5, %v839_v9  ;;  %1075 = vrot.lane.b32.xlu2 %v3447_v43, %s3070_s12  ;;  %v377_v43 = vmax.f32 %v345_v19, 0.0 }
 0x110   : > { %1079 = vrot.lane.b32.xlu1 %v3472_v59, %s3070_s12  ;;  %v849_v30 = vpop.permute.xlu2 %848  ;;  %410 = vst.msk [vmem:[#allocation2 + $0x181] sm:$0xff] %vm197_vm0, %v377_v43  ;;  %v1194_v43 = vld [vmem:[#allocation2 + $0x91] sm:$0xff] }
 0x111   : > { %936 = vst.msk [vmem:[#allocation3 + $0x24] sm:$0xf] %vm926_vm5, %v849_v30  ;;  %v1223_v30 = vpack.c.bf16 %v1191_v34, %v1191_v34  ;;  %v1209_v34 = vld [vmem:[#allocation2 + $0x141] sm:$0xff] }
 0x112   : > { %v835_v15 = vpop.permute.xlu1 %834 }
 0x113   : > { %929 = vst.msk [vmem:[#allocation3 + $0x8] sm:$0xf] %vm926_vm5, %v835_v15  ;;  %1089 = vrot.lane.b32.xlu0 %v3517_v38, %s3070_s12 }
 0x115   : > { %v845_v59 = vpop.permute.xlu0 %844 }
 0x116   : > { %934 = vst.msk [vmem:[#allocation3 + $0x1c] sm:$0xf] %vm926_vm5, %v845_v59  ;;  %1081 = vrot.lane.b32.xlu2 %v3465_v54, %s3070_s12 }
 0x117   : > { %v989_v40 = vld [vmem:[#allocation2 + $0x180] sm:$0xff] }
 0x118   : > { %1085 = vrot.lane.b32.xlu1 %v3493_v14, %s3070_s12  ;;  %v855_v20 = vpop.permute.xlu2 %854 }
 0x119   : > { %939 = vst.msk [vmem:[#allocation3 + $0x30] sm:$0xf] %vm926_vm5, %v855_v20 }
 0x11a   : > { %v841_v25 = vpop.permute.xlu1 %840 }
 0x11b   : > { %932 = vst.msk [vmem:[#allocation3 + $0x14] sm:$0xf] %vm926_vm5, %v841_v25  ;;  %1095 = vrot.lane.b32.xlu0 %v3538_v56, %s3070_s12  ;;  %v311_v56 = vmul.f32 %v3001_v47, %v276_v26  ;;  %v1196_v47 = vld [vmem:[#allocation2 + $0xa9] sm:$0xff]  ;;  %v3735_v25 = vpack.c.bf16 %v1194_v43, %v1194_v43  ;;  %v1195_v26 = vld [vmem:[#allocation2 + $0x99] sm:$0xff] }
 0x11c   : > { %v1228_v15 = vpack.c.bf16 %v1196_v47, %v1196_v47  ;;  %v1214_v47 = vld [vmem:[#allocation2 + $0x181] sm:$0xff]  ;;  %v1212_v43 = vld [vmem:[#allocation2 + $0x169] sm:$0xff] }
 0x11d   : > { %v851_v38 = vpop.permute.xlu0 %850 }
 0x11e   : > { %937 = vst.msk [vmem:[#allocation3 + $0x28] sm:$0xf] %vm926_vm5, %v851_v38  ;;  %1087 = vrot.lane.b32.xlu2 %v3486_v6, %s3070_s12  ;;  %v346_v6 = vadd.f32 %v3002_v17, %v311_v56  ;;  %v1192_v17 = vld [vmem:[#allocation2 + $0x79] sm:$0xff]  ;;  %v1199_v38 = vld [vmem:[#allocation2 + $0xc9] sm:$0xff] }
 0x11f   : > { %v1224_v20 = vpack.c.bf16 %v1192_v17, %v1192_v17  ;;  %v1210_v17 = vld [vmem:[#allocation2 + $0x151] sm:$0xff] }
 0x120   : > { %1091 = vrot.lane.b32.xlu1 %v3514_v33, %s3070_s12  ;;  %v861_v54 = vpop.permute.xlu2 %860  ;;  %v378_v31 = vmax.f32 %v346_v6, 0.0 }
 0x121   : > { %942 = vst.msk [vmem:[#allocation3 + $0x3c] sm:$0xf] %vm926_vm5, %v861_v54 }
 0x122   : > { %v847_v14 = vpop.permute.xlu1 %846  ;;  %411 = vst.msk [vmem:[#allocation2 + $0x189] sm:$0xff] %vm197_vm0, %v378_v31 }
 0x123   : > { %935 = vst.msk [vmem:[#allocation3 + $0x20] sm:$0xf] %vm926_vm5, %v847_v14  ;;  %1101 = vrot.lane.b32.xlu0 %v3559_v16, %s3070_s12  ;;  %v1231_v14 = vpack.c.bf16 %v1199_v38, %v1199_v38  ;;  %v3797_v38 = vpack.c.bf16 %v1212_v43, %v1212_v43 }
 0x125   : > { %v857_v28 = vpop.permute.xlu0 %856 }
 0x126   : > { %940 = vst.msk [vmem:[#allocation3 + $0x34] sm:$0xf] %vm926_vm5, %v857_v28  ;;  %1093 = vrot.lane.b32.xlu2 %v3507_v27, %s3070_s12  ;;  %v1197_v28 = vld [vmem:[#allocation2 + $0xb1] sm:$0xff] }
 0x127   : > { %v1229_v31 = vpack.c.bf16 %v1197_v28, %v1197_v28 }
 0x128   : > { %1097 = vrot.lane.b32.xlu1 %v3535_v52, %s3070_s12  ;;  %v867_v33 = vpop.permute.xlu2 %866 }
 0x129   : > { %945 = vst.msk [vmem:[#allocation3 + $0x48] sm:$0xf] %vm926_vm5, %v867_v33  ;;  %v3742_v33 = vpack.c.bf16 %v1195_v26, %v1195_v26 }
 0x12a   : > { %v853_v32 = vpop.permute.xlu1 %852 }
 0x12b   : > { %938 = vst.msk [vmem:[#allocation3 + $0x2c] sm:$0xf] %vm926_vm5, %v853_v32  ;;  %1107 = vrot.lane.b32.xlu0 %v3580_v44, %s3070_s12  ;;  %v1021_v44 = vpack.c.bf16 %v989_v40, %v989_v40  ;;  %v1202_v32 = vld [vmem:[#allocation2 + $0xf1] sm:$0xff] }
 0x12d   : > { %v863_v16 = vpop.permute.xlu0 %862 }
 0x12e   : > { %943 = vst.msk [vmem:[#allocation3 + $0x40] sm:$0xf] %vm926_vm5, %v863_v16  ;;  %1099 = vrot.lane.b32.xlu2 %v3528_v46, %s3070_s12  ;;  %v1216_v46 = vpack.c.bf16 %v1184_v35, %v1184_v35 }
 0x130   : > { %1103 = vrot.lane.b32.xlu1 %v3556_v11, %s3070_s12  ;;  %v873_v27 = vpop.permute.xlu2 %872 }
 0x131   : > { %948 = vst.msk [vmem:[#allocation3 + $0x54] sm:$0xf] %vm926_vm5, %v873_v27  ;;  %v3749_v27 = vpack.c.bf16 %v1202_v32, %v1202_v32 }
 0x132   : > { %v859_v52 = vpop.permute.xlu1 %858 }
 0x133   : > { %941 = vst.msk [vmem:[#allocation3 + $0x38] sm:$0xf] %vm926_vm5, %v859_v52  ;;  %1113 = vrot.lane.b32.xlu0 %v3595_v58, %s3070_s12  ;;  %v1190_v58 = vld [vmem:[#allocation2 + $0x61] sm:$0xff] }
 0x134   : > { %v1198_v52 = vld [vmem:[#allocation2 + $0xc1] sm:$0xff] }
 0x135   : > { %v869_v36 = vpop.permute.xlu0 %868 }
 0x136   : > { %946 = vst.msk [vmem:[#allocation3 + $0x4c] sm:$0xf] %vm926_vm5, %v869_v36  ;;  %1105 = vrot.lane.b32.xlu2 %v3549_v2, %s3070_s12  ;;  %v3707_v2 = vpack.c.bf16 %v1187_v45, %v1187_v45  ;;  %v1200_v36 = vld [vmem:[#allocation2 + $0xd9] sm:$0xff] }
 0x137   : > { %v1232_v40 = vpack.c.bf16 %v1200_v36, %v1200_v36 }
 0x138   : > { %1109 = vrot.lane.b32.xlu1 %v3577_v39, %s3070_s12  ;;  %v879_v11 = vpop.permute.xlu2 %878  ;;  %v990_v39 = vld [vmem:[#allocation2 + $0x188] sm:$0xff] }
 0x139   : > { %951 = vst.msk [vmem:[#allocation3 + $0x60] sm:$0xf] %vm926_vm5, %v879_v11  ;;  %v1022_v55 = vpack.c.bf16 %v990_v39, %v990_v39  ;;  %v1230_v11 = vpack.c.bf16 %v1198_v52, %v1198_v52  ;;  %v1413_v52 = vld [vmem:[#allocation2 + $0x4a] sm:$0xff] }
 0x13a   : > { %v865_v42 = vpop.permute.xlu1 %864  ;;  %v3814_v36 = vpack.c.bf16 %v1413_v52, %v1413_v52 }
 0x13b   : > { %944 = vst.msk [vmem:[#allocation3 + $0x44] sm:$0xf] %vm926_vm5, %v865_v42  ;;  %1280 = vrot.lane.b32.xlu0 %v1216_v46, %s3071_s23  ;;  %v1205_v42 = vld [vmem:[#allocation2 + $0x111] sm:$0xff] }
 0x13c   : > { %v3758_v45 = vpack.c.bf16 %v1205_v42, %v1205_v42 }
 0x13d   : > { %v875_v3 = vpop.permute.xlu0 %874 }
 0x13e   : > { %949 = vst.msk [vmem:[#allocation3 + $0x58] sm:$0xf] %vm926_vm5, %v875_v3  ;;  %1111 = vrot.lane.b32.xlu2 %v3570_v29, %s3070_s12  ;;  %v1222_v29 = vpack.c.bf16 %v1190_v58, %v1190_v58  ;;  %v1201_v3 = vld [vmem:[#allocation2 + $0xe1] sm:$0xff] }
 0x140   : > { %1115 = vrot.lane.b32.xlu1 %v1021_v44, %s3070_s12  ;;  %v885_v49 = vpop.permute.xlu2 %884 }
 0x141   : > { %954 = vst.msk [vmem:[#allocation3 + $0x6c] sm:$0xf] %vm926_vm5, %v885_v49  ;;  %v1203_v49 = vld [vmem:[#allocation2 + $0xf9] sm:$0xff] }
 0x142   : > { %v871_v53 = vpop.permute.xlu1 %870 }
 0x143   : > { %947 = vst.msk [vmem:[#allocation3 + $0x50] sm:$0xf] %vm926_vm5, %v871_v53  ;;  %1286 = vrot.lane.b32.xlu0 %v3707_v2, %s3071_s23  ;;  %v1233_v53 = vpack.c.bf16 %v1201_v3, %v1201_v3 }
 0x145   : > { %v881_v61 = vpop.permute.xlu0 %880 }
 0x146   : > { %952 = vst.msk [vmem:[#allocation3 + $0x64] sm:$0xf] %vm926_vm5, %v881_v61  ;;  %1117 = vrot.lane.b32.xlu2 %v1022_v55, %s3070_s12  ;;  %v3765_v55 = vpack.c.bf16 %v1203_v49, %v1203_v49  ;;  %v1412_v49 = vld [vmem:[#allocation2 + $0x3a] sm:$0xff]  ;;  %s188_s12 = sand.u32 1, %s3057_s16  }
 0x147   : > { %s2730_s13 = sshll.u32 %s188_s12, 7 }
 0x148   : > { %1282 = vrot.lane.b32.xlu1 %v1217_v57, %s3071_s23  ;;  %v891_v4 = vpop.permute.xlu2 %890  ;;  %v1208_v57 = vld [vmem:[#allocation2 + $0x139] sm:$0xff]  ;;  %s4221_s14 = scalar_lea.vmem [#allocation4], %s2730_s13 }
 0x149   : > { %957 = vst.msk [vmem:[#allocation3 + $0x78] sm:$0xf] %vm926_vm5, %v891_v4  ;;  %v1240_v61 = vpack.c.bf16 %v1208_v57, %v1208_v57  ;;  %v1206_v4 = vld [vmem:[#allocation2 + $0x121] sm:$0xff] }
 0x14a   : > { %v877_v7 = vpop.permute.xlu1 %876 }
 0x14b   : > { %950 = vst.msk [vmem:[#allocation3 + $0x5c] sm:$0xf] %vm926_vm5, %v877_v7  ;;  %1292 = vrot.lane.b32.xlu0 %v1222_v29, %s3071_s23  ;;  %v1204_v29 = vld [vmem:[#allocation2 + $0x109] sm:$0xff] }
 0x14c   : > { %v3772_v7 = vpack.c.bf16 %v1204_v29, %v1204_v29 }
 0x14d   : > { %v887_v24 = vpop.permute.xlu0 %886 }
 0x14e   : > { %955 = vst.msk [vmem:[#allocation3 + $0x70] sm:$0xf] %vm926_vm5, %v887_v24  ;;  %1284 = vrot.lane.b32.xlu2 %v3718_v10, %s3071_s23 }
 0x150   : > { %1288 = vrot.lane.b32.xlu1 %v1220_v12, %s3071_s23  ;;  %v1058_v18 = vpop.permute.xlu2 %1057  ;;  %v1238_v12 = vpack.c.bf16 %v1206_v4, %v1206_v4 }
 0x151   : > { %1153 = vst.msk [vmem:[#allocation3 + $0x4] sm:$0xf] %vm1151_vm6, %v1058_v18 }
 0x152   : > { %v883_v9 = vpop.permute.xlu1 %882 }
 0x153   : > { %953 = vst.msk [vmem:[#allocation3 + $0x68] sm:$0xf] %vm926_vm5, %v883_v9  ;;  %1298 = vrot.lane.b32.xlu0 %v1225_v22, %s3071_s23  ;;  %v3779_v22 = vpack.c.bf16 %v1211_v37, %v1211_v37 }
 0x155   : > { %v893_v13 = vpop.permute.xlu0 %892 }
 0x156   : > { %958 = vst.msk [vmem:[#allocation3 + $0x7c] sm:$0xf] %vm926_vm5, %v893_v13  ;;  %1290 = vrot.lane.b32.xlu2 %v1221_v62, %s3071_s23  ;;  %v1239_v62 = vpack.c.bf16 %v1207_v8, %v1207_v8  ;;  %v1418_v8 = vld [vmem:[#allocation2 + $0x82] sm:$0xff] }
 0x158   : > { %1294 = vrot.lane.b32.xlu1 %v1223_v30, %s3071_s23  ;;  %v1064_v19 = vpop.permute.xlu2 %1063  ;;  %v1241_v30 = vpack.c.bf16 %v1209_v34, %v1209_v34  ;;  %v1420_v34 = vld [vmem:[#allocation2 + $0x9a] sm:$0xff] }
 0x159   : > { %1156 = vst.msk [vmem:[#allocation3 + $0x10] sm:$0xf] %vm1151_vm6, %v1064_v19 }
 0x15a   : > { %v889_v59 = vpop.permute.xlu1 %888 }
 0x15b   : > { %956 = vst.msk [vmem:[#allocation3 + $0x74] sm:$0xf] %vm926_vm5, %v889_v59  ;;  %1304 = vrot.lane.b32.xlu0 %v1228_v15, %s3071_s23  ;;  %v3788_v15 = vpack.c.bf16 %v1214_v47, %v1214_v47  ;;  %v1421_v47 = vld [vmem:[#allocation2 + $0xaa] sm:$0xff] }
 0x15c   : > { %v3862_v43 = vpack.c.bf16 %v1421_v47, %v1421_v47 }
 0x15d   : > { %v1060_v54 = vpop.permute.xlu0 %1059 }
 0x15e   : > { %1154 = vst.msk [vmem:[#allocation3 + $0x8] sm:$0xf] %vm1151_vm6, %v1060_v54  ;;  %1296 = vrot.lane.b32.xlu2 %v1224_v20, %s3071_s23  ;;  %v3792_v20 = vpack.c.bf16 %v1210_v17, %v1210_v17  ;;  %v1410_v54 = vld [vmem:[#allocation2 + $0x22] sm:$0xff] }
 0x15f   : > { %v1442_v26 = vpack.c.bf16 %v1410_v54, %v1410_v54  ;;  %v1423_v17 = vld [vmem:[#allocation2 + $0xc2] sm:$0xff]  ;;  %v1424_v54 = vld [vmem:[#allocation2 + $0xca] sm:$0xff] }
 0x160   : > { %1300 = vrot.lane.b32.xlu1 %v3735_v25, %s3071_s23  ;;  %v1070_v56 = vpop.permute.xlu2 %1069 }
 0x161   : > { %1159 = vst.msk [vmem:[#allocation3 + $0x1c] sm:$0xf] %vm1151_vm6, %v1070_v56  ;;  %v1213_v56 = vld [vmem:[#allocation2 + $0x171] sm:$0xff] }
 0x162   : > { %v1056_v6 = vpop.permute.xlu1 %1055  ;;  %v3805_v32 = vpack.c.bf16 %v1213_v56, %v1213_v56 }
 0x163   : > { %1152 = vst.msk [vmem:[#allocation3] sm:$0xf] %vm1151_vm6, %v1056_v6  ;;  %1310 = vrot.lane.b32.xlu0 %v1231_v14, %s3071_s23  ;;  %v1215_v6 = vld [vmem:[#allocation2 + $0x189] sm:$0xff] }
 0x165   : > { %v1066_v16 = vpop.permute.xlu0 %1065 }
 0x166   : > { %1157 = vst.msk [vmem:[#allocation3 + $0x14] sm:$0xf] %vm1151_vm6, %v1066_v16  ;;  %1302 = vrot.lane.b32.xlu2 %v3742_v33, %s3071_s23  ;;  %v3809_v16 = vpack.c.bf16 %v1215_v6, %v1215_v6 }
 0x168   : > { %1306 = vrot.lane.b32.xlu1 %v1229_v31, %s3071_s23  ;;  %v1076_v35 = vpop.permute.xlu2 %1075 }
 0x169   : > { %1162 = vst.msk [vmem:[#allocation3 + $0x28] sm:$0xf] %vm1151_vm6, %v1076_v35 }
 0x16a   : > { %v1062_v46 = vpop.permute.xlu1 %1061 }
 0x16b   : > { %1155 = vst.msk [vmem:[#allocation3 + $0xc] sm:$0xf] %vm1151_vm6, %v1062_v46  ;;  %1316 = vrot.lane.b32.xlu0 %v3749_v27, %s3071_s23  ;;  %v1409_v46 = vld [vmem:[#allocation2 + $0x1a] sm:$0xff] }
 0x16d   : > { %v1072_v44 = vpop.permute.xlu0 %1071 }
 0x16e   : > { %1160 = vst.msk [vmem:[#allocation3 + $0x20] sm:$0xf] %vm1151_vm6, %v1072_v44  ;;  %1308 = vrot.lane.b32.xlu2 %v1230_v11, %s3071_s23  ;;  %v1441_v44 = vpack.c.bf16 %v1409_v46, %v1409_v46 }
 0x170   : > { %1312 = vrot.lane.b32.xlu1 %v1232_v40, %s3071_s23  ;;  %v1082_v39 = vpop.permute.xlu2 %1081  ;;  %v1411_v40 = vld [vmem:[#allocation2 + $0x32] sm:$0xff] }
 0x171   : > { %1165 = vst.msk [vmem:[#allocation3 + $0x34] sm:$0xf] %vm1151_vm6, %v1082_v39  ;;  %v3822_v3 = vpack.c.bf16 %v1411_v40, %v1411_v40 }
 0x172   : > { %v1068_v51 = vpop.permute.xlu1 %1067 }
 0x173   : > { %1158 = vst.msk [vmem:[#allocation3 + $0x18] sm:$0xf] %vm1151_vm6, %v1068_v51  ;;  %1322 = vrot.lane.b32.xlu0 %v3758_v45, %s3071_s23 }
 0x175   : > { %v1078_v58 = vpop.permute.xlu0 %1077 }
 0x176   : > { %1163 = vst.msk [vmem:[#allocation3 + $0x2c] sm:$0xf] %vm1151_vm6, %v1078_v58  ;;  %1314 = vrot.lane.b32.xlu2 %v1233_v53, %s3071_s23  ;;  %v1414_v53 = vld [vmem:[#allocation2 + $0x52] sm:$0xff]  ;;  %v3829_v58 = vpack.c.bf16 %v1412_v49, %v1412_v49 }
 0x178   : > { %1318 = vrot.lane.b32.xlu1 %v3765_v55, %s3071_s23  ;;  %v1088_v0 = vpop.permute.xlu2 %1087 }
 0x179   : > { %1168 = vst.msk [vmem:[#allocation3 + $0x40] sm:$0xf] %vm1151_vm6, %v1088_v0  ;;  %v1415_v0 = vld [vmem:[#allocation2 + $0x62] sm:$0xff] }
 0x17a   : > { %v1074_v5 = vpop.permute.xlu1 %1073  ;;  %v3842_v37 = vpack.c.bf16 %v1415_v0, %v1415_v0  ;;  %v1435_v0 = vld [vmem:[#allocation2 + $0x152] sm:$0xff] }
 0x17b   : > { %1161 = vst.msk [vmem:[#allocation3 + $0x24] sm:$0xf] %vm1151_vm6, %v1074_v5  ;;  %1328 = vrot.lane.b32.xlu0 %v1240_v61, %s3071_s23  ;;  %v3834_v61 = vpack.c.bf16 %v1414_v53, %v1414_v53  ;;  %v1417_v5 = vld [vmem:[#allocation2 + $0x7a] sm:$0xff] }
 0x17d   : > { %v1084_v24 = vpop.permute.xlu0 %1083 }
 0x17e   : > { %1166 = vst.msk [vmem:[#allocation3 + $0x38] sm:$0xf] %vm1151_vm6, %v1084_v24  ;;  %1320 = vrot.lane.b32.xlu2 %v3772_v7, %s3071_s23 }
 0x180   : > { %1324 = vrot.lane.b32.xlu1 %v1238_v12, %s3071_s23  ;;  %v1094_v18 = vpop.permute.xlu2 %1093 }
 0x181   : > { %1171 = vst.msk [vmem:[#allocation3 + $0x4c] sm:$0xf] %vm1151_vm6, %v1094_v18 }
 0x182   : > { %v1080_v9 = vpop.permute.xlu1 %1079 }
 0x183   : > { %1164 = vst.msk [vmem:[#allocation3 + $0x30] sm:$0xf] %vm1151_vm6, %v1080_v9  ;;  %1334 = vrot.lane.b32.xlu0 %v3779_v22, %s3071_s23 }
 0x185   : > { %v1090_v13 = vpop.permute.xlu0 %1089 }
 0x186   : > { %1169 = vst.msk [vmem:[#allocation3 + $0x44] sm:$0xf] %vm1151_vm6, %v1090_v13  ;;  %1326 = vrot.lane.b32.xlu2 %v1239_v62, %s3071_s23  ;;  %v1450_v62 = vpack.c.bf16 %v1418_v8, %v1418_v8  ;;  %v1436_v8 = vld [vmem:[#allocation2 + $0x15a] sm:$0xff] }
 0x188   : > { %1330 = vrot.lane.b32.xlu1 %v1241_v30, %s3071_s23  ;;  %v1100_v19 = vpop.permute.xlu2 %1099 }
 0x189   : > { %1174 = vst.msk [vmem:[#allocation3 + $0x58] sm:$0xf] %vm1151_vm6, %v1100_v19 }
 0x18a   : > { %v1086_v59 = vpop.permute.xlu1 %1085 }
 0x18b   : > { %1167 = vst.msk [vmem:[#allocation3 + $0x3c] sm:$0xf] %vm1151_vm6, %v1086_v59  ;;  %1340 = vrot.lane.b32.xlu0 %v3788_v15, %s3071_s23 }
 0x18d   : > { %v1096_v14 = vpop.permute.xlu0 %1095 }
 0x18e   : > { %1172 = vst.msk [vmem:[#allocation3 + $0x50] sm:$0xf] %vm1151_vm6, %v1096_v14  ;;  %1332 = vrot.lane.b32.xlu2 %v3792_v20, %s3071_s23 }
 0x190   : > { %1336 = vrot.lane.b32.xlu1 %v3797_v38, %s3071_s23  ;;  %v1106_v28 = vpop.permute.xlu2 %1105 }
 0x191   : > { %1177 = vst.msk [vmem:[#allocation3 + $0x64] sm:$0xf] %vm1151_vm6, %v1106_v28  ;;  %v3875_v28 = vpack.c.bf16 %v1424_v54, %v1424_v54 }
 0x192   : > { %v1092_v31 = vpop.permute.xlu1 %1091 }
 0x193   : > { %1170 = vst.msk [vmem:[#allocation3 + $0x48] sm:$0xf] %vm1151_vm6, %v1092_v31  ;;  %1507 = vrot.lane.b32.xlu0 %v1442_v26, %s3072_s28  ;;  %v1426_v26 = vld [vmem:[#allocation2 + $0xe2] sm:$0xff]  ;;  %v1427_v31 = vld [vmem:[#allocation2 + $0xf2] sm:$0xff] }
 0x195   : > { %v1102_v35 = vpop.permute.xlu0 %1101 }
 0x196   : > { %1175 = vst.msk [vmem:[#allocation3 + $0x5c] sm:$0xf] %vm1151_vm6, %v1102_v35  ;;  %1338 = vrot.lane.b32.xlu2 %v3805_v32, %s3071_s23  ;;  %v1429_v35 = vld [vmem:[#allocation2 + $0x10a] sm:$0xff] }
 0x198   : > { %1342 = vrot.lane.b32.xlu1 %v3809_v16, %s3071_s23  ;;  %v1112_v11 = vpop.permute.xlu2 %1111 }
 0x199   : > { %1180 = vst.msk [vmem:[#allocation3 + $0x70] sm:$0xf] %vm1151_vm6, %v1112_v11  ;;  %v3885_v11 = vpack.c.bf16 %v1427_v31, %v1427_v31  ;;  %v1636_v31 = vld [vmem:[#allocation2 + $0x38] sm:$0xff] }
 0x19a   : > { %v1098_v42 = vpop.permute.xlu1 %1097 }
 0x19b   : > { %1173 = vst.msk [vmem:[#allocation3 + $0x54] sm:$0xf] %vm1151_vm6, %v1098_v42  ;;  %1513 = vrot.lane.b32.xlu0 %v3814_v36, %s3072_s28  ;;  %v1430_v42 = vld [vmem:[#allocation2 + $0x112] sm:$0xff] }
 0x19d   : > { %v1108_v39 = vpop.permute.xlu0 %1107 }
 0x19e   : > { %1178 = vst.msk [vmem:[#allocation3 + $0x68] sm:$0xf] %vm1151_vm6, %v1108_v39  ;;  %1505 = vrot.lane.b32.xlu2 %v1441_v44, %s3072_s28  ;;  %v1432_v39 = vld [vmem:[#allocation2 + $0x12a] sm:$0xff] }
 0x1a0   : > { %1509 = vrot.lane.b32.xlu1 %v3822_v3, %s3072_s28  ;;  %v1118_v51 = vpop.permute.xlu2 %1117 }
 0x1a1   : > { %1183 = vst.msk [vmem:[#allocation3 + $0x7c] sm:$0xf] %vm1151_vm6, %v1118_v51  ;;  %v3898_v51 = vpack.c.bf16 %v1430_v42, %v1430_v42 }
 0x1a2   : > { %v1104_v57 = vpop.permute.xlu1 %1103 }
 0x1a3   : > { %1176 = vst.msk [vmem:[#allocation3 + $0x60] sm:$0xf] %vm1151_vm6, %v1104_v57  ;;  %1519 = vrot.lane.b32.xlu0 %v3458_v50, %s3072_s28  ;;  %v1449_v50 = vpack.c.bf16 %v1417_v5, %v1417_v5  ;;  %v1433_v57 = vld [vmem:[#allocation2 + $0x13a] sm:$0xff] }
 0x1a4   : > { %v3911_v5 = vpack.c.bf16 %v1433_v57, %v1433_v57 }
 0x1a5   : > { %v1114_v29 = vpop.permute.xlu0 %1113 }
 0x1a6   : > { %1181 = vst.msk [vmem:[#allocation3 + $0x74] sm:$0xf] %vm1151_vm6, %v1114_v29  ;;  %1511 = vrot.lane.b32.xlu2 %v3829_v58, %s3072_s28 }
 0x1a8   : > { %1515 = vrot.lane.b32.xlu1 %v3834_v61, %s3072_s28  ;;  %v1285_v4 = vpop.permute.xlu2 %1284 }
 0x1a9   : > { %1379 = vst.msk [vmem:[#allocation3 + $0x8] sm:$0xf] %vm1376_vm7, %v1285_v4 }
 0x1aa   : > { %v1110_v12 = vpop.permute.xlu1 %1109 }
 0x1ab   : > { %1179 = vst.msk [vmem:[#allocation3 + $0x6c] sm:$0xf] %vm1151_vm6, %v1110_v12  ;;  %1525 = vrot.lane.b32.xlu0 %v3478_v1, %s3072_s28  ;;  %v3855_v1 = vpack.c.bf16 %v1420_v34, %v1420_v34  ;;  %v1440_v12 = vld [vmem:[#allocation2 + $0x18a] sm:$0xff]  ;;  %v1438_v34 = vld [vmem:[#allocation2 + $0x172] sm:$0xff] }
 0x1ad   : > { %v1281_v24 = vpop.permute.xlu0 %1280 }
 0x1ae   : > { %1377 = vst.msk [vmem:[#allocation3] sm:$0xf] %vm1376_vm7, %v1281_v24  ;;  %1517 = vrot.lane.b32.xlu2 %v3842_v37, %s3072_s28  ;;  %v3921_v24 = vpack.c.bf16 %v1440_v12, %v1440_v12 }
 0x1b0   : > { %1521 = vrot.lane.b32.xlu1 %v1449_v50, %s3072_s28  ;;  %v1291_v18 = vpop.permute.xlu2 %1290 }
 0x1b1   : > { %1382 = vst.msk [vmem:[#allocation3 + $0x14] sm:$0xf] %vm1376_vm7, %v1291_v18 }
 0x1b2   : > { %v1116_v9 = vpop.permute.xlu1 %1115 }
 0x1b3   : > { %1182 = vst.msk [vmem:[#allocation3 + $0x78] sm:$0xf] %vm1151_vm6, %v1116_v9  ;;  %1531 = vrot.lane.b32.xlu0 %v3499_v21, %s3072_s28  ;;  %v3867_v21 = vpack.c.bf16 %v1423_v17, %v1423_v17  ;;  %v3926_v9 = vpack.c.bf16 %v1436_v8, %v1436_v8  ;;  %v1439_v17 = vld [vmem:[#allocation2 + $0x182] sm:$0xff] }
 0x1b5   : > { %v1287_v30 = vpop.permute.xlu0 %1286 }
 0x1b6   : > { %1380 = vst.msk [vmem:[#allocation3 + $0xc] sm:$0xf] %vm1376_vm7, %v1287_v30  ;;  %1523 = vrot.lane.b32.xlu2 %v1450_v62, %s3072_s28  ;;  %v3931_v62 = vpack.c.bf16 %v1438_v34, %v1438_v34  ;;  %v1637_v30 = vld [vmem:[#allocation2 + $0x48] sm:$0xff]  ;;  %v1642_v34 = vld [vmem:[#allocation2 + $0x80] sm:$0xff] }
 0x1b8   : > { %1527 = vrot.lane.b32.xlu1 %v3855_v1, %s3072_s28  ;;  %v1297_v13 = vpop.permute.xlu2 %1296 }
 0x1b9   : > { %1385 = vst.msk [vmem:[#allocation3 + $0x20] sm:$0xf] %vm1376_vm7, %v1297_v13  ;;  %v1669_v13 = vpack.c.bf16 %v1637_v30, %v1637_v30  ;;  %v1644_v30 = vld [vmem:[#allocation2 + $0x98] sm:$0xff] }
 0x1ba   : > { %v1283_v19 = vpop.permute.xlu1 %1282 }
 0x1bb   : > { %1378 = vst.msk [vmem:[#allocation3 + $0x4] sm:$0xf] %vm1376_vm7, %v1283_v19  ;;  %1537 = vrot.lane.b32.xlu0 %v3520_v41, %s3072_s28  ;;  %v1458_v41 = vpack.c.bf16 %v1426_v26, %v1426_v26 }
 0x1bd   : > { %v1293_v59 = vpop.permute.xlu0 %1292 }
 0x1be   : > { %1383 = vst.msk [vmem:[#allocation3 + $0x18] sm:$0xf] %vm1376_vm7, %v1293_v59  ;;  %1529 = vrot.lane.b32.xlu2 %v3862_v43, %s3072_s28  ;;  %v1635_v59 = vld [vmem:[#allocation2 + $0x30] sm:$0xff] }
 0x1bf   : > { %v1667_v26 = vpack.c.bf16 %v1635_v59, %v1635_v59 }
 0x1c0   : > { %1533 = vrot.lane.b32.xlu1 %v3867_v21, %s3072_s28  ;;  %v1303_v14 = vpop.permute.xlu2 %1302 }
 0x1c1   : > { %1388 = vst.msk [vmem:[#allocation3 + $0x2c] sm:$0xf] %vm1376_vm7, %v1303_v14  ;;  %v3939_v14 = vpack.c.bf16 %v1439_v17, %v1439_v17  ;;  %v1676_v17 = vpack.c.bf16 %v1644_v30, %v1644_v30 }
 0x1c2   : > { %v1289_v56 = vpop.permute.xlu1 %1288 }
 0x1c3   : > { %1381 = vst.msk [vmem:[#allocation3 + $0x10] sm:$0xf] %vm1376_vm7, %v1289_v56  ;;  %1543 = vrot.lane.b32.xlu0 %v3541_v60, %s3072_s28  ;;  %v3890_v60 = vpack.c.bf16 %v1429_v35, %v1429_v35  ;;  %v1640_v56 = vld [vmem:[#allocation2 + $0x68] sm:$0xff]  ;;  %v1638_v35 = vld [vmem:[#allocation2 + $0x50] sm:$0xff] }
 0x1c4   : > { %v1670_v42 = vpack.c.bf16 %v1638_v35, %v1638_v35  ;;  %v1652_v35 = vld [vmem:[#allocation2 + $0xf8] sm:$0xff] }
 0x1c5   : > { %v1299_v6 = vpop.permute.xlu0 %1298 }
 0x1c6   : > { %1386 = vst.msk [vmem:[#allocation3 + $0x24] sm:$0xf] %vm1376_vm7, %v1299_v6  ;;  %1535 = vrot.lane.b32.xlu2 %v3875_v28, %s3072_s28  ;;  %v1672_v6 = vpack.c.bf16 %v1640_v56, %v1640_v56 }
 0x1c8   : > { %1539 = vrot.lane.b32.xlu1 %v1458_v41, %s3072_s28  ;;  %v1309_v52 = vpop.permute.xlu2 %1308 }
 0x1c9   : > { %1391 = vst.msk [vmem:[#allocation3 + $0x38] sm:$0xf] %vm1376_vm7, %v1309_v52 }
 0x1ca   : > { %v1295_v46 = vpop.permute.xlu1 %1294 }
 0x1cb   : > { %1384 = vst.msk [vmem:[#allocation3 + $0x1c] sm:$0xf] %vm1376_vm7, %v1295_v46  ;;  %1549 = vrot.lane.b32.xlu0 %v3562_v23, %s3072_s28  ;;  %v3903_v23 = vpack.c.bf16 %v1432_v39, %v1432_v39 }
 0x1cd   : > { %v1305_v40 = vpop.permute.xlu0 %1304 }
 0x1ce   : > { %1389 = vst.msk [vmem:[#allocation3 + $0x30] sm:$0xf] %vm1376_vm7, %v1305_v40  ;;  %1541 = vrot.lane.b32.xlu2 %v3885_v11, %s3072_s28  ;;  %v1668_v40 = vpack.c.bf16 %v1636_v31, %v1636_v31 }
 0x1d0   : > { %1545 = vrot.lane.b32.xlu1 %v3890_v60, %s3072_s28  ;;  %v1315_v44 = vpop.permute.xlu2 %1314 }
 0x1d1   : > { %1394 = vst.msk [vmem:[#allocation3 + $0x44] sm:$0xf] %vm1376_vm7, %v1315_v44  ;;  %v1643_v44 = vld [vmem:[#allocation2 + $0x90] sm:$0xff] }
 0x1d2   : > { %v1301_v49 = vpop.permute.xlu1 %1300 }
 0x1d3   : > { %1387 = vst.msk [vmem:[#allocation3 + $0x28] sm:$0xf] %vm1376_vm7, %v1301_v49  ;;  %1555 = vrot.lane.b32.xlu0 %v3583_v48, %s3072_s28  ;;  %v3916_v48 = vpack.c.bf16 %v1435_v0, %v1435_v0  ;;  %v1675_v49 = vpack.c.bf16 %v1643_v44, %v1643_v44 }
 0x1d5   : > { %v1311_v53 = vpop.permute.xlu0 %1310 }
 0x1d6   : > { %1392 = vst.msk [vmem:[#allocation3 + $0x3c] sm:$0xf] %vm1376_vm7, %v1311_v53  ;;  %1547 = vrot.lane.b32.xlu2 %v3898_v51, %s3072_s28  ;;  %v1639_v53 = vld [vmem:[#allocation2 + $0x60] sm:$0xff] }
 0x1d8   : > { %1551 = vrot.lane.b32.xlu1 %v3903_v23, %s3072_s28  ;;  %v1321_v29 = vpop.permute.xlu2 %1320 }
 0x1d9   : > { %1397 = vst.msk [vmem:[#allocation3 + $0x50] sm:$0xf] %vm1376_vm7, %v1321_v29  ;;  %v1641_v29 = vld [vmem:[#allocation2 + $0x78] sm:$0xff] }
 0x1da   : > { %v1307_v4 = vpop.permute.xlu1 %1306  ;;  %v1673_v12 = vpack.c.bf16 %v1641_v29, %v1641_v29 }
 0x1db   : > { %1390 = vst.msk [vmem:[#allocation3 + $0x34] sm:$0xf] %vm1376_vm7, %v1307_v4  ;;  %1561 = vrot.lane.b32.xlu0 %v3598_v63, %s3072_s28  ;;  %v1671_v4 = vpack.c.bf16 %v1639_v53, %v1639_v53 }
 0x1dd   : > { %v1317_v50 = vpop.permute.xlu0 %1316 }
 0x1de   : > { %1395 = vst.msk [vmem:[#allocation3 + $0x48] sm:$0xf] %vm1376_vm7, %v1317_v50  ;;  %1553 = vrot.lane.b32.xlu2 %v3911_v5, %s3072_s28  ;;  %v1646_v50 = vld [vmem:[#allocation2 + $0xb0] sm:$0xff] }
 0x1e0   : > { %1557 = vrot.lane.b32.xlu1 %v3916_v48, %s3072_s28  ;;  %v1327_v18 = vpop.permute.xlu2 %1326 }
 0x1e1   : > { %1400 = vst.msk [vmem:[#allocation3 + $0x5c] sm:$0xf] %vm1376_vm7, %v1327_v18  ;;  %v1678_v18 = vpack.c.bf16 %v1646_v50, %v1646_v50 }
 0x1e2   : > { %v1313_v63 = vpop.permute.xlu1 %1312 }
 0x1e3   : > { %1393 = vst.msk [vmem:[#allocation3 + $0x40] sm:$0xf] %vm1376_vm7, %v1313_v63  ;;  %1567 = vrot.lane.b32.xlu0 %v3921_v24, %s3072_s28 }
 0x1e5   : > { %v1323_v47 = vpop.permute.xlu0 %1322 }
 0x1e6   : > { %1398 = vst.msk [vmem:[#allocation3 + $0x54] sm:$0xf] %vm1376_vm7, %v1323_v47  ;;  %1559 = vrot.lane.b32.xlu2 %v3926_v9, %s3072_s28 }
 0x1e8   : > { %1563 = vrot.lane.b32.xlu1 %v3931_v62, %s3072_s28  ;;  %v1333_v19 = vpop.permute.xlu2 %1332 }
 0x1e9   : > { %1403 = vst.msk [vmem:[#allocation3 + $0x68] sm:$0xf] %vm1376_vm7, %v1333_v19  ;;  %v1649_v19 = vld [vmem:[#allocation2 + $0xd8] sm:$0xff] }
 0x1ea   : > { %v1319_v54 = vpop.permute.xlu1 %1318 }
 0x1eb   : > { %1396 = vst.msk [vmem:[#allocation3 + $0x4c] sm:$0xf] %vm1376_vm7, %v1319_v54  ;;  %1735 = vrot.lane.b32.xlu0 %v1669_v13, %s3073_s29  ;;  %v1674_v13 = vpack.c.bf16 %v1642_v34, %v1642_v34  ;;  %v1681_v54 = vpack.c.bf16 %v1649_v19, %v1649_v19 }
 0x1ed   : > { %v1329_v41 = vpop.permute.xlu0 %1328 }
 0x1ee   : > { %1401 = vst.msk [vmem:[#allocation3 + $0x60] sm:$0xf] %vm1376_vm7, %v1329_v41  ;;  %1565 = vrot.lane.b32.xlu2 %v3939_v14, %s3072_s28  ;;  %v1647_v41 = vld [vmem:[#allocation2 + $0xc0] sm:$0xff]  ;;  %s2660_s28 = scalar_lea.hbm %s4294_s4, %s2845_s20 }
 0x1f0   : > { %1731 = vrot.lane.b32.xlu1 %v1667_v26, %s3073_s29  ;;  %v1339_v52 = vpop.permute.xlu2 %1338  ;;  %v1645_v26 = vld [vmem:[#allocation2 + $0xa8] sm:$0xff] }
 0x1f1   : > { %1406 = vst.msk [vmem:[#allocation3 + $0x74] sm:$0xf] %vm1376_vm7, %v1339_v52  ;;  %v1677_v31 = vpack.c.bf16 %v1645_v26, %v1645_v26  ;;  %v1679_v52 = vpack.c.bf16 %v1647_v41, %v1647_v41  ;;  %v1661_v41 = vld [vmem:[#allocation2 + $0x168] sm:$0xff] }
 0x1f2   : > { %v1325_v46 = vpop.permute.xlu1 %1324 }
 0x1f3   : > { %1399 = vst.msk [vmem:[#allocation3 + $0x58] sm:$0xf] %vm1376_vm7, %v1325_v46  ;;  %1741 = vrot.lane.b32.xlu0 %v1672_v6, %s3073_s29 }
 0x1f5   : > { %v1335_v39 = vpop.permute.xlu0 %1334 }
 0x1f6   : > { %1404 = vst.msk [vmem:[#allocation3 + $0x6c] sm:$0xf] %vm1376_vm7, %v1335_v39  ;;  %1733 = vrot.lane.b32.xlu2 %v1668_v40, %s3073_s29  ;;  %v1684_v40 = vpack.c.bf16 %v1652_v35, %v1652_v35  ;;  %v1650_v39 = vld [vmem:[#allocation2 + $0xe0] sm:$0xff] }
 0x1f8   : > { %1737 = vrot.lane.b32.xlu1 %v1670_v42, %s3073_s29  ;;  %v1506_v57 = vpop.permute.xlu2 %1505  ;;  %v1648_v42 = vld [vmem:[#allocation2 + $0xc8] sm:$0xff] }
 0x1f9   : > { %1602 = vst.msk [vmem:[#allocation3] sm:$0xf] %vm1601_vm8, %v1506_v57  ;;  %v1680_v53 = vpack.c.bf16 %v1648_v42, %v1648_v42  ;;  %v1682_v57 = vpack.c.bf16 %v1650_v39, %v1650_v39 }
 0x1fa   : > { %v1331_v0 = vpop.permute.xlu1 %1330 }
 0x1fb   : > { %1402 = vst.msk [vmem:[#allocation3 + $0x64] sm:$0xf] %vm1376_vm7, %v1331_v0  ;;  %1747 = vrot.lane.b32.xlu0 %v1675_v49, %s3073_s29  ;;  %v1651_v0 = vld [vmem:[#allocation2 + $0xf0] sm:$0xff] }
 0x1fd   : > { %v1341_v8 = vpop.permute.xlu0 %1340 }
 0x1fe   : > { %1407 = vst.msk [vmem:[#allocation3 + $0x78] sm:$0xf] %vm1376_vm7, %v1341_v8  ;;  %1739 = vrot.lane.b32.xlu2 %v1671_v4, %s3073_s29  ;;  %v1683_v8 = vpack.c.bf16 %v1651_v0, %v1651_v0 }
 0x200   : > { %1743 = vrot.lane.b32.xlu1 %v1673_v12, %s3073_s29  ;;  %v1512_v63 = vpop.permute.xlu2 %1511  ;;  %v1659_v12 = vld [vmem:[#allocation2 + $0x150] sm:$0xff] }
 0x201   : > { %1605 = vst.msk [vmem:[#allocation3 + $0xc] sm:$0xf] %vm1601_vm8, %v1512_v63  ;;  %v1660_v63 = vld [vmem:[#allocation2 + $0x158] sm:$0xff] }
 0x202   : > { %v1337_v47 = vpop.permute.xlu1 %1336 }
 0x203   : > { %1405 = vst.msk [vmem:[#allocation3 + $0x70] sm:$0xf] %vm1376_vm7, %v1337_v47  ;;  %1753 = vrot.lane.b32.xlu0 %v1678_v18, %s3073_s29  ;;  %v1691_v18 = vpack.c.bf16 %v1659_v12, %v1659_v12  ;;  %v2111_v12 = vld [vmem:[#allocation2 + $0x16a] sm:$0xff] }
 0x205   : > { %v1508_v59 = vpop.permute.xlu0 %1507 }
 0x206   : > { %1603 = vst.msk [vmem:[#allocation3 + $0x4] sm:$0xf] %vm1601_vm8, %v1508_v59  ;;  %1745 = vrot.lane.b32.xlu2 %v1674_v13, %s3073_s29  ;;  %v1692_v13 = vpack.c.bf16 %v1660_v63, %v1660_v63  ;;  %v1871_v63 = vld [vmem:[#allocation2 + $0xb1] sm:$0xff] }
 0x208   : > { %1749 = vrot.lane.b32.xlu1 %v1676_v17, %s3073_s29  ;;  %v1518_v56 = vpop.permute.xlu2 %1517 }
 0x209   : > { %1608 = vst.msk [vmem:[#allocation3 + $0x18] sm:$0xf] %vm1601_vm8, %v1518_v56 }
 0x20a   : > { %v1343_v6 = vpop.permute.xlu1 %1342 }
 0x20b   : > { %1408 = vst.msk [vmem:[#allocation3 + $0x7c] sm:$0xf] %vm1376_vm7, %v1343_v6  ;;  %1759 = vrot.lane.b32.xlu0 %v1681_v54, %s3073_s29  ;;  %v2093_v6 = vld [vmem:[#allocation2 + $0x92] sm:$0xff] }
 0x20c   : > { %v2125_v35 = vpack.c.bf16 %v2093_v6, %v2093_v6  ;;  %v1663_v6 = vld [vmem:[#allocation2 + $0x180] sm:$0xff] }
 0x20d   : > { %v1514_v46 = vpop.permute.xlu0 %1513 }
 0x20e   : > { %1606 = vst.msk [vmem:[#allocation3 + $0x10] sm:$0xf] %vm1601_vm8, %v1514_v46  ;;  %1751 = vrot.lane.b32.xlu2 %v1677_v31, %s3073_s29  ;;  %v1653_v31 = vld [vmem:[#allocation2 + $0x108] sm:$0xff] }
 0x210   : > { %1755 = vrot.lane.b32.xlu1 %v1679_v52, %s3073_s29  ;;  %v1524_v44 = vpop.permute.xlu2 %1523 }
 0x211   : > { %1611 = vst.msk [vmem:[#allocation3 + $0x24] sm:$0xf] %vm1601_vm8, %v1524_v44 }
 0x212   : > { %v1510_v49 = vpop.permute.xlu1 %1509 }
 0x213   : > { %1604 = vst.msk [vmem:[#allocation3 + $0x8] sm:$0xf] %vm1601_vm8, %v1510_v49  ;;  %1765 = vrot.lane.b32.xlu0 %v1684_v40, %s3073_s29  ;;  %v1662_v40 = vld [vmem:[#allocation2 + $0x170] sm:$0xff] }
 0x214   : > { %v1694_v39 = vpack.c.bf16 %v1662_v40, %v1662_v40 }
 0x215   : > { %v1520_v29 = vpop.permute.xlu0 %1519 }
 0x216   : > { %1609 = vst.msk [vmem:[#allocation3 + $0x1c] sm:$0xf] %vm1601_vm8, %v1520_v29  ;;  %1757 = vrot.lane.b32.xlu2 %v1680_v53, %s3073_s29 }
 0x218   : > { %1761 = vrot.lane.b32.xlu1 %v1682_v57, %s3073_s29  ;;  %v1530_v4 = vpop.permute.xlu2 %1529 }
 0x219   : > { %1614 = vst.msk [vmem:[#allocation3 + $0x30] sm:$0xf] %vm1601_vm8, %v1530_v4  ;;  %v1870_v4 = vld [vmem:[#allocation2 + $0xa9] sm:$0xff] }
 0x21a   : > { %v1516_v50 = vpop.permute.xlu1 %1515 }
 0x21b   : > { %1607 = vst.msk [vmem:[#allocation3 + $0x14] sm:$0xf] %vm1601_vm8, %v1516_v50  ;;  %1988 = vrot.lane.b32.xlu0 %v3749_v27, %s3074_s30  ;;  %v1862_v50 = vld [vmem:[#allocation2 + $0x49] sm:$0xff] }
 0x21d   : > { %v1526_v34 = vpop.permute.xlu0 %1525 }
 0x21e   : > { %1612 = vst.msk [vmem:[#allocation3 + $0x28] sm:$0xf] %vm1601_vm8, %v1526_v34  ;;  %1763 = vrot.lane.b32.xlu2 %v1683_v8, %s3073_s29 }
 0x220   : > { %1779 = vrot.lane.b32.xlu1 %v1691_v18, %s3073_s29  ;;  %v1536_v30 = vpop.permute.xlu2 %1535  ;;  %v2143_v18 = vpack.c.bf16 %v2111_v12, %v2111_v12 }
 0x221   : > { %1617 = vst.msk [vmem:[#allocation3 + $0x3c] sm:$0xf] %vm1601_vm8, %v1536_v30 }
 0x222   : > { %v1522_v47 = vpop.permute.xlu1 %1521 }
 0x223   : > { %1610 = vst.msk [vmem:[#allocation3 + $0x20] sm:$0xf] %vm1601_vm8, %v1522_v47  ;;  %2006 = vrot.lane.b32.xlu0 %v3779_v22, %s3074_s30  ;;  %v2102_v22 = vld [vmem:[#allocation2 + $0xfa] sm:$0xff] }
 0x224   : > { %v2134_v26 = vpack.c.bf16 %v2102_v22, %v2102_v22 }
 0x225   : > { %v1532_v27 = vpop.permute.xlu0 %1531 }
 0x226   : > { %1615 = vst.msk [vmem:[#allocation3 + $0x34] sm:$0xf] %vm1601_vm8, %v1532_v27  ;;  %1781 = vrot.lane.b32.xlu2 %v1692_v13, %s3073_s29  ;;  %v1903_v13 = vpack.c.bf16 %v1871_v63, %v1871_v63  ;;  %v1655_v27 = vld [vmem:[#allocation2 + $0x120] sm:$0xff] }
 0x228   : > { %1990 = vrot.lane.b32.xlu1 %v3765_v55, %s3074_s30  ;;  %v1542_v17 = vpop.permute.xlu2 %1541 }
 0x229   : > { %1620 = vst.msk [vmem:[#allocation3 + $0x48] sm:$0xf] %vm1601_vm8, %v1542_v17 }
 0x22a   : > { %v1528_v19 = vpop.permute.xlu1 %1527 }
 0x22b   : > { %1613 = vst.msk [vmem:[#allocation3 + $0x2c] sm:$0xf] %vm1601_vm8, %v1528_v19  ;;  %2229 = vrot.lane.b32.xlu0 %v3916_v48, %s3075_s5  ;;  %v1687_v19 = vpack.c.bf16 %v1655_v27, %v1655_v27 }
 0x22d   : > { %v1538_v59 = vpop.permute.xlu0 %1537 }
 0x22e   : > { %1618 = vst.msk [vmem:[#allocation3 + $0x40] sm:$0xf] %vm1601_vm8, %v1538_v59  ;;  %2004 = vrot.lane.b32.xlu2 %v3792_v20, %s3074_s30 }
 0x230   : > { %2213 = vrot.lane.b32.xlu1 %v3885_v11, %s3075_s5  ;;  %v1548_v55 = vpop.permute.xlu2 %1547 }
 0x231   : > { %1623 = vst.msk [vmem:[#allocation3 + $0x54] sm:$0xf] %vm1601_vm8, %v1548_v55  ;;  %v1664_v55 = vld [vmem:[#allocation2 + $0x188] sm:$0xff] }
 0x232   : > { %v1534_v54 = vpop.permute.xlu1 %1533 }
 0x233   : > { %1616 = vst.msk [vmem:[#allocation3 + $0x38] sm:$0xf] %vm1601_vm8, %v1534_v54  ;;  %1958 = vrot.lane.b32.xlu0 %v3707_v2, %s3074_s30 }
 0x235   : > { %v1544_v48 = vpop.permute.xlu0 %1543 }
 0x236   : > { %1621 = vst.msk [vmem:[#allocation3 + $0x4c] sm:$0xf] %vm1601_vm8, %v1544_v48  ;;  %2215 = vrot.lane.b32.xlu2 %v2134_v26, %s3075_s5 }
 0x238   : > { %2231 = vrot.lane.b32.xlu1 %v3926_v9, %s3075_s5  ;;  %v1554_v20 = vpop.permute.xlu2 %1553 }
 0x239   : > { %1626 = vst.msk [vmem:[#allocation3 + $0x60] sm:$0xf] %vm1601_vm8, %v1554_v20  ;;  %v1696_v20 = vpack.c.bf16 %v1664_v55, %v1664_v55 }
 0x23a   : > { %v1540_v11 = vpop.permute.xlu1 %1539 }
 0x23b   : > { %1619 = vst.msk [vmem:[#allocation3 + $0x44] sm:$0xf] %vm1601_vm8, %v1540_v11  ;;  %2181 = vrot.lane.b32.xlu0 %v3822_v3, %s3075_s5  ;;  %v2096_v11 = vld [vmem:[#allocation2 + $0xb2] sm:$0xff] }
 0x23d   : > { %v1550_v56 = vpop.permute.xlu0 %1549 }
 0x23e   : > { %1624 = vst.msk [vmem:[#allocation3 + $0x58] sm:$0xf] %vm1601_vm8, %v1550_v56  ;;  %1956 = vrot.lane.b32.xlu2 %v3718_v10, %s3074_s30  ;;  %v1693_v10 = vpack.c.bf16 %v1661_v41, %v1661_v41 }
 0x240   : > { %1972 = vrot.lane.b32.xlu1 %v3735_v25, %s3074_s30  ;;  %v1560_v2 = vpop.permute.xlu2 %1559 }
 0x241   : > { %1629 = vst.msk [vmem:[#allocation3 + $0x6c] sm:$0xf] %vm1601_vm8, %v1560_v2 }
 0x242   : > { %v1546_v9 = vpop.permute.xlu1 %1545 }
 0x243   : > { %1622 = vst.msk [vmem:[#allocation3 + $0x50] sm:$0xf] %vm1601_vm8, %v1546_v9  ;;  %2199 = vrot.lane.b32.xlu0 %v3855_v1, %s3075_s5  ;;  %v1685_v1 = vpack.c.bf16 %v1653_v31, %v1653_v31  ;;  %v1656_v9 = vld [vmem:[#allocation2 + $0x128] sm:$0xff] }
 0x245   : > { %v1556_v3 = vpop.permute.xlu0 %1555 }
 0x246   : > { %1627 = vst.msk [vmem:[#allocation3 + $0x64] sm:$0xf] %vm1601_vm8, %v1556_v3  ;;  %1974 = vrot.lane.b32.xlu2 %v3742_v33, %s3074_s30  ;;  %v1654_v33 = vld [vmem:[#allocation2 + $0x110] sm:$0xff]  ;;  %v2128_v3 = vpack.c.bf16 %v2096_v11, %v2096_v11 }
 0x247   : > { %v1686_v44 = vpack.c.bf16 %v1654_v33, %v1654_v33 }
 0x248   : > { %2183 = vrot.lane.b32.xlu1 %v3829_v58, %s3075_s5  ;;  %v1566_v25 = vpop.permute.xlu2 %1565 }
 0x249   : > { %1632 = vst.msk [vmem:[#allocation3 + $0x78] sm:$0xf] %vm1601_vm8, %v1566_v25  ;;  %v2843_v25 = vld [vmem:[%s4291_s1] sm:$0xff] }
 0x24a   : > { %v1552_v52 = vpop.permute.xlu1 %1551 }
 0x24b   : > { %1625 = vst.msk [vmem:[#allocation3 + $0x5c] sm:$0xf] %vm1601_vm8, %v1552_v52  ;;  %1783 = vrot.lane.b32.xlu0 %v1693_v10, %s3073_s29  ;;  %v1880_v52 = vld [vmem:[#allocation2 + $0x121] sm:$0xff] }
 0x24d   : > { %v1562_v46 = vpop.permute.xlu0 %1561 }
 0x24e   : > { %1630 = vst.msk [vmem:[#allocation3 + $0x70] sm:$0xf] %vm1601_vm8, %v1562_v46  ;;  %2197 = vrot.lane.b32.xlu2 %v2125_v35, %s3075_s5  ;;  %v1912_v46 = vpack.c.bf16 %v1880_v52, %v1880_v52 }
 0x250   : > { %1767 = vrot.lane.b32.xlu1 %v1685_v1, %s3073_s29  ;;  %v1734_v58 = vpop.permute.xlu2 %1733  ;;  %v1695_v1 = vpack.c.bf16 %v1663_v6, %v1663_v6  ;;  %v1890_v6 = vld [vmem:[#allocation2 + $0x199] sm:$0xff] }
 0x251   : > { %1829 = vst.msk [vmem:[#allocation3 + $0x4] sm:$0xf] %vm1827_vm9, %v1734_v58  ;;  %v1881_v58 = vld [vmem:[#allocation2 + $0x129] sm:$0xff]  ;;  %v1922_v52 = vpack.c.bf16 %v1890_v6, %v1890_v6 }
 0x252   : > { %v1558_v42 = vpop.permute.xlu1 %1557 }
 0x253   : > { %1628 = vst.msk [vmem:[#allocation3 + $0x68] sm:$0xf] %vm1601_vm8, %v1558_v42  ;;  %1994 = vrot.lane.b32.xlu0 %v3758_v45, %s3074_s30 }
 0x255   : > { %v1568_v49 = vpop.permute.xlu0 %1567 }
 0x256   : > { %1633 = vst.msk [vmem:[#allocation3 + $0x7c] sm:$0xf] %vm1601_vm8, %v1568_v49  ;;  %1769 = vrot.lane.b32.xlu2 %v1686_v44, %s3073_s29  ;;  %v1913_v44 = vpack.c.bf16 %v1881_v58, %v1881_v58 }
 0x258   : > { %1785 = vrot.lane.b32.xlu1 %v1694_v39, %s3073_s29  ;;  %v1740_v53 = vpop.permute.xlu2 %1739 }
 0x259   : > { %1832 = vst.msk [vmem:[#allocation3 + $0x10] sm:$0xf] %vm1827_vm9, %v1740_v53  ;;  %v2105_v53 = vld [vmem:[#allocation2 + $0x122] sm:$0xff] }
 0x25a   : > { %v1564_v57 = vpop.permute.xlu1 %1563 }
 0x25b   : > { %1631 = vst.msk [vmem:[#allocation3 + $0x74] sm:$0xf] %vm1601_vm8, %v1564_v57  ;;  %2217 = vrot.lane.b32.xlu0 %v3890_v60, %s3075_s5 }
 0x25d   : > { %v1736_v29 = vpop.permute.xlu0 %1735 }
 0x25e   : > { %1830 = vst.msk [vmem:[#allocation3 + $0x8] sm:$0xf] %vm1827_vm9, %v1736_v29  ;;  %1992 = vrot.lane.b32.xlu2 %v3772_v7, %s3074_s30  ;;  %v1902_v7 = vpack.c.bf16 %v1870_v4, %v1870_v4 }
 0x260   : > { %2008 = vrot.lane.b32.xlu1 %v3797_v38, %s3074_s30  ;;  %v1746_v45 = vpop.permute.xlu2 %1745 }
 0x261   : > { %1835 = vst.msk [vmem:[#allocation3 + $0x1c] sm:$0xf] %vm1827_vm9, %v1746_v45  ;;  %v2137_v45 = vpack.c.bf16 %v2105_v53, %v2105_v53  ;;  %v1866_v53 = vld [vmem:[#allocation2 + $0x79] sm:$0xff] }
 0x262   : > { %v1732_v0 = vpop.permute.xlu1 %1731 }
 0x263   : > { %1828 = vst.msk [vmem:[#allocation3] sm:$0xf] %vm1827_vm9, %v1732_v0  ;;  %2235 = vrot.lane.b32.xlu0 %v3931_v62, %s3075_s5  ;;  %v1894_v62 = vpack.c.bf16 %v1862_v50, %v1862_v50  ;;  %v1872_v50 = vld [vmem:[#allocation2 + $0xc1] sm:$0xff] }
 0x265   : > { %v1742_v60 = vpop.permute.xlu0 %1741 }
 0x266   : > { %1833 = vst.msk [vmem:[#allocation3 + $0x14] sm:$0xf] %vm1827_vm9, %v1742_v60  ;;  %2010 = vrot.lane.b32.xlu2 %v3805_v32, %s3074_s30  ;;  %v1863_v32 = vld [vmem:[#allocation2 + $0x51] sm:$0xff]  ;;  %v1865_v60 = vld [vmem:[#allocation2 + $0x69] sm:$0xff] }
 0x267   : > { %v1895_v47 = vpack.c.bf16 %v1863_v32, %v1863_v32  ;;  %v1897_v12 = vpack.c.bf16 %v1865_v60, %v1865_v60 }
 0x268   : > { %2219 = vrot.lane.b32.xlu1 %v3898_v51, %s3075_s5  ;;  %v1752_v38 = vpop.permute.xlu2 %1751 }
 0x269   : > { %1838 = vst.msk [vmem:[#allocation3 + $0x28] sm:$0xf] %vm1827_vm9, %v1752_v38 }
 0x26a   : > { %v1738_v8 = vpop.permute.xlu1 %1737 }
 0x26b   : > { %1831 = vst.msk [vmem:[#allocation3 + $0xc] sm:$0xf] %vm1827_vm9, %v1738_v8  ;;  %1976 = vrot.lane.b32.xlu0 %v1902_v7, %s3074_s30 }
 0x26d   : > { %v1748_v34 = vpop.permute.xlu0 %1747 }
 0x26e   : > { %1836 = vst.msk [vmem:[#allocation3 + $0x20] sm:$0xf] %vm1827_vm9, %v1748_v34  ;;  %2233 = vrot.lane.b32.xlu2 %v2143_v18, %s3075_s5  ;;  %v1658_v34 = vld [vmem:[#allocation2 + $0x140] sm:$0xff] }
 0x270   : > { %1960 = vrot.lane.b32.xlu1 %v1894_v62, %s3074_s30  ;;  %v1758_v51 = vpop.permute.xlu2 %1757  ;;  %v1904_v62 = vpack.c.bf16 %v1872_v50, %v1872_v50  ;;  %v2092_v50 = vld [vmem:[#allocation2 + $0x82] sm:$0xff] }
 0x271   : > { %1841 = vst.msk [vmem:[#allocation3 + $0x34] sm:$0xf] %vm1827_vm9, %v1758_v51  ;;  %v2090_v51 = vld [vmem:[#allocation2 + $0x6a] sm:$0xff] }
 0x272   : > { %v1744_v30 = vpop.permute.xlu1 %1743 }
 0x273   : > { %1834 = vst.msk [vmem:[#allocation3 + $0x18] sm:$0xf] %vm1827_vm9, %v1744_v30  ;;  %2187 = vrot.lane.b32.xlu0 %v3834_v61, %s3075_s5  ;;  %v2346_v61 = vld [vmem:[%s4291_s1 + $0x10] sm:$0x3] }
 0x274   : > { %v2436_v54 = vunpack.c.l.b16 %v2346_v61 }
 0x275   : > { %v1754_v17 = vpop.permute.xlu0 %1753 }
 0x276   : > { %1839 = vst.msk [vmem:[#allocation3 + $0x2c] sm:$0xf] %vm1827_vm9, %v1754_v17  ;;  %1962 = vrot.lane.b32.xlu2 %v1895_v47, %s3074_s30  ;;  %v2439_v48 = vpack.c.b16 %v2436_v54, %v2436_v54  ;;  %v1657_v17 = vld [vmem:[#allocation2 + $0x138] sm:$0xff]  ;;  %v1891_v54 = vld [vmem:[#allocation2 + $0x1a1] sm:$0xff] }
 0x277   : > { %v1689_v61 = vpack.c.bf16 %v1657_v17, %v1657_v17 }
 0x278   : > { %1978 = vrot.lane.b32.xlu1 %v1903_v13, %s3074_s30  ;;  %v1764_v59 = vpop.permute.xlu2 %1763  ;;  %v2493_v2 = vsel %vm2491_vm10, %v2439_v48, 0  ;;  %v2122_v13 = vpack.c.bf16 %v2090_v51, %v2090_v51 }
 0x279   : > { %1844 = vst.msk [vmem:[#allocation3 + $0x40] sm:$0xf] %vm1827_vm9, %v1764_v59  ;;  %2942 = vmatpush.bf16.msra.mxu2 %v2493_v2  ;;  %2943 = vmatpush.bf16.msra.mxu3 %v2493_v2  ;;  %v1665_v59 = vld [vmem:[#allocation2 + $0x198] sm:$0xff] }
 0x27a   : > { %v1750_v22 = vpop.permute.xlu1 %1749  ;;  %2941 = vmatpush.bf16.msra.mxu1 %v2493_v2  ;;  %2500 = vmatpush.bf16.msra.mxu0 %v2493_v2  ;;  %v1697_v55 = vpack.c.bf16 %v1665_v59, %v1665_v59 }
 0x27b   : > { %1837 = vst.msk [vmem:[#allocation3 + $0x24] sm:$0xf] %vm1827_vm9, %v1750_v22  ;;  %1771 = vrot.lane.b32.xlu0 %v1687_v19, %s3073_s29 }
 0x27d   : > { %v1760_v26 = vpop.permute.xlu0 %1759 }
 0x27e   : > { %1842 = vst.msk [vmem:[#allocation3 + $0x38] sm:$0xf] %vm1827_vm9, %v1760_v26  ;;  %2185 = vrot.lane.b32.xlu2 %v3814_v36, %s3075_s5  ;;  %v2844_v36 = vld [vmem:[%s4291_s1 + $0x8] sm:$0xff] }
 0x27f   : > { %2945 = vmatpush.bf16.msra.mxu2 %v2844_v36  ;;  %2946 = vmatpush.bf16.msra.mxu3 %v2844_v36 }
 0x280   : > { %2201 = vrot.lane.b32.xlu1 %v3862_v43, %s3075_s5  ;;  %v1782_v56 = vpop.permute.xlu2 %1781  ;;  %v1688_v43 = vpack.c.bf16 %v1656_v9, %v1656_v9  ;;  %2944 = vmatpush.bf16.msra.mxu1 %v2844_v36 }
 0x281   : > { %1853 = vst.msk [vmem:[#allocation3 + $0x64] sm:$0xf] %vm1827_vm9, %v1782_v56  ;;  %2501 = vmatpush.bf16.msra.mxu0 %v2844_v36  ;;  %v1883_v56 = vld [vmem:[#allocation2 + $0x141] sm:$0xff] }
 0x282   : > { %v1756_v41 = vpop.permute.xlu1 %1755  ;;  %v2115_v36 = vld [vmem:[#allocation2 + $0x19a] sm:$0xff] }
 0x283   : > { %1840 = vst.msk [vmem:[#allocation3 + $0x30] sm:$0xf] %vm1827_vm9, %v1756_v41  ;;  %1789 = vrot.lane.b32.xlu0 %v1696_v20, %s3073_s29  ;;  %2948 = vmatpush.bf16.msra.mxu2 %v2843_v25  ;;  %v1923_v20 = vpack.c.bf16 %v1891_v54, %v1891_v54 }
 0x284   : > { %2949 = vmatpush.bf16.msra.mxu3 %v2843_v25  ;;  %2947 = vmatpush.bf16.msra.mxu1 %v2843_v25 }
 0x285   : > { %v1766_v10 = vpop.permute.xlu0 %1765  ;;  %2502 = vmatpush.bf16.msra.mxu0 %v2843_v25 }
 0x286   : > { %1845 = vst.msk [vmem:[#allocation3 + $0x44] sm:$0xf] %vm1827_vm9, %v1766_v10  ;;  %2203 = vrot.lane.b32.xlu2 %v2128_v3, %s3075_s5  ;;  %v1915_v3 = vpack.c.bf16 %v1883_v56, %v1883_v56  ;;  %v2147_v10 = vpack.c.bf16 %v2115_v36, %v2115_v36 }
 0x288   : > { %1773 = vrot.lane.b32.xlu1 %v1688_v43, %s3073_s29  ;;  %v2005_v31 = vpop.permute.xlu2 %2004 }
 0x28a   : > { %v1762_v35 = vpop.permute.xlu1 %1761 }
 0x28b   : > { %1843 = vst.msk [vmem:[#allocation3 + $0x3c] sm:$0xf] %vm1827_vm9, %v1762_v35  ;;  %2012 = vrot.lane.b32.xlu0 %v3788_v15, %s3074_s30  ;;  %v1864_v15 = vld [vmem:[#allocation2 + $0x61] sm:$0xff] }
 0x28c   : > { %v1896_v49 = vpack.c.bf16 %v1864_v15, %v1864_v15  ;;  %v1867_v35 = vld [vmem:[#allocation2 + $0x81] sm:$0xff] }
 0x28d   : > { %v1989_v33 = vpop.permute.xlu0 %1988 }
 0x28e   : > { %2069 = vst.msk [vmem:[#allocation3 + $0x40] sm:$0xf] %vm2052_vm11, %v1989_v33  ;;  %1787 = vrot.lane.b32.xlu2 %v1695_v1, %s3073_s29  ;;  %v2108_v33 = vld [vmem:[#allocation2 + $0x142] sm:$0xff] }
 0x290   : > { %1996 = vrot.lane.b32.xlu1 %v1912_v46, %s3074_s30  ;;  %v2216_v40 = vpop.permute.xlu2 %2215  ;;  %v1899_v46 = vpack.c.bf16 %v1867_v35, %v1867_v35 }
 0x292   : > { %v1780_v42 = vpop.permute.xlu1 %1779 }
 0x293   : > { %1852 = vst.msk [vmem:[#allocation3 + $0x60] sm:$0xf] %vm1827_vm9, %v1780_v42  ;;  %2223 = vrot.lane.b32.xlu0 %v3903_v23, %s3075_s5  ;;  %v1873_v23 = vld [vmem:[#allocation2 + $0xc9] sm:$0xff] }
 0x294   : > { %2077 = vst.msk [vmem:[#allocation3 + $0x60] sm:$0xf] %vm2052_vm11, %v2005_v31  ;;  %v1905_v4 = vpack.c.bf16 %v1873_v23, %v1873_v23  ;;  %v1898_v23 = vpack.c.bf16 %v1866_v53, %v1866_v53 }
 0x295   : > { %v2007_v39 = vpop.permute.xlu0 %2006 }
 0x296   : > { %2078 = vst.msk [vmem:[#allocation3 + $0x64] sm:$0xf] %vm2052_vm11, %v2007_v39  ;;  %1998 = vrot.lane.b32.xlu2 %v1913_v44, %s3074_s30  ;;  %v2140_v44 = vpack.c.bf16 %v2108_v33, %v2108_v33  ;;  %v2091_v39 = vld [vmem:[#allocation2 + $0x7a] sm:$0xff] }
 0x298   : > { %2014 = vrot.lane.b32.xlu1 %v3809_v16, %s3074_s30  ;;  %v1957_v57 = vpop.permute.xlu2 %1956 }
 0x299   : > { %2053 = vst.msk [vmem:[#allocation3] sm:$0xf] %vm2052_vm11, %v1957_v57 }
 0x29a   : > { %v1991_v29 = vpop.permute.xlu1 %1990 }
 0x29b   : > { %2070 = vst.msk [vmem:[#allocation3 + $0x44] sm:$0xf] %vm2052_vm11, %v1991_v29  ;;  %1964 = vrot.lane.b32.xlu0 %v1896_v49, %s3074_s30  ;;  %v1874_v29 = vld [vmem:[#allocation2 + $0xd9] sm:$0xff] }
 0x29c   : > { %2295 = vst.msk [vmem:[#allocation3 + $0x44] sm:$0xf] %vm2277_vm12, %v2216_v40  ;;  %v2116_v40 = vld [vmem:[#allocation2 + $0x1a2] sm:$0xff] }
 0x29d   : > { %v2230_v0 = vpop.permute.xlu0 %2229  ;;  %v2148_v15 = vpack.c.bf16 %v2116_v40, %v2116_v40 }
 0x29e   : > { %2302 = vst.msk [vmem:[#allocation3 + $0x60] sm:$0xf] %vm2277_vm12, %v2230_v0  ;;  %2221 = vrot.lane.b32.xlu2 %v2137_v45, %s3075_s5  ;;  %v1906_v0 = vpack.c.bf16 %v1874_v29, %v1874_v29 }
 0x2a0   : > { %2237 = vrot.lane.b32.xlu1 %v3939_v14, %s3075_s5  ;;  %v1975_v16 = vpop.permute.xlu2 %1974 }
 0x2a1   : > { %2062 = vst.msk [vmem:[#allocation3 + $0x24] sm:$0xf] %vm2052_vm11, %v1975_v16 }
 0x2a2   : > { %v2214_v7 = vpop.permute.xlu1 %2213 }
 0x2a3   : > { %2294 = vst.msk [vmem:[#allocation3 + $0x40] sm:$0xf] %vm2277_vm12, %v2214_v7  ;;  %1982 = vrot.lane.b32.xlu0 %v1905_v4, %s3074_s30  ;;  %v2100_v4 = vld [vmem:[#allocation2 + $0xe2] sm:$0xff] }
 0x2a4   : > { %v2132_v7 = vpack.c.bf16 %v2100_v4, %v2100_v4 }
 0x2a5   : > { %v1959_v38 = vpop.permute.xlu0 %1958 }
 0x2a6   : > { %2054 = vst.msk [vmem:[#allocation3 + $0x4] sm:$0xf] %vm2052_vm11, %v1959_v38  ;;  %2239 = vrot.lane.b32.xlu2 %v3921_v24, %s3075_s5  ;;  %v1690_v24 = vpack.c.bf16 %v1658_v34, %v1658_v34 }
 0x2a8   : > { %1966 = vrot.lane.b32.xlu1 %v1897_v12, %s3074_s30  ;;  %v2198_v14 = vpop.permute.xlu2 %2197  ;;  %v1875_v12 = vld [vmem:[#allocation2 + $0xe1] sm:$0xff] }
 0x2aa   : > { %v2232_v8 = vpop.permute.xlu1 %2231  ;;  %v2835_v18 = vld [vmem:[#allocation3 + $0x40] sm:$0xff] }
 0x2ab   : > { %2303 = vst.msk [vmem:[#allocation3 + $0x64] sm:$0xf] %vm2277_vm12, %v2232_v8  ;;  %2205 = vrot.lane.b32.xlu0 %v3867_v21, %s3075_s5  ;;  %2813 = vmatmul.msk.bf16.vlgmr.msra.gmra.mxu2 %vm2442_vm13, %v2835_v18  ;;  %v1882_v21 = vld [vmem:[#allocation2 + $0x139] sm:$0xff]  ;;  %v1907_v18 = vpack.c.bf16 %v1875_v12, %v1875_v12 }
 0x2ad   : > { %v2182_v32 = vpop.permute.xlu0 %2181 }
 0x2ae   : > { %2278 = vst.msk [vmem:[#allocation3] sm:$0xf] %vm2277_vm12, %v2182_v32  ;;  %1980 = vrot.lane.b32.xlu2 %v1904_v62, %s3074_s30  ;;  %v2124_v62 = vpack.c.bf16 %v2092_v50, %v2092_v50  ;;  %v2099_v32 = vld [vmem:[#allocation2 + $0xda] sm:$0xff] }
 0x2b0   : > { %2189 = vrot.lane.b32.xlu1 %v3842_v37, %s3075_s5  ;;  %v1770_v63 = vpop.permute.xlu2 %1769  ;;  %v1914_v37 = vpack.c.bf16 %v1882_v21, %v1882_v21 }
 0x2b1   : > { %1847 = vst.msk [vmem:[#allocation3 + $0x4c] sm:$0xf] %vm1827_vm9, %v1770_v63  ;;  %v2131_v63 = vpack.c.bf16 %v2099_v32, %v2099_v32 }
 0x2b2   : > { %v1973_v30 = vpop.permute.xlu1 %1972  ;;  %v2839_v47 = vld [vmem:[#allocation3 + $0x60] sm:$0xff] }
 0x2b3   : > { %2061 = vst.msk [vmem:[#allocation3 + $0x20] sm:$0xf] %vm2052_vm11, %v1973_v30  ;;  %1777 = vrot.lane.b32.xlu0 %v1690_v24, %s3073_s29  ;;  %2817 = vmatmul.msk.bf16.vlgmr.msra.gmra.mxu3 %vm2442_vm13, %v2839_v47 }
 0x2b4   : > { %2286 = vst.msk [vmem:[#allocation3 + $0x20] sm:$0xf] %vm2277_vm12, %v2198_v14 }
 0x2b5   : > { %v2200_v27 = vpop.permute.xlu0 %2199 }
 0x2b6   : > { %2287 = vst.msk [vmem:[#allocation3 + $0x24] sm:$0xf] %vm2277_vm12, %v2200_v27  ;;  %2191 = vrot.lane.b32.xlu2 %v2122_v13, %s3075_s5 }
 0x2b8   : > { %2207 = vrot.lane.b32.xlu1 %v3875_v28, %s3075_s5  ;;  %v1993_v19 = vpop.permute.xlu2 %1992  ;;  %v1666_v28 = vld [vmem:[#allocation2 + $0x1a0] sm:$0xff] }
 0x2b9   : > { %v1698_v41 = vpack.c.bf16 %v1666_v28, %v1666_v28 }
 0x2ba   : > { %v2184_v22 = vpop.permute.xlu1 %2183 }
 0x2bb   : > { %2279 = vst.msk [vmem:[#allocation3 + $0x4] sm:$0xf] %vm2277_vm12, %v2184_v22  ;;  %2000 = vrot.lane.b32.xlu0 %v1914_v37, %s3074_s30 }
 0x2bd   : > { %v1784_v26 = vpop.permute.xlu0 %1783  ;;  %v2831_v48 = vld [vmem:[#allocation3 + $0x20] sm:$0xff] }
 0x2be   : > { %1854 = vst.msk [vmem:[#allocation3 + $0x68] sm:$0xf] %vm1827_vm9, %v1784_v26  ;;  %1775 = vrot.lane.b32.xlu2 %v1689_v61, %s3073_s29  ;;  %2809 = vmatmul.msk.bf16.vlgmr.msra.gmra.mxu1 %vm2442_vm13, %v2831_v48 }
 0x2c0   : > { %1791 = vrot.lane.b32.xlu1 %v1697_v55, %s3073_s29  ;;  %v2011_v11 = vpop.permute.xlu2 %2010 }
 0x2c2   : > { %v1768_v2 = vpop.permute.xlu1 %1767  ;;  %v2827_v9 = vld [vmem:[#allocation3] sm:$0xff] }
 0x2c3   : > { %1846 = vst.msk [vmem:[#allocation3 + $0x48] sm:$0xf] %vm1827_vm9, %v1768_v2  ;;  %2018 = vrot.lane.b32.xlu0 %v1923_v20, %s3074_s30  ;;  %2805 = vmatmul.msk.bf16.vlgmr.msra.gmra.mxu0 %vm2442_vm13, %v2827_v9 }
 0x2c4   : > { %2071 = vst.msk [vmem:[#allocation3 + $0x48] sm:$0xf] %vm2052_vm11, %v1993_v19 }
 0x2c5   : > { %v1995_v43 = vpop.permute.xlu0 %1994 }
 0x2c6   : > { %2072 = vst.msk [vmem:[#allocation3 + $0x4c] sm:$0xf] %vm2052_vm11, %v1995_v43  ;;  %1793 = vrot.lane.b32.xlu2 %v1698_v41, %s3073_s29  ;;  %s2661_s29 = sshll.u32 %s4221_s14, 4  ;;  %s2662_s29 = int_to_ptr.vmem [resolvable:$true] %s2661_s29 }
 0x2c8   : > { %2002 = vrot.lane.b32.xlu1 %v1915_v3, %s3074_s30  ;;  %v2234_v25 = vpop.permute.xlu2 %2233 }
 0x2ca   : > { %v1786_v31 = vpop.permute.xlu1 %1785 }
 0x2cb   : > { %1855 = vst.msk [vmem:[#allocation3 + $0x6c] sm:$0xf] %vm1827_vm9, %v1786_v31  ;;  %2241 = vrot.lane.b32.xlu0 %v2147_v10, %s3075_s5 }
 0x2cc   : > { %2080 = vst.msk [vmem:[#allocation3 + $0x6c] sm:$0xf] %vm2052_vm11, %v2011_v11 }
 0x2cd   : > { %v2218_v1 = vpop.permute.xlu0 %2217 }
 0x2ce   : > { %2296 = vst.msk [vmem:[#allocation3 + $0x48] sm:$0xf] %vm2277_vm12, %v2218_v1  ;;  %2016 = vrot.lane.b32.xlu2 %v1922_v52, %s3074_s30 }
 0x2d0   : > { %2225 = vrot.lane.b32.xlu1 %v3911_v5, %s3075_s5  ;;  %v1963_v58 = vpop.permute.xlu2 %1962  ;;  %v2123_v5 = vpack.c.bf16 %v2091_v39, %v2091_v39 }
 0x2d1   : > { %2056 = vst.msk [vmem:[#allocation3 + $0xc] sm:$0xf] %vm2052_vm11, %v1963_v58 }
 0x2d2   : > { %v2009_v42 = vpop.permute.xlu1 %2008 }
 0x2d3   : > { %2079 = vst.msk [vmem:[#allocation3 + $0x68] sm:$0xf] %vm2052_vm11, %v2009_v42  ;;  %1970 = vrot.lane.b32.xlu0 %v1899_v46, %s3074_s30 }
 0x2d4   : > { %2304 = vst.msk [vmem:[#allocation3 + $0x68] sm:$0xf] %vm2277_vm12, %v2234_v25 }
 0x2d5   : > { %v2236_v49 = vpop.permute.xlu0 %2235 }
 0x2d6   : > { %2305 = vst.msk [vmem:[#allocation3 + $0x6c] sm:$0xf] %vm2277_vm12, %v2236_v49  ;;  %2227 = vrot.lane.b32.xlu2 %v2140_v44, %s3075_s5 }
 0x2d8   : > { %2243 = vrot.lane.b32.xlu1 %v2148_v15, %s3075_s5  ;;  %v2186_v57 = vpop.permute.xlu2 %2185 }
 0x2da   : > { %v2220_v45 = vpop.permute.xlu1 %2219 }
 0x2db   : > { %2297 = vst.msk [vmem:[#allocation3 + $0x4c] sm:$0xf] %vm2277_vm12, %v2220_v45  ;;  %2193 = vrot.lane.b32.xlu0 %v2123_v5, %s3075_s5 }
 0x2dd   : > { %v1977_v16 = vpop.permute.xlu0 %1976  ;;  %v2840_v60 = vld [vmem:[#allocation3 + $0x68] sm:$0xff] }
 0x2de   : > { %2063 = vst.msk [vmem:[#allocation3 + $0x28] sm:$0xf] %vm2052_vm11, %v1977_v16  ;;  %1968 = vrot.lane.b32.xlu2 %v1898_v23, %s3074_s30  ;;  %2818 = vmatmul.msk.bf16.gmra.mxu3 %vm2442_vm13, %v2840_v60 }
 0x2e0   : > { %1984 = vrot.lane.b32.xlu1 %v1906_v0, %s3074_s30  ;;  %v2204_v38 = vpop.permute.xlu2 %2203 }
 0x2e2   : > { %v1961_v14 = vpop.permute.xlu1 %1960  ;;  %v2836_v8 = vld [vmem:[#allocation3 + $0x48] sm:$0xff] }
 0x2e3   : > { %2055 = vst.msk [vmem:[#allocation3 + $0x8] sm:$0xf] %vm2052_vm11, %v1961_v14  ;;  %2211 = vrot.lane.b32.xlu0 %v2132_v7, %s3075_s5  ;;  %2814 = vmatmul.msk.bf16.gmra.mxu2 %vm2442_vm13, %v2836_v8 }
 0x2e4   : > { %2280 = vst.msk [vmem:[#allocation3 + $0x8] sm:$0xf] %vm2277_vm12, %v2186_v57 }
 0x2e5   : > { %v2188_v34 = vpop.permute.xlu0 %2187 }
 0x2e6   : > { %2281 = vst.msk [vmem:[#allocation3 + $0xc] sm:$0xf] %vm2277_vm12, %v2188_v34  ;;  %1986 = vrot.lane.b32.xlu2 %v1907_v18, %s3074_s30  ;;  %s2663_s30 = sshll.u32 %s2660_s28, 4  ;;  %s2664_s30 = int_to_ptr.hbm [resolvable:$true] %s2663_s30 }
 0x2e7   : > { %s3017_s6 = sshra.s32 %s2664_s30, 4  ;;  %s3018_s6 = int_to_ptr.hbm [resolvable:$true] %s3017_s6 }
 0x2e8   : > { %2195 = vrot.lane.b32.xlu1 %v2124_v62, %s3075_s5  ;;  %v1788_v24 = vpop.permute.xlu2 %1787  ;;  %s3019_s19 = scalar_lea.hbm %s3018_s6, 128  ;;  %p3024_p0 = scmp.lt.s32.totalorder %s3018_s6, %s4294_s4 }
 0x2e9   : > { %1856 = vst.msk [vmem:[#allocation3 + $0x70] sm:$0xf] %vm1827_vm9, %v1788_v24  ;;  %p3020_p11 = scmp.ne.s32.totalorder %s3018_s6, %s3019_s19  ;;  %p3025_p1 = scmp.lt.s32.totalorder %s3023_s9, %s3019_s19 }
 0x2ea   : > { %v1979_v51 = vpop.permute.xlu1 %1978 }
 0x2eb   : > { %2064 = vst.msk [vmem:[#allocation3 + $0x2c] sm:$0xf] %vm2052_vm11, %v1979_v51  ;;  %p3021_p12 = pnand %p3020_p11, %p3140_p5  ;;  %p3026_p2 = por %p3025_p1, %p3024_p0 }
 0x2ec   : > { %2289 = vst.msk [vmem:[#allocation3 + $0x2c] sm:$0xf] %vm2277_vm12, %v2204_v38 }
 0x2ed   : > { %v1772_v30 = vpop.permute.xlu0 %1771  ;;  %v2828_v47 = vld [vmem:[#allocation3 + $0x8] sm:$0xff]  ;;  %p3022_p13 = pneg %p3021_p12 }
 0x2ee   : > { %1848 = vst.msk [vmem:[#allocation3 + $0x50] sm:$0xf] %vm1827_vm9, %v1772_v30  ;;  %2209 = vrot.lane.b32.xlu2 %v2131_v63, %s3075_s5  ;;  %2806 = vmatmul.msk.bf16.gmra.mxu0 %vm2442_vm13, %v2828_v47  ;;  %s2649_s5 = scalar_lea.sflag [#allocation5], %s188_s12 }
 0x2ef   : > { %p3027_p3 = pnand %p3026_p2, %p3022_p13 }
 0x2f0   : > { %v1999_v13 = vpop.permute.xlu2 %1998 }
 0x2f2   : > { %v2202_v21 = vpop.permute.xlu1 %2201 }
 0x2f3   : > { %2288 = vst.msk [vmem:[#allocation3 + $0x28] sm:$0xf] %vm2277_vm12, %v2202_v21 }
 0x2f5   : > { %v1790_v27 = vpop.permute.xlu0 %1789 }
 0x2f6   : > { %1857 = vst.msk [vmem:[#allocation3 + $0x74] sm:$0xf] %vm1827_vm9, %v1790_v27 }
 0x2f8   : > { %v2222_v37 = vpop.permute.xlu2 %2221 }
 0x2fa   : > { %v1774_v17 = vpop.permute.xlu1 %1773  ;;  %v2832_v19 = vld [vmem:[#allocation3 + $0x28] sm:$0xff] }
 0x2fb   : > { %1849 = vst.msk [vmem:[#allocation3 + $0x54] sm:$0xf] %vm1827_vm9, %v1774_v17  ;;  %2810 = vmatmul.msk.bf16.gmra.mxu1 %vm2442_vm13, %v2832_v19 }
 0x2fc   : > { %2074 = vst.msk [vmem:[#allocation3 + $0x54] sm:$0xf] %vm2052_vm11, %v1999_v13 }
 0x2fd   : > { %v2013_v59 = vpop.permute.xlu0 %2012 }
 0x2fe   : > { %2081 = vst.msk [vmem:[#allocation3 + $0x70] sm:$0xf] %vm2052_vm11, %v2013_v59 }
 0x300   : > { %v2240_v22 = vpop.permute.xlu2 %2239 }
 0x302   : > { %v1997_v61 = vpop.permute.xlu1 %1996 }
 0x303   : > { %2073 = vst.msk [vmem:[#allocation3 + $0x50] sm:$0xf] %vm2052_vm11, %v1997_v61 }
 0x304   : > { %2298 = vst.msk [vmem:[#allocation3 + $0x50] sm:$0xf] %vm2277_vm12, %v2222_v37 }
 0x305   : > { %v2224_v55 = vpop.permute.xlu0 %2223 }
 0x306   : > { %2299 = vst.msk [vmem:[#allocation3 + $0x54] sm:$0xf] %vm2277_vm12, %v2224_v55 }
 0x308   : > { %v1981_v54 = vpop.permute.xlu2 %1980 }
 0x309   : > { %2065 = vst.msk [vmem:[#allocation3 + $0x30] sm:$0xf] %vm2052_vm11, %v1981_v54 }
 0x30a   : > { %v2015_v26 = vpop.permute.xlu1 %2014 }
 0x30b   : > { %2082 = vst.msk [vmem:[#allocation3 + $0x74] sm:$0xf] %vm2052_vm11, %v2015_v26 }
 0x30c   : > { %2307 = vst.msk [vmem:[#allocation3 + $0x74] sm:$0xf] %vm2277_vm12, %v2240_v22 }
 0x30d   : > { %v1965_v48 = vpop.permute.xlu0 %1964  ;;  %v2837_v20 = vld [vmem:[#allocation3 + $0x50] sm:$0xff] }
 0x30e   : > { %2057 = vst.msk [vmem:[#allocation3 + $0x10] sm:$0xf] %vm2052_vm11, %v1965_v48  ;;  %2815 = vmatmul.msk.bf16.gmra.mxu2 %vm2442_vm13, %v2837_v20 }
 0x310   : > { %v2192_v28 = vpop.permute.xlu2 %2191 }
 0x312   : > { %v2238_v11 = vpop.permute.xlu1 %2237 }
 0x313   : > { %2306 = vst.msk [vmem:[#allocation3 + $0x70] sm:$0xf] %vm2277_vm12, %v2238_v11 }
 0x315   : > { %v1983_v56 = vpop.permute.xlu0 %1982 }
 0x316   : > { %2066 = vst.msk [vmem:[#allocation3 + $0x34] sm:$0xf] %vm2052_vm11, %v1983_v56 }
 0x318   : > { %v1776_v2 = vpop.permute.xlu2 %1775 }
 0x319   : > { %1850 = vst.msk [vmem:[#allocation3 + $0x58] sm:$0xf] %vm1827_vm9, %v1776_v2 }
 0x31a   : > { %v1967_v9 = vpop.permute.xlu1 %1966  ;;  %v2841_v41 = vld [vmem:[#allocation3 + $0x70] sm:$0xff] }
 0x31b   : > { %2058 = vst.msk [vmem:[#allocation3 + $0x14] sm:$0xf] %vm2052_vm11, %v1967_v9  ;;  %2819 = vmatmul.msk.bf16.gmra.mxu3 %vm2442_vm13, %v2841_v41 }
 0x31c   : > { %2283 = vst.msk [vmem:[#allocation3 + $0x14] sm:$0xf] %vm2277_vm12, %v2192_v28 }
 0x31d   : > { %v2206_v3 = vpop.permute.xlu0 %2205 }
 0x31e   : > { %2290 = vst.msk [vmem:[#allocation3 + $0x30] sm:$0xf] %vm2277_vm12, %v2206_v3 }
 0x320   : > { %v1794_v36 = vpop.permute.xlu2 %1793 }
 0x321   : > { %1859 = vst.msk [vmem:[#allocation3 + $0x7c] sm:$0xf] %vm1827_vm9, %v1794_v36 }
 0x322   : > { %v2190_v43 = vpop.permute.xlu1 %2189 }
 0x323   : > { %2282 = vst.msk [vmem:[#allocation3 + $0x10] sm:$0xf] %vm2277_vm12, %v2190_v43 }
 0x325   : > { %v1778_v10 = vpop.permute.xlu0 %1777 }
 0x326   : > { %1851 = vst.msk [vmem:[#allocation3 + $0x5c] sm:$0xf] %vm1827_vm9, %v1778_v10 }
 0x328   : > { %v2017_v6 = vpop.permute.xlu2 %2016 }
 0x32a   : > { %v2208_v25 = vpop.permute.xlu1 %2207  ;;  %v2829_v31 = vld [vmem:[#allocation3 + $0x10] sm:$0xff] }
 0x32b   : > { %2291 = vst.msk [vmem:[#allocation3 + $0x34] sm:$0xf] %vm2277_vm12, %v2208_v25  ;;  %2807 = vmatmul.msk.bf16.gmra.mxu0 %vm2442_vm13, %v2829_v31 }
 0x32d   : > { %v2001_v52 = vpop.permute.xlu0 %2000 }
 0x32e   : > { %2075 = vst.msk [vmem:[#allocation3 + $0x58] sm:$0xf] %vm2052_vm11, %v2001_v52  ;;  %v2544_v35 = vpop.f32.mrf.mxu2 }
 0x330   : > { %v2228_v1 = vpop.permute.xlu2 %2227 }
 0x332   : > { %v1792_v46 = vpop.permute.xlu1 %1791  ;;  %v2833_v33 = vld [vmem:[#allocation3 + $0x30] sm:$0xff] }
 0x333   : > { %1858 = vst.msk [vmem:[#allocation3 + $0x78] sm:$0xf] %vm1827_vm9, %v1792_v46  ;;  %2811 = vmatmul.msk.bf16.gmra.mxu1 %vm2442_vm13, %v2833_v33 }
 0x334   : > { %2083 = vst.msk [vmem:[#allocation3 + $0x78] sm:$0xf] %vm2052_vm11, %v2017_v6 }
 0x335   : > { %v2019_v58 = vpop.permute.xlu0 %2018 }
 0x336   : > { %2084 = vst.msk [vmem:[#allocation3 + $0x7c] sm:$0xf] %vm2052_vm11, %v2019_v58  ;;  %v2546_v40 = vpop.f32.mrf.mxu2  ;;  %v2564_v42 = vpop.f32.mrf.mxu3 }
 0x337   : > { %v2889_v44 = vpack.c.bf16 %v2546_v40, %v2544_v35 }
 0x338   : > { %v1969_v15 = vpop.permute.xlu2 %1968 }
 0x339   : > { %2059 = vst.msk [vmem:[#allocation3 + $0x18] sm:$0xf] %vm2052_vm11, %v1969_v15 }
 0x33a   : > { %2933 = vst [vmem:[%s4221_s14 + $0x40] sm:$0xff] %v2889_v44   ;;  %v2003_v39 = vpop.permute.xlu1 %2002 }
 0x33b   : > { %2076 = vst.msk [vmem:[#allocation3 + $0x5c] sm:$0xf] %vm2052_vm11, %v2003_v39  ;;  %v2524_v49 = vpop.f32.mrf.mxu1 }
 0x33c   : > { %2301 = vst.msk [vmem:[#allocation3 + $0x5c] sm:$0xf] %vm2277_vm12, %v2228_v1 }
 0x33d   : > { %v2242_v5 = vpop.permute.xlu0 %2241 }
 0x33e   : > { %2308 = vst.msk [vmem:[#allocation3 + $0x78] sm:$0xf] %vm2277_vm12, %v2242_v5  ;;  %v2566_v53 = vpop.f32.mrf.mxu3 }
 0x33f   : > { %v2909_v57 = vpack.c.bf16 %v2566_v53, %v2564_v42 }
 0x340   : > { %v1987_v29 = vpop.permute.xlu2 %1986  ;;  %v2504_v45 = vpop.f32.mrf.mxu0 }
 0x341   : > { %2068 = vst.msk [vmem:[#allocation3 + $0x3c] sm:$0xf] %vm2052_vm11, %v1987_v29 }
 0x342   : > { %2937 = vst [vmem:[%s4221_s14 + $0x60] sm:$0xff] %v2909_v57   ;;  %v2226_v23 = vpop.permute.xlu1 %2225 }
 0x343   : > { %2300 = vst.msk [vmem:[#allocation3 + $0x58] sm:$0xf] %vm2277_vm12, %v2226_v23  ;;  %v2526_v0 = vpop.f32.mrf.mxu1 }
 0x344   : > { %v2869_v16 = vpack.c.bf16 %v2526_v0, %v2524_v49 }
 0x345   : > { %v1971_v4 = vpop.permute.xlu0 %1970 }
 0x346   : > { %2060 = vst.msk [vmem:[#allocation3 + $0x1c] sm:$0xf] %vm2052_vm11, %v1971_v4 }
 0x347   : > { %2929 = vst [vmem:[%s4221_s14 + $0x20] sm:$0xff] %v2869_v16  }
 0x348   : > { %v2506_v60 = vpop.f32.mrf.mxu0  ;;  %v2210_v14 = vpop.permute.xlu2 %2209 }
 0x349   : > { %v2849_v7 = vpack.c.bf16 %v2506_v60, %v2504_v45 }
 0x34a   : > { %v2244_v12 = vpop.permute.xlu1 %2243  ;;  %v2838_v38 = vld [vmem:[#allocation3 + $0x58] sm:$0xff] }
 0x34b   : > { %2309 = vst.msk [vmem:[#allocation3 + $0x7c] sm:$0xf] %vm2277_vm12, %v2244_v12  ;;  %2816 = vmatmul.msk.bf16.gmra.mxu2 %vm2442_vm13, %v2838_v38 }
 0x34c   : > { %2850 = vst [vmem:[%s4221_s14] sm:$0xff] %v2849_v7  }
 0x34d   : > { %v2194_v50 = vpop.permute.xlu0 %2193 }
 0x34e   : > { %2284 = vst.msk [vmem:[#allocation3 + $0x18] sm:$0xf] %vm2277_vm12, %v2194_v50 }
 0x352   : > { %v1985_v8 = vpop.permute.xlu1 %1984  ;;  %v2842_v18 = vld [vmem:[#allocation3 + $0x78] sm:$0xff] }
 0x353   : > { %2067 = vst.msk [vmem:[#allocation3 + $0x38] sm:$0xf] %vm2052_vm11, %v1985_v8  ;;  %2820 = vmatmul.msk.bf16.gmra.mxu3 %vm2442_vm13, %v2842_v18 }
 0x354   : > { %2292 = vst.msk [vmem:[#allocation3 + $0x38] sm:$0xf] %vm2277_vm12, %v2210_v14 }
 0x355   : > { %v2212_v62 = vpop.permute.xlu0 %2211 }
 0x356   : > { %2293 = vst.msk [vmem:[#allocation3 + $0x3c] sm:$0xf] %vm2277_vm12, %v2212_v62 }
 0x35a   : > { %v2196_v34 = vpop.permute.xlu1 %2195 }
 0x35b   : > { %2285 = vst.msk [vmem:[#allocation3 + $0x1c] sm:$0xf] %vm2277_vm12, %v2196_v34 }
 0x35d   : > { %v2834_v32 = vld [vmem:[#allocation3 + $0x38] sm:$0xff] }
 0x35e   : > { %2812 = vmatmul.msk.bf16.gmra.mxu1 %vm2442_vm13, %v2834_v32 }
 0x361   : > { %v2569_v24 = vpop.f32.mrf.mxu3 }
 0x362   : > { %v2830_v51 = vld [vmem:[#allocation3 + $0x18] sm:$0xff] }
 0x363   : > { %2808 = vmatmul.msk.bf16.gmra.mxu0 %vm2442_vm13, %v2830_v51 }
 0x366   : > { %v2549_v63 = vpop.f32.mrf.mxu2 }
 0x369   : > { %v2571_v30 = vpop.f32.mrf.mxu3 }
 0x36a   : > { %v2914_v47 = vpack.c.bf16 %v2571_v30, %v2569_v24 }
 0x36b   : > { %v2509_v13 = vpop.f32.mrf.mxu0 }
 0x36c   : > { %2938 = vst [vmem:[%s4221_s14 + $0x68] sm:$0xff] %v2914_v47  }
 0x36e   : > { %v2551_v21 = vpop.f32.mrf.mxu2 }
 0x36f   : > { %v2894_v27 = vpack.c.bf16 %v2551_v21, %v2549_v63 }
 0x371   : > { %2934 = vst [vmem:[%s4221_s14 + $0x48] sm:$0xff] %v2894_v27  }
 0x373   : > { %v2511_v37 = vpop.f32.mrf.mxu0 }
 0x374   : > { %v2854_v17 = vpack.c.bf16 %v2511_v37, %v2509_v13 }
 0x376   : > { %2926 = vst [vmem:[%s4221_s14 + $0x8] sm:$0xff] %v2854_v17  }
 0x378   : > { %v2529_v19 = vpop.f32.mrf.mxu1 }
 0x380   : > { %v2531_v59 = vpop.f32.mrf.mxu1 }
 0x381   : > { %v2874_v22 = vpack.c.bf16 %v2531_v59, %v2529_v19 }
 0x383   : > { %2930 = vst [vmem:[%s4221_s14 + $0x28] sm:$0xff] %v2874_v22  }
 0x391   : > { %v2554_v61 = vpop.f32.mrf.mxu2 }
 0x399   : > { %v2556_v55 = vpop.f32.mrf.mxu2 }
 0x39a   : > { %v2899_v54 = vpack.c.bf16 %v2556_v55, %v2554_v61 }
 0x39c   : > { %2935 = vst [vmem:[%s4221_s14 + $0x50] sm:$0xff] %v2899_v54  }
 0x39e   : > { %v2574_v26 = vpop.f32.mrf.mxu3 }
 0x3a6   : > { %v2576_v48 = vpop.f32.mrf.mxu3 }
 0x3a7   : > { %v2919_v20 = vpack.c.bf16 %v2576_v48, %v2574_v26 }
 0x3a8   : > { %v2514_v28 = vpop.f32.mrf.mxu0 }
 0x3a9   : > { %2939 = vst [vmem:[%s4221_s14 + $0x70] sm:$0xff] %v2919_v20  }
 0x3b0   : > { %v2516_v11 = vpop.f32.mrf.mxu0  ;;  %v2534_v56 = vpop.f32.mrf.mxu1 }
 0x3b1   : > { %v2859_v2 = vpack.c.bf16 %v2516_v11, %v2514_v28 }
 0x3b3   : > { %2927 = vst [vmem:[%s4221_s14 + $0x10] sm:$0xff] %v2859_v2  }
 0x3b8   : > { %v2536_v9 = vpop.f32.mrf.mxu1 }
 0x3b9   : > { %v2879_v41 = vpack.c.bf16 %v2536_v9, %v2534_v56 }
 0x3bb   : > { %2931 = vst [vmem:[%s4221_s14 + $0x30] sm:$0xff] %v2879_v41  }
 0x3ce   : > { %v2559_v3 = vpop.f32.mrf.mxu2 }
 0x3d6   : > { %v2561_v36 = vpop.f32.mrf.mxu2  ;;  %v2579_v43 = vpop.f32.mrf.mxu3 }
 0x3d7   : > { %v2904_v10 = vpack.c.bf16 %v2561_v36, %v2559_v3 }
 0x3d9   : > { %2936 = vst [vmem:[%s4221_s14 + $0x58] sm:$0xff] %v2904_v10  }
 0x3db   : > { %v2539_v6 = vpop.f32.mrf.mxu1 }
 0x3de   : > { %v2581_v25 = vpop.f32.mrf.mxu3 }
 0x3df   : > { %v2924_v31 = vpack.c.bf16 %v2581_v25, %v2579_v43 }
 0x3e0   : > { %v2519_v52 = vpop.f32.mrf.mxu0 }
 0x3e1   : > { %2940 = vst [vmem:[%s4221_s14 + $0x78] sm:$0xff] %v2924_v31  }
 0x3e3   : > { %v2541_v35 = vpop.f32.mrf.mxu1 }
 0x3e4   : > { %v2884_v1 = vpack.c.bf16 %v2541_v35, %v2539_v6 }
 0x3e6   : > { %2932 = vst [vmem:[%s4221_s14 + $0x38] sm:$0xff] %v2884_v1  }
 0x3e8   : > { %v2521_v46 = vpop.f32.mrf.mxu0 }
 0x3e9   : > { %v2864_v33 = vpack.c.bf16 %v2521_v46, %v2519_v52 }
 0x3eb   : > { %2928 = vst [vmem:[%s4221_s14 + $0x18] sm:$0xff] %v2864_v33  }
 0x3ec   : > { %3030 = shalt.err (!%p3027_p3)
}
 0x3ed   : > { %s3076_s12 = smov 64  }
 0x3ee   : > { %2950 = dma.vmem_to_hbm [thread:$0]  (%p3140_p5), %s2662_s29, 2048, %s2664_s30, %s2649_s5, %s3076_s12, %s3076_s12, %s3068_s27  }
 0x3ef PF: > { %p2956_p4 = scmp.ge.s32.totalorder %s3065_s18, 2  ;;  %s2678_s13 = sand.u32 1, %s3053_s15  }
 0x3f0   : > { %s2679_s14 = scalar_lea.sflag [#allocation5], %s2678_s13 }
 0x3f1   : > { %p2953_p7 = pnand %p2956_p4, %p3144_p6 }
 0x3f3   : > { %p2954_p8 = pneg %p2953_p7 }
 0x3f5   : > { %3048 = dma.done.wait (%p2954_p8), %s2679_s14, 2048  }
 0x3f6   : > { %3050 = vsyncadd (%p2954_p8), %s2679_s14, 4294965248  ;;  %p14_p9 = scmp.ge.s32.totalorder %s3127_s21, 4   ;;  %s4297_s15 = smov %s3057_s16 }
 0x3f7   : > { %s4298_s16 = smov %s3061_s17  ;;  %s4299_s17 = smov %s3138_s24 }
 0x3f8   : > { %s4300_s18 = smov %s3127_s21  ;;  %16 = sbr.rel (!%p14_p9) target bundleno = 3 (0x3), region = 74 }
 0x3fd   :  { %2685 = vsyncpa [#allocation5], 1 }
 0x3fe   :  { %2687 = vsyncpa [#allocation5 + $0x1], 1 }

</bundles_post_ra>
